<compile_context>
chip_gen: v6e
topology: v6e:2x2x1
jax: 0.10.0
libtpu: 0.0.40
codegen_flags: <defaults>
</compile_context>

<pallas_src>
import functools

import jax
import jax.numpy as jnp
from jax.experimental import pallas as pl
from jax.experimental.pallas import tpu as pltpu


def _round_up(x, m):
    return (x + m - 1) // m * m


def _pick_tile_h(h, w):
    """Pick TH dividing H: prefer TH>=8 (halo overhead <=25%) and TH*W>=256
    (MXU-sized M); among those the smallest M, else the largest M available."""
    best, best_key = h, None
    for th in range(1, h + 1):
        if h % th:
            continue
        m = th * w
        key = (th < 8, m < 256, m if m >= 256 else -m)
        if best_key is None or key < best_key:
            best, best_key = th, key
    return best


def _bn_relu_conv_kernel(x_ref, w_ref, scale_ref, shift_ref, o_ref, patch_ref,
                         *, kh, kw):
    # x_ref:     (TH + 2*ph, W + 2*pw, Cin)   raw input tile (halo + raw-zero pad)
    # w_ref:     (KH*KW*Cin, Coutp)           bf16 im2col weights
    # scale_ref: (1, 1, Cin)  shift_ref: (1, 1, Cin)   folded BN affine (f32)
    # o_ref:     (TH, W, Coutp)
    # patch_ref: (TH, W, KH*KW*Cin)           bf16 VMEM im2col scratch
    th, w_out, coutp = o_ref.shape
    th_halo, wp, cin = x_ref.shape
    ph = (th_halo - th) // 2
    pw = (wp - w_out) // 2

    t = pl.program_id(1)
    nt = pl.num_programs(1)

    # Fused inference BatchNorm + ReLU (VPU, f32).
    x = x_ref[...].astype(jnp.float32)
    act = jnp.maximum(x * scale_ref[...] + shift_ref[...], 0.0)

    # SAME padding positions were raw zeros in the wrapper; BN+ReLU of a raw
    # zero is not zero, so force exact zeros there (edge rows only exist in the
    # first / last H tile; pad columns exist in every tile).
    rows = jax.lax.broadcasted_iota(jnp.int32, (th_halo, wp, cin), 0)
    cols = jax.lax.broadcasted_iota(jnp.int32, (th_halo, wp, cin), 1)
    pad_row = ((rows < ph) & (t == 0)) | ((rows >= th + ph) & (t == nt - 1))
    pad_col = (cols < pw) | (cols >= pw + w_out)
    act = jnp.where(pad_row | pad_col, 0.0, act).astype(patch_ref.dtype)

    # Assemble the im2col patch in VMEM: tap (i, j) occupies the Cin-wide
    # column block k = i*KW + j.  One deep matmul replaces KH*KW shallow ones.
    for i in range(kh):
        for j in range(kw):
            k = i * kw + j
            patch_ref[:, :, k * cin:(k + 1) * cin] = act[i:i + th, j:j + w_out, :]

    patch = patch_ref[...].reshape(th * w_out, kh * kw * cin)
    out = jnp.dot(patch, w_ref[...], preferred_element_type=jnp.float32)
    o_ref[...] = out.reshape(th, w_out, coutp).astype(o_ref.dtype)


def conv_bn_relu(x, weight, gamma, beta, running_mean, running_var, *, eps=1e-5):
    """Pallas equivalent of Conv(in,out,kernel=3).forward(x) (eval-mode BN).

    x:      (N, Cin, H, W)       NCHW, as in PyTorch
    weight: (Cout, Cin, KH, KW)  OIHW, as in PyTorch
    gamma, beta, running_mean, running_var: (Cin,)
    returns (N, Cout, H, W)
    """
    n, cin, h, w = x.shape
    cout, cin2, kh, kw = weight.shape
    assert cin2 == cin, (cin2, cin)
    assert kh % 2 == 1 and kw % 2 == 1, "only odd kernels (SAME padding)"
    ph, pw = kh // 2, kw // 2

    # Fold eval-mode BatchNorm into a per-channel affine (f32).
    g32 = gamma.astype(jnp.float32)
    inv = jax.lax.rsqrt(running_var.astype(jnp.float32) + eps)
    scale = (g32 * inv).reshape(1, 1, cin)
    shift = (beta.astype(jnp.float32)
             - running_mean.astype(jnp.float32) * g32 * inv).reshape(1, 1, cin)

    th = _pick_tile_h(h, w)
    n_tiles = h // th
    coutp = _round_up(cout, 128)          # lane-dense output store

    # Layout plumbing (wrapper-side XLA): NCHW -> NHWC, raw-zero SAME pad, cast
    # to bf16, and overlapping row tiles so each grid step sees its 1-row halo.
    x_nhwc = jnp.transpose(x, (0, 2, 3, 1))                       # (N, H, W, Cin)
    x_pad = jnp.pad(x_nhwc, ((0, 0), (ph, ph), (pw, pw), (0, 0)))
    x_pad = x_pad.astype(jnp.bfloat16)
    x_tiles = jnp.stack(
        [x_pad[:, i * th:i * th + th + 2 * ph] for i in range(n_tiles)],
        axis=1)                                                   # (N, T, TH+2ph, W+2pw, Cin)

    # Weights: OIHW -> (KH*KW*Cin, Cout), pad Cout to 128 multiple, bf16.
    w_mat = jnp.transpose(weight, (2, 3, 1, 0)).reshape(kh * kw * cin, cout)
    w_mat = jnp.pad(w_mat, ((0, 0), (0, coutp - cout))).astype(jnp.bfloat16)

    # Explicit scoped-VMEM budget from the actual block/scratch sizes.
    out_itemsize = jnp.dtype(x.dtype).itemsize
    in_block = (th + 2 * ph) * (w + 2 * pw) * cin * 2
    w_block = kh * kw * cin * coutp * 2
    out_block = th * w * coutp * out_itemsize
    patch_block = th * w * kh * kw * cin * 2
    est = 2 * (in_block + out_block) + 2 * w_block + patch_block + 2 * cin * 4
    vmem_limit = int(min(64 * 2**20, max(4 * est, 16 * 2**20)))

    kernel = functools.partial(_bn_relu_conv_kernel, kh=kh, kw=kw)

    out_nhwc = pl.pallas_call(
        kernel,
        out_shape=jax.ShapeDtypeStruct((n, h, w, coutp), x.dtype),
        grid_spec=pltpu.PrefetchScalarGridSpec(
            num_scalar_prefetch=0,
            grid=(n, n_tiles),
            in_specs=[
                pl.BlockSpec((pl.Squeezed(), pl.Squeezed(),
                              th + 2 * ph, w + 2 * pw, cin),
                             lambda b, i: (b, i, 0, 0, 0)),
                pl.BlockSpec((kh * kw * cin, coutp), lambda b, i: (0, 0)),
                pl.BlockSpec((1, 1, cin), lambda b, i: (0, 0, 0)),
                pl.BlockSpec((1, 1, cin), lambda b, i: (0, 0, 0)),
            ],
            out_specs=pl.BlockSpec((pl.Squeezed(), th, w, coutp),
                                   lambda b, i: (b, i, 0, 0)),
            scratch_shapes=[
                pltpu.VMEM((th, w, kh * kw * cin), jnp.bfloat16),
            ],
        ),
        compiler_params=pltpu.CompilerParams(
            # Batch and H-tile axes are independent -> shard across TensorCores.
            dimension_semantics=("parallel", "parallel"),
            vmem_limit_bytes=vmem_limit,
        ),
    )(x_tiles, w_mat, scale, shift)

    out_nhwc = out_nhwc[..., :cout]                   # drop Cout lane padding
    return jnp.transpose(out_nhwc, (0, 3, 1, 2))      # back to NCHW


if __name__ == "__main__":
    key = jax.random.PRNGKey(0)
    kx, kw_, kg, kb, km, kv = jax.random.split(key, 6)

    # Small shapes consistent with the module: batch=2, Cin=8, Cout=16, 16x16.
    N, Cin, Cout, H, W, K = 2, 8, 16, 16, 16, 3
    x = jax.random.normal(kx, (N, Cin, H, W), dtype=jnp.float32)
    weight = jax.random.normal(kw_, (Cout, Cin, K, K), dtype=jnp.float32) * 0.1
    gamma = 1.0 + 0.5 * jax.random.normal(kg, (Cin,), dtype=jnp.float32)
    beta = 0.1 * jax.random.normal(kb, (Cin,), dtype=jnp.float32)
    running_mean = 0.1 * jax.random.normal(km, (Cin,), dtype=jnp.float32)
    running_var = jax.random.uniform(kv, (Cin,), dtype=jnp.float32,
                                     minval=0.5, maxval=1.5)

    out = conv_bn_relu(x, weight, gamma, beta, running_mean, running_var)
    out = jax.block_until_ready(out)

    # Pure-JAX reference: eval-mode BN + ReLU + SAME 3x3 conv (no bias), with
    # operands rounded to bf16 exactly as the kernel's MXU path does.
    eps = 1e-5
    inv = jax.lax.rsqrt(running_var + eps)
    scale_ref = (gamma * inv)[None, :, None, None]
    shift_ref = (beta - running_mean * gamma * inv)[None, :, None, None]
    x_bf = x.astype(jnp.bfloat16).astype(jnp.float32)
    act = jnp.maximum(x_bf * scale_ref + shift_ref, 0.0)
    act_bf = act.astype(jnp.bfloat16).astype(jnp.float32)
    w_bf = weight.astype(jnp.bfloat16).astype(jnp.float32)
    ref = jax.lax.conv_general_dilated(
        act_bf, w_bf, window_strides=(1, 1), padding=((1, 1), (1, 1)),
        dimension_numbers=("NCHW", "OIHW", "NCHW"),
        precision=jax.lax.Precision.HIGHEST)

    assert out.shape == ref.shape, (out.shape, ref.shape)
    assert out.dtype == ref.dtype, (out.dtype, ref.dtype)
    err = float(jnp.max(jnp.abs(out - ref)))
    assert err < 1e-2, f"Pallas Conv mismatch vs reference: max abs err {err}"

    print("KERNEL_OK")
</pallas_src>

<mosaic_0001>
module attributes {stable_mosaic.version = 11 : i64} {
  func.func @_bn_relu_conv_kernel(%arg0: i32, %arg1: i32, %arg2: memref<1x1x18x18x8xbf16, #tpu.memory_space<vmem>>, %arg3: memref<72x128xbf16, #tpu.memory_space<vmem>>, %arg4: memref<1x1x8xf32, #tpu.memory_space<vmem>>, %arg5: memref<1x1x8xf32, #tpu.memory_space<vmem>>, %arg6: memref<1x16x16x128xf32, #tpu.memory_space<vmem>>, %arg7: memref<16x16x72xbf16, #tpu.memory_space<vmem>>) attributes {dimension_semantics = [#tpu.dimension_semantics<parallel>, #tpu.dimension_semantics<parallel>], iteration_bounds = array<i64: 2, 1>, scalar_prefetch = 0 : i64, scratch_operands = 1 : i64, tpu.core_type = #tpu.core_type<tc>, window_params = [{transform_indices = @transform_0, window_bounds = array<i64: 1, 1, 18, 18, 8>}, {pipeline_mode = #tpu.pipeline_mode<synchronous>, transform_indices = @transform_1, window_bounds = array<i64: 72, 128>}, {pipeline_mode = #tpu.pipeline_mode<synchronous>, transform_indices = @transform_2, window_bounds = array<i64: 1, 1, 8>}, {pipeline_mode = #tpu.pipeline_mode<synchronous>, transform_indices = @transform_3, window_bounds = array<i64: 1, 1, 8>}, {transform_indices = @transform_4, window_bounds = array<i64: 1, 16, 16, 128>}]} {
    %c0 = arith.constant 0 : index
    %c0_0 = arith.constant 0 : index
    %c0_1 = arith.constant 0 : index
    %c0_2 = arith.constant 0 : index
    %c0_3 = arith.constant 0 : index
    %0 = vector.load %arg2[%c0, %c0_0, %c0_1, %c0_2, %c0_3] : memref<1x1x18x18x8xbf16, #tpu.memory_space<vmem>>, vector<1x1x18x18x8xbf16>
    %1 = vector.shape_cast %0 : vector<1x1x18x18x8xbf16> to vector<18x18x8xbf16>
    %2 = arith.extf %1 : vector<18x18x8xbf16> to vector<18x18x8xf32>
    %c0_4 = arith.constant 0 : index
    %c0_5 = arith.constant 0 : index
    %c0_6 = arith.constant 0 : index
    %3 = vector.load %arg4[%c0_4, %c0_5, %c0_6] : memref<1x1x8xf32, #tpu.memory_space<vmem>>, vector<1x1x8xf32>
    %4 = vector.broadcast %3 : vector<1x1x8xf32> to vector<18x18x8xf32>
    %5 = arith.mulf %2, %4 : vector<18x18x8xf32>
    %c0_7 = arith.constant 0 : index
    %c0_8 = arith.constant 0 : index
    %c0_9 = arith.constant 0 : index
    %6 = vector.load %arg5[%c0_7, %c0_8, %c0_9] : memref<1x1x8xf32, #tpu.memory_space<vmem>>, vector<1x1x8xf32>
    %7 = vector.broadcast %6 : vector<1x1x8xf32> to vector<18x18x8xf32>
    %8 = arith.addf %5, %7 : vector<18x18x8xf32>
    %cst = arith.constant 0.000000e+00 : f32
    %9 = vector.broadcast %cst : f32 to vector<18x18x8xf32>
    %10 = arith.maximumf %8, %9 : vector<18x18x8xf32>
    %11 = tpu.iota {dimensions = array<i32: 0>} : vector<18x18x8xi32>
    %12 = tpu.iota {dimensions = array<i32: 1>} : vector<18x18x8xi32>
    %c1_i32 = arith.constant 1 : i32
    %13 = vector.broadcast %c1_i32 : i32 to vector<18x18x8xi32>
    %14 = arith.cmpi slt, %11, %13 : vector<18x18x8xi32>
    %c0_i32 = arith.constant 0 : i32
    %15 = arith.cmpi eq, %arg1, %c0_i32 : i32
    %16 = vector.broadcast %15 : i1 to vector<18x18x8xi1>
    %17 = arith.andi %14, %16 : vector<18x18x8xi1>
    %c17_i32 = arith.constant 17 : i32
    %18 = vector.broadcast %c17_i32 : i32 to vector<18x18x8xi32>
    %19 = arith.cmpi sge, %11, %18 : vector<18x18x8xi32>
    %c0_i32_10 = arith.constant 0 : i32
    %20 = arith.cmpi eq, %arg1, %c0_i32_10 : i32
    %21 = vector.broadcast %20 : i1 to vector<18x18x8xi1>
    %22 = arith.andi %19, %21 : vector<18x18x8xi1>
    %23 = arith.ori %17, %22 : vector<18x18x8xi1>
    %c1_i32_11 = arith.constant 1 : i32
    %24 = vector.broadcast %c1_i32_11 : i32 to vector<18x18x8xi32>
    %25 = arith.cmpi slt, %12, %24 : vector<18x18x8xi32>
    %c17_i32_12 = arith.constant 17 : i32
    %26 = vector.broadcast %c17_i32_12 : i32 to vector<18x18x8xi32>
    %27 = arith.cmpi sge, %12, %26 : vector<18x18x8xi32>
    %28 = arith.ori %25, %27 : vector<18x18x8xi1>
    %29 = arith.ori %23, %28 : vector<18x18x8xi1>
    %cst_13 = arith.constant 0.000000e+00 : f32
    %30 = vector.broadcast %cst_13 : f32 to vector<18x18x8xf32>
    %31 = arith.select %29, %30, %10 : vector<18x18x8xi1>, vector<18x18x8xf32>
    %32 = arith.truncf %31 : vector<18x18x8xf32> to vector<18x18x8xbf16>
    %33 = vector.extract_strided_slice %32 {offsets = [0, 0, 0], sizes = [16, 16, 8], strides = [1, 1, 1]} : vector<18x18x8xbf16> to vector<16x16x8xbf16>
    %c0_14 = arith.constant 0 : index
    %c0_15 = arith.constant 0 : index
    %c0_16 = arith.constant 0 : index
    %34 = vector.load %arg7[%c0_14, %c0_15, %c0_16] : memref<16x16x72xbf16, #tpu.memory_space<vmem>>, vector<16x16x8xbf16>
    tpu.vector_store %arg7[%c0_14, %c0_15, %c0_16], %33 {strides = array<i32>} : memref<16x16x72xbf16, #tpu.memory_space<vmem>>, vector<16x16x8xbf16>,
    %35 = vector.extract_strided_slice %32 {offsets = [0, 1, 0], sizes = [16, 16, 8], strides = [1, 1, 1]} : vector<18x18x8xbf16> to vector<16x16x8xbf16>
    %c0_17 = arith.constant 0 : index
    %c0_18 = arith.constant 0 : index
    %c8 = arith.constant 8 : index
    %36 = vector.load %arg7[%c0_17, %c0_18, %c8] : memref<16x16x72xbf16, #tpu.memory_space<vmem>>, vector<16x16x8xbf16>
    tpu.vector_store %arg7[%c0_17, %c0_18, %c8], %35 {strides = array<i32>} : memref<16x16x72xbf16, #tpu.memory_space<vmem>>, vector<16x16x8xbf16>,
    %37 = vector.extract_strided_slice %32 {offsets = [0, 2, 0], sizes = [16, 16, 8], strides = [1, 1, 1]} : vector<18x18x8xbf16> to vector<16x16x8xbf16>
    %c0_19 = arith.constant 0 : index
    %c0_20 = arith.constant 0 : index
    %c16 = arith.constant 16 : index
    %38 = vector.load %arg7[%c0_19, %c0_20, %c16] : memref<16x16x72xbf16, #tpu.memory_space<vmem>>, vector<16x16x8xbf16>
    tpu.vector_store %arg7[%c0_19, %c0_20, %c16], %37 {strides = array<i32>} : memref<16x16x72xbf16, #tpu.memory_space<vmem>>, vector<16x16x8xbf16>,
    %39 = vector.extract_strided_slice %32 {offsets = [1, 0, 0], sizes = [16, 16, 8], strides = [1, 1, 1]} : vector<18x18x8xbf16> to vector<16x16x8xbf16>
    %c0_21 = arith.constant 0 : index
    %c0_22 = arith.constant 0 : index
    %c24 = arith.constant 24 : index
    %40 = vector.load %arg7[%c0_21, %c0_22, %c24] : memref<16x16x72xbf16, #tpu.memory_space<vmem>>, vector<16x16x8xbf16>
    tpu.vector_store %arg7[%c0_21, %c0_22, %c24], %39 {strides = array<i32>} : memref<16x16x72xbf16, #tpu.memory_space<vmem>>, vector<16x16x8xbf16>,
    %41 = vector.extract_strided_slice %32 {offsets = [1, 1, 0], sizes = [16, 16, 8], strides = [1, 1, 1]} : vector<18x18x8xbf16> to vector<16x16x8xbf16>
    %c0_23 = arith.constant 0 : index
    %c0_24 = arith.constant 0 : index
    %c32 = arith.constant 32 : index
    %42 = vector.load %arg7[%c0_23, %c0_24, %c32] : memref<16x16x72xbf16, #tpu.memory_space<vmem>>, vector<16x16x8xbf16>
    tpu.vector_store %arg7[%c0_23, %c0_24, %c32], %41 {strides = array<i32>} : memref<16x16x72xbf16, #tpu.memory_space<vmem>>, vector<16x16x8xbf16>,
    %43 = vector.extract_strided_slice %32 {offsets = [1, 2, 0], sizes = [16, 16, 8], strides = [1, 1, 1]} : vector<18x18x8xbf16> to vector<16x16x8xbf16>
    %c0_25 = arith.constant 0 : index
    %c0_26 = arith.constant 0 : index
    %c40 = arith.constant 40 : index
    %44 = vector.load %arg7[%c0_25, %c0_26, %c40] : memref<16x16x72xbf16, #tpu.memory_space<vmem>>, vector<16x16x8xbf16>
    tpu.vector_store %arg7[%c0_25, %c0_26, %c40], %43 {strides = array<i32>} : memref<16x16x72xbf16, #tpu.memory_space<vmem>>, vector<16x16x8xbf16>,
    %45 = vector.extract_strided_slice %32 {offsets = [2, 0, 0], sizes = [16, 16, 8], strides = [1, 1, 1]} : vector<18x18x8xbf16> to vector<16x16x8xbf16>
    %c0_27 = arith.constant 0 : index
    %c0_28 = arith.constant 0 : index
    %c48 = arith.constant 48 : index
    %46 = vector.load %arg7[%c0_27, %c0_28, %c48] : memref<16x16x72xbf16, #tpu.memory_space<vmem>>, vector<16x16x8xbf16>
    tpu.vector_store %arg7[%c0_27, %c0_28, %c48], %45 {strides = array<i32>} : memref<16x16x72xbf16, #tpu.memory_space<vmem>>, vector<16x16x8xbf16>,
    %47 = vector.extract_strided_slice %32 {offsets = [2, 1, 0], sizes = [16, 16, 8], strides = [1, 1, 1]} : vector<18x18x8xbf16> to vector<16x16x8xbf16>
    %c0_29 = arith.constant 0 : index
    %c0_30 = arith.constant 0 : index
    %c56 = arith.constant 56 : index
    %48 = vector.load %arg7[%c0_29, %c0_30, %c56] : memref<16x16x72xbf16, #tpu.memory_space<vmem>>, vector<16x16x8xbf16>
    tpu.vector_store %arg7[%c0_29, %c0_30, %c56], %47 {strides = array<i32>} : memref<16x16x72xbf16, #tpu.memory_space<vmem>>, vector<16x16x8xbf16>,
    %49 = vector.extract_strided_slice %32 {offsets = [2, 2, 0], sizes = [16, 16, 8], strides = [1, 1, 1]} : vector<18x18x8xbf16> to vector<16x16x8xbf16>
    %c0_31 = arith.constant 0 : index
    %c0_32 = arith.constant 0 : index
    %c64 = arith.constant 64 : index
    %50 = vector.load %arg7[%c0_31, %c0_32, %c64] : memref<16x16x72xbf16, #tpu.memory_space<vmem>>, vector<16x16x8xbf16>
    tpu.vector_store %arg7[%c0_31, %c0_32, %c64], %49 {strides = array<i32>} : memref<16x16x72xbf16, #tpu.memory_space<vmem>>, vector<16x16x8xbf16>,
    %c0_33 = arith.constant 0 : index
    %c0_34 = arith.constant 0 : index
    %c0_35 = arith.constant 0 : index
    %51 = vector.load %arg7[%c0_33, %c0_34, %c0_35] : memref<16x16x72xbf16, #tpu.memory_space<vmem>>, vector<16x16x72xbf16>
    %52 = vector.shape_cast %51 : vector<16x16x72xbf16> to vector<256x72xbf16>
    %c0_36 = arith.constant 0 : index
    %c0_37 = arith.constant 0 : index
    %53 = vector.load %arg3[%c0_36, %c0_37] : memref<72x128xbf16, #tpu.memory_space<vmem>>, vector<72x128xbf16>
    %cst_38 = arith.constant dense<0.000000e+00> : vector<256x128xf32>
    %54 = tpu.matmul %52, %53, %cst_38 {dimension_numbers = #tpu.dot_dimension_numbers<[1], [0], [0], [1], [0, 0, 1, 1], [], []>} : vector<256x72xbf16>, vector<72x128xbf16>, vector<256x128xf32> -> vector<256x128xf32>
    %55 = vector.shape_cast %54 : vector<256x128xf32> to vector<16x16x128xf32>
    %c0_39 = arith.constant 0 : index
    %c0_40 = arith.constant 0 : index
    %c0_41 = arith.constant 0 : index
    %c0_42 = arith.constant 0 : index
    %56 = vector.load %arg6[%c0_39, %c0_40, %c0_41, %c0_42] : memref<1x16x16x128xf32, #tpu.memory_space<vmem>>, vector<1x16x16x128xf32>
    %57 = vector.shape_cast %56 : vector<1x16x16x128xf32> to vector<16x16x128xf32>
    %58 = vector.shape_cast %55 : vector<16x16x128xf32> to vector<1x16x16x128xf32>
    tpu.vector_store %arg6[%c0_39, %c0_40, %c0_41, %c0_42], %58 {strides = array<i32>} : memref<1x16x16x128xf32, #tpu.memory_space<vmem>>, vector<1x16x16x128xf32>,
    return
  }
  func.func @transform_0(%arg0: i32, %arg1: i32) -> (i32, i32, i32, i32, i32) {
    %c0_i32 = arith.constant 0 : i32
    %c0_i32_0 = arith.constant 0 : i32
    %c0_i32_1 = arith.constant 0 : i32
    %c0_i32_2 = arith.constant 0 : i32
    return %arg0, %arg1, %c0_i32, %c0_i32_0, %c0_i32_1 : i32, i32, i32, i32, i32
  }
  func.func @transform_1(%arg0: i32, %arg1: i32) -> (i32, i32) {
    %c0_i32 = arith.constant 0 : i32
    %c0_i32_0 = arith.constant 0 : i32
    %c0_i32_1 = arith.constant 0 : i32
    return %c0_i32, %c0_i32_0 : i32, i32
  }
  func.func @transform_2(%arg0: i32, %arg1: i32) -> (i32, i32, i32) {
    %c0_i32 = arith.constant 0 : i32
    %c0_i32_0 = arith.constant 0 : i32
    %c0_i32_1 = arith.constant 0 : i32
    %c0_i32_2 = arith.constant 0 : i32
    return %c0_i32, %c0_i32_0, %c0_i32_1 : i32, i32, i32
  }
  func.func @transform_3(%arg0: i32, %arg1: i32) -> (i32, i32, i32) {
    %c0_i32 = arith.constant 0 : i32
    %c0_i32_0 = arith.constant 0 : i32
    %c0_i32_1 = arith.constant 0 : i32
    %c0_i32_2 = arith.constant 0 : i32
    return %c0_i32, %c0_i32_0, %c0_i32_1 : i32, i32, i32
  }
  func.func @transform_4(%arg0: i32, %arg1: i32) -> (i32, i32, i32, i32) {
    %c0_i32 = arith.constant 0 : i32
    %c0_i32_0 = arith.constant 0 : i32
    %c0_i32_1 = arith.constant 0 : i32
    return %arg0, %arg1, %c0_i32, %c0_i32_0 : i32, i32, i32, i32
  }
}

</mosaic_0001>

<bundles_post_ra>
// kernel: tpu_custom_call.1
= control target key start
LH: loop header
LB: loop body
LE: loop exit
PB: predicated region body
PF: predicated region fallthrough
CT: control target
= control target key end

     0   :  { %9 = vsyncpa [#allocation4], 0  ;;  %s5188_s0 = inlined_call_operand.vmem [shape: bf16[2,1,18,18,8], index: 0, kind: input, shape index: {}]   ;;  %s5189_s1 = inlined_call_operand.vmem [shape: bf16[72,128], index: 1, kind: input, shape index: {}]   ;;  %s5190_s2 = inlined_call_operand.vmem [shape: f32[1,1,8], index: 2, kind: input, shape index: {}]   ;;  %s5191_s3 = inlined_call_operand.vmem [shape: f32[1,1,8], index: 3, kind: input, shape index: {}]   ;;  %s5192_s4 = inlined_call_operand.hbm [shape: f32[2,16,16,128], index: 4, kind: output, shape index: {}]  }
   0x1   :  { %11 = vsyncpa [#allocation4 + $0x1], 0  ;;  %s3413_s15 = smov 0   ;;  %s3415_s16 = smov 0  }
   0x2   :  { %s3417_s17 = smov 0   ;;  %s3419_s18 = smov 0  }
   0x3   :  { %s3421_s19 = smov 0   ;;  %s3423_s20 = smov 0  }
   0x4 LB: > { %s2921_s21 = sadd.s32 4294967295, %s3375_s20   ;;  %s2922_s22 = sadd.s32 4294967294, %s3375_s20   ;;  %s3375_s20 = sphi %s3423_s20, %s17_s20   ;;  %s3371_s19 = sphi %s3421_s19, %s5414_s19   ;;  %s3367_s18 = sphi %s3419_s18, %s5413_s18   ;;  %s3363_s17 = sphi %s3417_s17, %s5412_s17   ;;  %s3359_s16 = sphi %s3415_s16, %s5411_s16   ;;  %s3355_s15 = sphi %s3413_s15, %s5410_s15  }
   0x5   : > { %s29_s23 = sadd.s32 1, %s3371_s19  ;;  %s129_s24 = sadd.s32 1, %s3363_s17 }
   0x6   : > { %p31_p0 = scmp.ge.s32.totalorder %s29_s23, 2  ;;  %p139_p1 = scmp.ne.s32.totalorder %s3363_s17, %s3359_s16 }
   0x7   : > { %p140_p2 = scmp.eq.s32.totalorder %s2921_s21, 1  ;;  %p145_p3 = scmp.ne.s32.totalorder %s3359_s16, %s3355_s15 }
   0x8   : > { %s5416_s23 = smov (%p31_p0, %s29_s23), 0  ;;  %p146_p5 = scmp.eq.s32.totalorder %s2922_s22, 1 }
   0x9   : > { %p3453_p4 = por %p140_p2, %p139_p1  ;;  %s124_s26 = ssub.s32 %s3371_s19, %s5416_s23 }
   0xa   : > { %p2925_p6 = scmp.ge.s32.totalorder %s3375_s20, 1  ;;  %p127_p7 = scmp.eq.s32.totalorder %s124_s26, 0 }
   0xb   : > { %p3460_p8 = por %p146_p5, %p145_p3  ;;  %p185_p9 = scmp.lt.s32.totalorder %s3375_s20, 3 }
   0xc   : > { %s3466_s28 = scalar_select %p127_p7, %s3363_s17, %s129_s24  }
   0xd   : > { %p186_p10 = pnand %p2925_p6, %p185_p9 }
   0xf   : > { %189 = sbr.rel (%p186_p10) target bundleno = 945 (0x3b1), region = 36 }
  0x14   : > { %v510_v0 = vlaneseq  ;;  %v3377_v1 = vmov 0.0|0.0   ;;  %vm816_vm0 = vsmask.f32 3328  ;;  %vm817_vm1 = vsmask.f32 7440  ;;  %p215_p11 = scmp.lt.s32.totalorder %s3367_s18, 1 }
  0x15   : > { %v3468_v2 = vcombine.low %v3377_v1, %v3377_v1  ;;  %v3470_v3 = vcombine.high %v3377_v1, %v3377_v1  ;;  %vm3483_vm2 = vmor %vm816_vm0, %vm817_vm1  ;;  %v5294_v10 = vmov 0  ;;  %v3490_v15 = vld [vmem:[%s5190_s2] ss:$0 sm:$0xff]  ;;  %s3378_s12 = smov 8   ;;  %vm1332_vm5 = vcmask 1042432   ;;  %s3379_s24 = smov 16  }
  0x16   : > { %v3473_v4 = vshrl.u32 %v510_v0, 7  ;;  %s216_s29 = scalar_select %p215_p11, %s3367_s18, 1  ;;  %v5295_v10 = vsel %vm3483_vm2, 4294967295, %v5294_v10  ;;  %v3507_v27 = vld [vmem:[%s5191_s3] ss:$0 sm:$0xff]  ;;  %vm1333_vm6 = vcmask 1046532  }
  0x17   : > { %5291 = vst [vmem:[#allocation6_spill] sm:$0xff] %v3468_v2  ;;  %5292 = vst [vmem:[#allocation7_spill] sm:$0xff] %v3470_v3  ;;  %v820_v5 = vshrl.u32 %v3468_v2, 16  ;;  %v823_v6 = vshll.u32 %v3468_v2, 16  ;;  %v829_v7 = vshll.u32 %v3470_v3, 16  ;;  %v833_v8 = vshrl.u32 %v3470_v3, 16 }
  0x18   : > { %v3481_v9 = vadd.s32 16, %v3473_v4  ;;  %5296 = vst [vmem:[#allocation9_spill] sm:$0xff] %v5295_v10  ;;  %s3208_s30 = smul.u32 216, %s216_s29  ;;  %vm518_vm3 = vcmp.lt.s32.totalorder %v3473_v4, 1  ;;  %vm4053_vm7 = vmor %vm1332_vm5, %vm1333_vm6  ;;  %vm735_vm8 = vcmask 60416   ;;  %vm1299_vm9 = vcmask 126016  }
  0x19   : > { %v822_v11 = vrot.slane %v820_v5, 4  ;;  %v825_v12 = vrot.slane %v823_v6, 5  ;;  %v831_v13 = vrot.slane %v829_v7, 5  ;;  %v835_v14 = vrot.slane %v833_v8, 4  ;;  %736 = vst.msk [vmem:[#allocation2] sm:$0xf] %vm735_vm8, %v3468_v2 }
  0x1a   : > { %5293 = vst [vmem:[#allocation8_spill] sm:$0xff] %v3481_v9  ;;  %s3495_s9 = scalar_lea.vmem %s5188_s0, %s3208_s30  ;;  %vm523_vm4 = vcmp.ge.s32.totalorder %v3481_v9, 17  ;;  %737 = vst.msk [vmem:[#allocation2 + $0x4] sm:$0xf] %vm735_vm8, %v3470_v3  ;;  %s3380_s26 = smov 24   ;;  %vm1543_vm10 = vcmask 191616  }
  0x1b   : > { %v826_v16 = vor.u32 %v825_v12, %v822_v11  ;;  %v836_v17 = vor.u32 %v835_v14, %v831_v13  ;;  %v230_v18 = vld [vmem:[%s3495_s9 + $0x10] sm:$0xf]  ;;  %v231_v19 = vld [vmem:[%s3495_s9 + $0x14] sm:$0x1]  ;;  %v3125_v20 = vld [vmem:[%s3495_s9 + $0x18] sm:$0xff]   ;;  %s3381_s29 = smov 32  }
  0x1c   : > { %v284_v22 = vunpack.c.l.bf16 %v230_v18  ;;  %v285_v23 = vunpack.c.l.bf16 %v231_v19  ;;  %v234_v25 = vld [vmem:[%s3495_s9 + $0x20] sm:$0x1]  ;;  %v236_v26 = vld [vmem:[%s3495_s9 + $0x24] sm:$0xff]   ;;  %v3096_v28 = vunpack.c.h.bf16 %v3125_v20  ;;  %v3095_v30 = vunpack.c.l.bf16 %v3125_v20  ;;  %v237_v31 = vld [vmem:[%s3495_s9 + $0x2c] sm:$0x1]  ;;  %s3382_s30 = smov 40  }
  0x1d   : > { %v827_v21 = vrot.slane %v826_v16, 4  ;;  %v837_v24 = vrot.slane %v836_v17, 4  ;;  %v288_v29 = vunpack.c.l.bf16 %v234_v25  ;;  %v290_v32 = vunpack.c.h.bf16 %v236_v26  ;;  %v3126_v19 = vld [vmem:[%s3495_s9 + $0x30] sm:$0xff]   ;;  %s3383_s5 = smov 48   ;;  %s3384_s6 = smov 56  }
  0x1e   : > { %v345_v34 = vmul.f32 %v3490_v15, %v284_v22  ;;  %v346_v35 = vmul.f32 %v3490_v15, %v285_v23  ;;  %v348_v37 = vmul.f32 %v3096_v28, %v3490_v15  ;;  %v347_v39 = vmul.f32 %v3095_v30, %v3490_v15 }
  0x1f   : > { %v3512_v33 = vsel %vm3483_vm2, %v827_v21, %v831_v13  ;;  %v3518_v36 = vsel %vm3483_vm2, %v837_v24, %v825_v12  ;;  %v349_v38 = vmul.f32 %v3490_v15, %v288_v29  ;;  %v291_v40 = vunpack.c.l.bf16 %v237_v31  ;;  %v240_v24 = vld [vmem:[%s3495_s9 + $0x38] sm:$0x1] }
  0x20   : > { %5297 = vst [vmem:[#allocation10_spill] sm:$0xff] %v3512_v33  ;;  %5298 = vst [vmem:[#allocation11_spill] sm:$0xff] %v3518_v36  ;;  %1203 = vrot.lane.b32.xlu0 %v3512_v33, %s3378_s12  ;;  %v406_v41 = vadd.f32 %v3507_v27, %v345_v34  ;;  %v407_v42 = vadd.f32 %v3507_v27, %v346_v35  ;;  %v351_v43 = vmul.f32 %v3490_v15, %v290_v32  ;;  %v3129_v33 = vld [vmem:[%s3495_s9 + $0x78] sm:$0xff]   ;;  %vm1677_vm11 = vcmask 257216  }
  0x21   : > { %v289_v44 = vunpack.c.l.bf16 %v236_v26  ;;  %v409_v45 = vadd.f32 %v3507_v27, %v348_v37  ;;  %v410_v46 = vadd.f32 %v3507_v27, %v349_v38  ;;  %v408_v47 = vadd.f32 %v3507_v27, %v347_v39 }
  0x22   : > { %v352_v48 = vmul.f32 %v3490_v15, %v291_v40  ;;  %v460_v49 = vmax.f32 %v406_v41, 0.0  ;;  %v461_v50 = vmax.f32 %v407_v42, 0.0  ;;  %v412_v51 = vadd.f32 %v3507_v27, %v351_v43 }
  0x23   : > { %v350_v52 = vmul.f32 %v3490_v15, %v289_v44  ;;  %v463_v53 = vmax.f32 %v409_v45, 0.0  ;;  %v464_v54 = vmax.f32 %v410_v46, 0.0  ;;  %v462_v55 = vmax.f32 %v408_v47, 0.0 }
  0x24   : > { %1205 = vrot.lane.b32.xlu0 %v3518_v36, %s3378_s12  ;;  %v413_v56 = vadd.f32 %v3507_v27, %v352_v48  ;;  %v538_v57 = vsel %vm523_vm4, 0.0, %v461_v50  ;;  %v3539_v58 = vpack.c.bf16 %v460_v49, %v460_v49  ;;  %v466_v59 = vmax.f32 %v412_v51, 0.0  ;;  %v242_v48 = vld [vmem:[%s3495_s9 + $0x3c] sm:$0xff]  }
  0x25   : > { %v411_v60 = vadd.f32 %v3507_v27, %v350_v52  ;;  %v3542_v61 = vpack.c.bf16 %v538_v57, %v538_v57  ;;  %v541_v62 = vsel %vm523_vm4, 0.0, %v464_v54  ;;  %v3546_v63 = vpack.c.bf16 %v463_v53, %v463_v53  ;;  %v243_v57 = vld [vmem:[%s3495_s9 + $0x44] sm:$0x1] }
  0x26   : > { %v539_v0 = vsel %vm518_vm3, 0.0, %v462_v55  ;;  %v853_v1 = vshll.u32 %v3539_v58, 16  ;;  %v857_v5 = vshrl.u32 %v3539_v58, 16  ;;  %v3552_v6 = vpack.c.bf16 %v541_v62, %v541_v62  ;;  %739 = vst.msk [vmem:[#allocation2 + $0xc] sm:$0xf] %vm735_vm8, %v3539_v58 }
  0x27   : > { %v3554_v7 = vpack.c.bf16 %v539_v0, %v539_v0  ;;  %v863_v8 = vshll.u32 %v3542_v61, 16  ;;  %v877_v11 = vshll.u32 %v3546_v63, 16  ;;  %v881_v12 = vshrl.u32 %v3546_v63, 16  ;;  %741 = vst.msk [vmem:[#allocation2 + $0x14] sm:$0xf] %vm735_vm8, %v3546_v63 }
  0x28   : > { %v467_v13 = vmax.f32 %v413_v56, 0.0  ;;  %v3559_v14 = vrot.slane %v853_v1, 5  ;;  %v859_v16 = vrot.slane %v857_v5, 4  ;;  %v887_v17 = vshll.u32 %v3552_v6, 16 }
  0x29   : > { %v868_v18 = vshrl.u32 %v3554_v7, 16  ;;  %v865_v20 = vrot.slane %v863_v8, 5  ;;  %v879_v21 = vrot.slane %v877_v11, 5  ;;  %v883_v22 = vrot.slane %v881_v12, 4  ;;  %740 = vst.msk [vmem:[#allocation2 + $0x10] sm:$0xf] %vm735_vm8, %v3554_v7 }
  0x2a   : > { %v871_v23 = vshll.u32 %v3554_v7, 16  ;;  %v860_v25 = vor.u32 %v859_v16, %v3559_v14  ;;  %v889_v26 = vrot.slane %v887_v17, 5  ;;  %v544_v29 = vsel %vm523_vm4, 0.0, %v467_v13 }
  0x2b   : > { %v870_v28 = vrot.slane %v868_v18, 4  ;;  %v884_v30 = vor.u32 %v883_v22, %v879_v21  ;;  %v3569_v32 = vpack.c.bf16 %v466_v59, %v466_v59  ;;  %v3571_v34 = vpack.c.bf16 %v544_v29, %v544_v29 }
  0x2c   : > { %v873_v31 = vrot.slane %v871_v23, 5  ;;  %v861_v35 = vrot.slane %v860_v25, 4  ;;  %v465_v37 = vmax.f32 %v411_v60, 0.0  ;;  %v3100_v38 = vunpack.c.h.bf16 %v3126_v19 }
  0x2d   : > { %v294_v39 = vunpack.c.l.bf16 %v240_v24  ;;  %v885_v40 = vrot.slane %v884_v30, 4  ;;  %v901_v42 = vshll.u32 %v3569_v32, 16  ;;  %v905_v43 = vshrl.u32 %v3569_v32, 16  ;;  %743 = vst.msk [vmem:[#allocation2 + $0x1c] sm:$0xf] %vm735_vm8, %v3569_v32 }
  0x2e   : > { %v874_v41 = vor.u32 %v873_v31, %v870_v28  ;;  %v3577_v44 = vsel %vm3483_vm2, %v861_v35, %v865_v20  ;;  %v911_v45 = vshll.u32 %v3571_v34, 16  ;;  %v542_v46 = vsel %vm518_vm3, 0.0, %v465_v37 }
  0x2f   : > { %5299 = vst [vmem:[#allocation12_spill] sm:$0xff] %v3577_v44  ;;  %v354_v47 = vmul.f32 %v3100_v38, %v3490_v15  ;;  %1209 = vrot.lane.b32.xlu1 %v3577_v44, %s3378_s12  ;;  %v3588_v49 = vsel %vm3483_vm2, %v885_v40, %v889_v26  ;;  %v903_v51 = vrot.slane %v901_v42, 5  ;;  %v907_v52 = vrot.slane %v905_v43, 4 }
  0x30   : > { %5300 = vst [vmem:[#allocation13_spill] sm:$0xff] %v3588_v49  ;;  %v875_v50 = vrot.slane %v874_v41, 4  ;;  %v913_v53 = vrot.slane %v911_v45, 5  ;;  %v3590_v54 = vpack.c.bf16 %v542_v46, %v542_v46  ;;  %v355_v55 = vmul.f32 %v3490_v15, %v294_v39 }
  0x31   : > { %v415_v56 = vadd.f32 %v3507_v27, %v354_v47  ;;  %v908_v60 = vor.u32 %v907_v52, %v903_v51  ;;  %v3099_v62 = vunpack.c.l.bf16 %v3126_v19  ;;  %v296_v0 = vunpack.c.h.bf16 %v242_v48 }
  0x32   : > { %v3597_v59 = vsel %vm3483_vm2, %v875_v50, %v879_v21  ;;  %v892_v1 = vshrl.u32 %v3590_v54, 16  ;;  %v895_v5 = vshll.u32 %v3590_v54, 16  ;;  %v416_v8 = vadd.f32 %v3507_v27, %v355_v55  ;;  %742 = vst.msk [vmem:[#allocation2 + $0x18] sm:$0xf] %vm735_vm8, %v3590_v54 }
  0x33   : > { %5301 = vst [vmem:[#allocation14_spill] sm:$0xff] %v3597_v59  ;;  %1211 = vrot.lane.b32.xlu0 %v3597_v59, %s3378_s12  ;;  %v469_v11 = vmax.f32 %v415_v56, 0.0  ;;  %1213 = vrot.lane.b32.xlu1 %v3588_v49, %s3378_s12  ;;  %v909_v12 = vrot.slane %v908_v60, 4  ;;  %v353_v13 = vmul.f32 %v3099_v62, %v3490_v15  ;;  %v297_v16 = vunpack.c.l.bf16 %v243_v57 }
  0x34   : > { %v357_v17 = vmul.f32 %v3490_v15, %v296_v0  ;;  %v894_v18 = vrot.slane %v892_v1, 4  ;;  %v897_v19 = vrot.slane %v895_v5, 5  ;;  %v470_v20 = vmax.f32 %v416_v8, 0.0  ;;  %v246_v8 = vld [vmem:[%s3495_s9 + $0x50] sm:$0x1] }
  0x35   : > { %v3608_v21 = vpack.c.bf16 %v469_v11, %v469_v11  ;;  %v3612_v22 = vsel %vm3483_vm2, %v909_v12, %v913_v53  ;;  %v414_v23 = vadd.f32 %v3507_v27, %v353_v13  ;;  %v358_v24 = vmul.f32 %v3490_v15, %v297_v16 }
  0x36   : > { %5302 = vst [vmem:[#allocation15_spill] sm:$0xff] %v3612_v22  ;;  %v418_v25 = vadd.f32 %v3507_v27, %v357_v17  ;;  %v898_v26 = vor.u32 %v897_v19, %v894_v18  ;;  %v547_v28 = vsel %vm523_vm4, 0.0, %v470_v20  ;;  %v295_v42 = vunpack.c.l.bf16 %v242_v48  ;;  %v3127_v48 = vld [vmem:[%s3495_s9 + $0x48] sm:$0xff]   ;;  %v248_v17 = vld [vmem:[%s3495_s9 + $0x54] sm:$0xff]  }
  0x37   : > { %v925_v29 = vshll.u32 %v3608_v21, 16  ;;  %v929_v30 = vshrl.u32 %v3608_v21, 16  ;;  %1217 = vrot.lane.b32.xlu1 %v3612_v22, %s3378_s12  ;;  %v3623_v31 = vpack.c.bf16 %v547_v28, %v547_v28  ;;  %v468_v35 = vmax.f32 %v414_v23, 0.0  ;;  %745 = vst.msk [vmem:[#allocation2 + $0x24] sm:$0xf] %vm735_vm8, %v3608_v21 }
  0x38   : > { %v419_v37 = vadd.f32 %v3507_v27, %v358_v24  ;;  %v472_v38 = vmax.f32 %v418_v25, 0.0  ;;  %v899_v39 = vrot.slane %v898_v26, 4  ;;  %v356_v55 = vmul.f32 %v3490_v15, %v295_v42 }
  0x39   : > { %v927_v40 = vrot.slane %v925_v29, 5  ;;  %v931_v41 = vrot.slane %v929_v30, 4  ;;  %v935_v43 = vshll.u32 %v3623_v31, 16  ;;  %v545_v45 = vsel %vm518_vm3, 0.0, %v468_v35  ;;  %v249_v29 = vld [vmem:[%s3495_s9 + $0x5c] sm:$0x1] }
  0x3a   : > { %v473_v46 = vmax.f32 %v419_v37, 0.0  ;;  %v3629_v47 = vpack.c.bf16 %v472_v38, %v472_v38  ;;  %v3633_v50 = vsel %vm3483_vm2, %v899_v39, %v903_v51  ;;  %v3635_v53 = vpack.c.bf16 %v545_v45, %v545_v45 }
  0x3b   : > { %5303 = vst [vmem:[#allocation16_spill] sm:$0xff] %v3633_v50  ;;  %v932_v52 = vor.u32 %v931_v41, %v927_v40  ;;  %1215 = vrot.lane.b32.xlu0 %v3633_v50, %s3378_s12  ;;  %v937_v56 = vrot.slane %v935_v43, 5  ;;  %v417_v13 = vadd.f32 %v3507_v27, %v356_v55  ;;  %v3104_v16 = vunpack.c.h.bf16 %v3127_v48 }
  0x3c   : > { %v550_v57 = vsel %vm523_vm4, 0.0, %v473_v46  ;;  %v949_v60 = vshll.u32 %v3629_v47, 16  ;;  %v953_v62 = vshrl.u32 %v3629_v47, 16  ;;  %v916_v0 = vshrl.u32 %v3635_v53, 16  ;;  %744 = vst.msk [vmem:[#allocation2 + $0x20] sm:$0xf] %vm735_vm8, %v3635_v53 }
  0x3d   : > { %v933_v51 = vrot.slane %v932_v52, 4  ;;  %v919_v1 = vshll.u32 %v3635_v53, 16  ;;  %v3647_v5 = vpack.c.bf16 %v550_v57, %v550_v57  ;;  %v471_v25 = vmax.f32 %v417_v13, 0.0  ;;  %747 = vst.msk [vmem:[#allocation2 + $0x2c] sm:$0xf] %vm735_vm8, %v3629_v47 }
  0x3e   : > { %v3650_v11 = vrot.slane %v949_v60, 5  ;;  %v955_v12 = vrot.slane %v953_v62, 4  ;;  %v918_v19 = vrot.slane %v916_v0, 4  ;;  %v300_v26 = vunpack.c.l.bf16 %v246_v8 }
  0x3f   : > { %v3656_v18 = vsel %vm3483_vm2, %v933_v51, %v937_v56  ;;  %v921_v20 = vrot.slane %v919_v1, 5  ;;  %v959_v23 = vshll.u32 %v3647_v5, 16  ;;  %v360_v28 = vmul.f32 %v3104_v16, %v3490_v15 }
  0x40   : > { %5304 = vst [vmem:[#allocation17_spill] sm:$0xff] %v3656_v18  ;;  %1221 = vrot.lane.b32.xlu1 %v3656_v18, %s3378_s12  ;;  %v956_v24 = vor.u32 %v955_v12, %v3650_v11  ;;  %v3103_v37 = vunpack.c.l.bf16 %v3127_v48  ;;  %v302_v38 = vunpack.c.h.bf16 %v248_v17  ;;  %v548_v41 = vsel %vm518_vm3, 0.0, %v471_v25 }
  0x41   : > { %v922_v30 = vor.u32 %v921_v20, %v918_v19  ;;  %v961_v35 = vrot.slane %v959_v23, 5  ;;  %v361_v42 = vmul.f32 %v3490_v15, %v300_v26  ;;  %v421_v43 = vadd.f32 %v3507_v27, %v360_v28 }
  0x42   : > { %v957_v39 = vrot.slane %v956_v24, 4  ;;  %v3668_v46 = vpack.c.bf16 %v548_v41, %v548_v41  ;;  %v359_v52 = vmul.f32 %v3103_v37, %v3490_v15  ;;  %v303_v55 = vunpack.c.l.bf16 %v249_v29 }
  0x43   : > { %v923_v45 = vrot.slane %v922_v30, 4  ;;  %v422_v48 = vadd.f32 %v3507_v27, %v361_v42  ;;  %v475_v57 = vmax.f32 %v421_v43, 0.0  ;;  %v363_v60 = vmul.f32 %v3490_v15, %v302_v38 }
  0x44   : > { %v3673_v56 = vsel %vm3483_vm2, %v957_v39, %v961_v35  ;;  %v940_v51 = vshrl.u32 %v3668_v46, 16  ;;  %v943_v0 = vshll.u32 %v3668_v46, 16  ;;  %v420_v1 = vadd.f32 %v3507_v27, %v359_v52  ;;  %746 = vst.msk [vmem:[#allocation2 + $0x28] sm:$0xf] %vm735_vm8, %v3668_v46 }
  0x45   : > { %5305 = vst [vmem:[#allocation18_spill] sm:$0xff] %v3673_v56  ;;  %v3679_v62 = vsel %vm3483_vm2, %v923_v45, %v927_v40  ;;  %1225 = vrot.lane.b32.xlu1 %v3673_v56, %s3378_s12  ;;  %v476_v8 = vmax.f32 %v422_v48, 0.0  ;;  %v3688_v12 = vpack.c.bf16 %v475_v57, %v475_v57  ;;  %v364_v13 = vmul.f32 %v3490_v15, %v303_v55 }
  0x46   : > { %5306 = vst [vmem:[#allocation19_spill] sm:$0xff] %v3679_v62  ;;  %1219 = vrot.lane.b32.xlu0 %v3679_v62, %s3378_s12  ;;  %v424_v40 = vadd.f32 %v3507_v27, %v363_v60  ;;  %v942_v16 = vrot.slane %v940_v51, 4  ;;  %v945_v19 = vrot.slane %v943_v0, 5  ;;  %v474_v20 = vmax.f32 %v420_v1, 0.0  ;;  %v229_v51 = vld [vmem:[%s3495_s9 + $0xc] sm:$0xf] }
  0x47   : > { %v301_v23 = vunpack.c.l.bf16 %v248_v17  ;;  %v553_v24 = vsel %vm523_vm4, 0.0, %v476_v8  ;;  %v973_v25 = vshll.u32 %v3688_v12, 16  ;;  %v977_v26 = vshrl.u32 %v3688_v12, 16  ;;  %749 = vst.msk [vmem:[#allocation2 + $0x34] sm:$0xf] %vm735_vm8, %v3688_v12 }
  0x48   : > { %v425_v28 = vadd.f32 %v3507_v27, %v364_v13  ;;  %v946_v29 = vor.u32 %v945_v19, %v942_v16  ;;  %v3697_v30 = vpack.c.bf16 %v553_v24, %v553_v24  ;;  %v551_v35 = vsel %vm518_vm3, 0.0, %v474_v20 }
  0x49   : > { %v478_v37 = vmax.f32 %v424_v40, 0.0  ;;  %v975_v38 = vrot.slane %v973_v25, 5  ;;  %v979_v39 = vrot.slane %v977_v26, 4  ;;  %v3701_v17 = vpack.c.bf16 %v551_v35, %v551_v35  ;;  %v3128_v40 = vld [vmem:[%s3495_s9 + $0x60] sm:$0xff]  }
  0x4a   : > { %v479_v41 = vmax.f32 %v425_v28, 0.0  ;;  %v947_v42 = vrot.slane %v946_v29, 4  ;;  %v983_v43 = vshll.u32 %v3697_v30, 16  ;;  %v362_v52 = vmul.f32 %v3490_v15, %v301_v23  ;;  %v252_v28 = vld [vmem:[%s3495_s9 + $0x68] sm:$0x1] }
  0x4b   : > { %v3704_v45 = vpack.c.bf16 %v478_v37, %v478_v37  ;;  %v980_v55 = vor.u32 %v979_v39, %v975_v38  ;;  %v964_v48 = vshrl.u32 %v3701_v17, 16  ;;  %v967_v57 = vshll.u32 %v3701_v17, 16  ;;  %748 = vst.msk [vmem:[#allocation2 + $0x30] sm:$0xf] %vm735_vm8, %v3701_v17 }
  0x4c   : > { %v556_v60 = vsel %vm523_vm4, 0.0, %v479_v41  ;;  %v3715_v0 = vsel %vm3483_vm2, %v947_v42, %v3650_v11  ;;  %v985_v1 = vrot.slane %v983_v43, 5  ;;  %v423_v25 = vadd.f32 %v3507_v27, %v362_v52  ;;  %v253_v41 = vld [vmem:[%s3495_s9 + $0x6c] sm:$0xff]  }
  0x4d   : > { %5307 = vst [vmem:[#allocation20_spill] sm:$0xff] %v3715_v0  ;;  %v3717_v8 = vpack.c.bf16 %v556_v60, %v556_v60  ;;  %v997_v13 = vshll.u32 %v3704_v45, 16  ;;  %1223 = vrot.lane.b32.xlu0 %v3715_v0, %s3378_s12  ;;  %v981_v16 = vrot.slane %v980_v55, 4  ;;  %v966_v19 = vrot.slane %v964_v48, 4  ;;  %751 = vst.msk [vmem:[#allocation2 + $0x3c] sm:$0xf] %vm735_vm8, %v3704_v45 }
  0x4e   : > { %v969_v20 = vrot.slane %v967_v57, 5  ;;  %v1001_v23 = vshrl.u32 %v3704_v45, 16  ;;  %v283_v26 = vunpack.c.l.bf16 %v229_v51  ;;  %v3107_v39 = vunpack.c.l.bf16 %v3128_v40 }
  0x4f   : > { %v3724_v24 = vrot.slane %v997_v13, 5  ;;  %v1007_v11 = vshll.u32 %v3717_v8, 16  ;;  %v3731_v29 = vsel %vm3483_vm2, %v981_v16, %v985_v1  ;;  %v477_v43 = vmax.f32 %v423_v25, 0.0 }
  0x50   : > { %5308 = vst [vmem:[#allocation21_spill] sm:$0xff] %v3731_v29  ;;  %v970_v35 = vor.u32 %v969_v20, %v966_v19  ;;  %v1003_v37 = vrot.slane %v1001_v23, 4  ;;  %1229 = vrot.lane.b32.xlu1 %v3731_v29, %s3378_s12  ;;  %v344_v55 = vmul.f32 %v3490_v15, %v283_v26  ;;  %v3108_v48 = vunpack.c.h.bf16 %v3128_v40 }
  0x51   : > { %v1009_v42 = vrot.slane %v1007_v11, 5  ;;  %v365_v60 = vmul.f32 %v3107_v39, %v3490_v15  ;;  %v306_v51 = vunpack.c.l.bf16 %v252_v28  ;;  %v554_v1 = vsel %vm518_vm3, 0.0, %v477_v43 }
  0x52   : > { %v971_v57 = vrot.slane %v970_v35, 4  ;;  %v1004_v52 = vor.u32 %v1003_v37, %v3724_v24  ;;  %v405_v13 = vadd.f32 %v3507_v27, %v344_v55  ;;  %v366_v16 = vmul.f32 %v3108_v48, %v3490_v15 }
  0x53   : > { %v307_v19 = vunpack.c.l.bf16 %v253_v41  ;;  %v3747_v40 = vpack.c.bf16 %v554_v1, %v554_v1  ;;  %v426_v11 = vadd.f32 %v3507_v27, %v365_v60  ;;  %v367_v28 = vmul.f32 %v3490_v15, %v306_v51 }
  0x54   : > { %v3745_v20 = vsel %vm3483_vm2, %v971_v57, %v975_v38  ;;  %v1005_v23 = vrot.slane %v1004_v52, 4  ;;  %v459_v25 = vmax.f32 %v405_v13, 0.0  ;;  %v427_v26 = vadd.f32 %v3507_v27, %v366_v16 }
  0x55   : > { %5309 = vst [vmem:[#allocation22_spill] sm:$0xff] %v3745_v20  ;;  %1227 = vrot.lane.b32.xlu0 %v3745_v20, %s3378_s12  ;;  %v308_v35 = vunpack.c.h.bf16 %v253_v41  ;;  %v988_v38 = vshrl.u32 %v3747_v40, 16  ;;  %v991_v39 = vshll.u32 %v3747_v40, 16  ;;  %v480_v43 = vmax.f32 %v426_v11, 0.0  ;;  %750 = vst.msk [vmem:[#allocation2 + $0x38] sm:$0xf] %vm735_vm8, %v3747_v40 }
  0x56   : > { %v3756_v37 = vsel %vm3483_vm2, %v1005_v23, %v1009_v42  ;;  %v536_v55 = vsel %vm518_vm3, 0.0, %v459_v25  ;;  %v481_v48 = vmax.f32 %v427_v26, 0.0  ;;  %v428_v57 = vadd.f32 %v3507_v27, %v367_v28 }
  0x57   : > { %5310 = vst [vmem:[#allocation23_spill] sm:$0xff] %v3756_v37  ;;  %1233 = vrot.lane.b32.xlu1 %v3756_v37, %s3378_s12  ;;  %v368_v41 = vmul.f32 %v3490_v15, %v307_v19  ;;  %v990_v52 = vrot.slane %v988_v38, 4  ;;  %v993_v60 = vrot.slane %v991_v39, 5  ;;  %v3766_v42 = vpack.c.bf16 %v536_v55, %v536_v55 }
  0x58   : > { %v557_v51 = vsel %vm518_vm3, 0.0, %v480_v43  ;;  %v3772_v13 = vpack.c.bf16 %v481_v48, %v481_v48  ;;  %v482_v16 = vmax.f32 %v428_v57, 0.0  ;;  %v369_v23 = vmul.f32 %v3490_v15, %v308_v35 }
  0x59   : > { %v3770_v1 = vpack.c.bf16 %v557_v51, %v557_v51  ;;  %v994_v11 = vor.u32 %v993_v60, %v990_v52  ;;  %v844_v25 = vshrl.u32 %v3766_v42, 16  ;;  %v847_v19 = vshll.u32 %v3766_v42, 16  ;;  %v255_v52 = vld [vmem:[%s3495_s9 + $0x74] sm:$0x1]  ;;  %738 = vst.msk [vmem:[#allocation2 + $0x8] sm:$0xf] %vm735_vm8, %v3766_v42 }
  0x5a   : > { %5312 = vst [vmem:[#allocation25_spill] sm:$0xff] %v3772_v13  ;;  %v429_v26 = vadd.f32 %v3507_v27, %v368_v41  ;;  %v1021_v39 = vshll.u32 %v3772_v13, 16  ;;  %v559_v43 = vsel %vm523_vm4, 0.0, %v482_v16  ;;  %v1025_v41 = vshrl.u32 %v3772_v13, 16  ;;  %753 = vst.msk [vmem:[#allocation2 + $0x44] sm:$0xf] %vm735_vm8, %v3772_v13 }
  0x5b   : > { %5311 = vst [vmem:[#allocation24_spill] sm:$0xff] %v3770_v1  ;;  %v1012_v28 = vshrl.u32 %v3770_v1, 16  ;;  %v1015_v38 = vshll.u32 %v3770_v1, 16  ;;  %v995_v55 = vrot.slane %v994_v11, 4  ;;  %v846_v48 = vrot.slane %v844_v25, 4 }
  0x5c   : > { %v849_v35 = vrot.slane %v847_v19, 5  ;;  %v3783_v57 = vpack.c.bf16 %v559_v43, %v559_v43  ;;  %v1023_v36 = vrot.slane %v1021_v39, 5  ;;  %v430_v11 = vadd.f32 %v3507_v27, %v369_v23  ;;  %752 = vst.msk [vmem:[#allocation2 + $0x40] sm:$0xf] %vm735_vm8, %v3770_v1 }
  0x5d   : > { %v1014_v60 = vrot.slane %v1012_v28, 4  ;;  %v1017_v51 = vrot.slane %v1015_v38, 5  ;;  %v3791_v37 = vsel %vm3483_vm2, %v995_v55, %v3724_v24  ;;  %v1027_v19 = vrot.slane %v1025_v41, 4 }
  0x5e   : > { %5313 = vst [vmem:[#allocation26_spill] sm:$0xff] %v3783_v57  ;;  %5314 = vst [vmem:[#allocation27_spill] sm:$0xff] %v3791_v37  ;;  %v850_v29 = vor.u32 %v849_v35, %v846_v48  ;;  %v1031_v16 = vshll.u32 %v3783_v57, 16  ;;  %1231 = vrot.lane.b32.xlu0 %v3791_v37, %s3378_s12  ;;  %v483_v28 = vmax.f32 %v429_v26, 0.0  ;;  %v309_v38 = vunpack.c.l.bf16 %v255_v52 }
  0x5f   : > { %v1018_v25 = vor.u32 %v1017_v51, %v1014_v60  ;;  %v484_v20 = vmax.f32 %v430_v11, 0.0  ;;  %v3111_v56 = vunpack.c.l.bf16 %v3129_v33  ;;  %v1028_v18 = vor.u32 %v1027_v19, %v1023_v36  ;;  %v259_v11 = vld [vmem:[%s3495_s9 + $0x84] sm:$0xff]  }
  0x60   : > { %v851_v39 = vrot.slane %v850_v29, 4  ;;  %v1033_v43 = vrot.slane %v1031_v16, 5  ;;  %v560_v24 = vsel %vm518_vm3, 0.0, %v483_v28  ;;  %v370_v55 = vmul.f32 %v3490_v15, %v309_v38  ;;  %v258_v16 = vld [vmem:[%s3495_s9 + $0x80] sm:$0x1] }
  0x61   : > { %v1019_v0 = vrot.slane %v1018_v25, 4  ;;  %v3805_v48 = vpack.c.bf16 %v560_v24, %v560_v24  ;;  %v3807_v26 = vpack.c.bf16 %v484_v20, %v484_v20  ;;  %v3112_v29 = vunpack.c.h.bf16 %v3129_v33 }
  0x62   : > { %v3803_v23 = vsel %vm3483_vm2, %v851_v39, %v3559_v14  ;;  %v1029_v52 = vrot.slane %v1028_v18, 4  ;;  %v431_v60 = vadd.f32 %v3507_v27, %v370_v55  ;;  %v371_v51 = vmul.f32 %v3111_v56, %v3490_v15 }
  0x63   : > { %5315 = vst [vmem:[#allocation28_spill] sm:$0xff] %v3803_v23  ;;  %5316 = vst [vmem:[#allocation29_spill] sm:$0xff] %v3805_v48  ;;  %1207 = vrot.lane.b32.xlu1 %v3803_v23, %s3378_s12  ;;  %v3813_v35 = vsel %vm3483_vm2, %v1019_v0, %v1023_v36  ;;  %v1036_v14 = vshrl.u32 %v3805_v48, 16  ;;  %v1039_v33 = vshll.u32 %v3805_v48, 16  ;;  %v1045_v20 = vshll.u32 %v3807_v26, 16 }
  0x64   : > { %5317 = vst [vmem:[#allocation30_spill] sm:$0xff] %v3807_v26  ;;  %5318 = vst [vmem:[#allocation31_spill] sm:$0xff] %v3813_v35  ;;  %1235 = vrot.lane.b32.xlu0 %v3813_v35, %s3378_s12  ;;  %v1049_v41 = vshrl.u32 %v3807_v26, 16  ;;  %v3826_v36 = vsel %vm3483_vm2, %v1029_v52, %v1033_v43  ;;  %v485_v18 = vmax.f32 %v431_v60, 0.0  ;;  %v372_v0 = vmul.f32 %v3112_v29, %v3490_v15 }
  0x65   : > { %5319 = vst [vmem:[#allocation32_spill] sm:$0xff] %v3826_v36  ;;  %v432_v56 = vadd.f32 %v3507_v27, %v371_v51  ;;  %v1038_v25 = vrot.slane %v1036_v14, 4  ;;  %v1041_v19 = vrot.slane %v1039_v33, 5  ;;  %v1047_v28 = vrot.slane %v1045_v20, 5  ;;  %754 = vst.msk [vmem:[#allocation2 + $0x48] sm:$0xf] %vm735_vm8, %v3805_v48 }
  0x66   : > { %v1051_v38 = vrot.slane %v1049_v41, 4  ;;  %v562_v39 = vsel %vm523_vm4, 0.0, %v485_v18  ;;  %v433_v24 = vadd.f32 %v3507_v27, %v372_v0  ;;  %v312_v55 = vunpack.c.l.bf16 %v258_v16  ;;  %755 = vst.msk [vmem:[#allocation2 + $0x4c] sm:$0xf] %vm735_vm8, %v3807_v26 }
  0x67   : > { %1237 = vrot.lane.b32.xlu1 %v3826_v36, %s3378_s12  ;;  %v486_v43 = vmax.f32 %v432_v56, 0.0  ;;  %v1042_v52 = vor.u32 %v1041_v19, %v1038_v25  ;;  %v3836_v60 = vpack.c.bf16 %v562_v39, %v562_v39  ;;  %v313_v51 = vunpack.c.l.bf16 %v259_v11 }
  0x68   : > { %v1052_v29 = vor.u32 %v1051_v38, %v1047_v28  ;;  %v487_v35 = vmax.f32 %v433_v24, 0.0  ;;  %v373_v33 = vmul.f32 %v3490_v15, %v312_v55  ;;  %v314_v20 = vunpack.c.h.bf16 %v259_v11 }
  0x69   : > { %5320 = vst [vmem:[#allocation33_spill] sm:$0xff] %v3836_v60  ;;  %v563_v14 = vsel %vm518_vm3, 0.0, %v486_v43  ;;  %v1043_v41 = vrot.slane %v1042_v52, 4  ;;  %v1055_v18 = vshll.u32 %v3836_v60, 16  ;;  %v374_v25 = vmul.f32 %v3490_v15, %v313_v51 }
  0x6a   : > { %v1053_v36 = vrot.slane %v1052_v29, 4  ;;  %v3842_v0 = vpack.c.bf16 %v563_v14, %v563_v14  ;;  %v3844_v16 = vpack.c.bf16 %v487_v35, %v487_v35  ;;  %v434_v56 = vadd.f32 %v3507_v27, %v373_v33  ;;  %v261_v29 = vld [vmem:[%s3495_s9 + $0x8c] sm:$0x1] }
  0x6b   : > { %v375_v19 = vmul.f32 %v3490_v15, %v314_v20  ;;  %v3851_v38 = vsel %vm3483_vm2, %v1043_v41, %v1047_v28  ;;  %v1057_v11 = vrot.slane %v1055_v18, 5  ;;  %v435_v52 = vadd.f32 %v3507_v27, %v374_v25  ;;  %v3130_v20 = vld [vmem:[%s3495_s9 + $0x90] sm:$0xff]  }
  0x6c   : > { %5321 = vst [vmem:[#allocation34_spill] sm:$0xff] %v3851_v38  ;;  %v1060_v39 = vshrl.u32 %v3842_v0, 16  ;;  %v1063_v24 = vshll.u32 %v3842_v0, 16  ;;  %1239 = vrot.lane.b32.xlu0 %v3851_v38, %s3378_s12  ;;  %v1069_v35 = vshll.u32 %v3844_v16, 16  ;;  %v488_v43 = vmax.f32 %v434_v56, 0.0 }
  0x6d   : > { %v1073_v55 = vshrl.u32 %v3844_v16, 16  ;;  %v3863_v28 = vsel %vm3483_vm2, %v1053_v36, %v1057_v11  ;;  %v436_v33 = vadd.f32 %v3507_v27, %v375_v19  ;;  %v489_v37 = vmax.f32 %v435_v52, 0.0  ;;  %756 = vst.msk [vmem:[#allocation2 + $0x50] sm:$0xf] %vm735_vm8, %v3842_v0  ;;  %757 = vst.msk [vmem:[#allocation2 + $0x54] sm:$0xf] %vm735_vm8, %v3844_v16 }
  0x6e   : > { %5322 = vst [vmem:[#allocation35_spill] sm:$0xff] %v3863_v28  ;;  %v1062_v51 = vrot.slane %v1060_v39, 4  ;;  %v1065_v14 = vrot.slane %v1063_v24, 5  ;;  %1241 = vrot.lane.b32.xlu1 %v3863_v28, %s3378_s12  ;;  %v1071_v41 = vrot.slane %v1069_v35, 5  ;;  %v565_v18 = vsel %vm523_vm4, 0.0, %v488_v43 }
  0x6f   : > { %v1075_v56 = vrot.slane %v1073_v55, 4  ;;  %v3871_v38 = vpack.c.bf16 %v565_v18, %v565_v18  ;;  %v490_v62 = vmax.f32 %v436_v33, 0.0  ;;  %v315_v36 = vunpack.c.l.bf16 %v261_v29 }
  0x70   : > { %v1066_v25 = vor.u32 %v1065_v14, %v1062_v51  ;;  %v566_v39 = vsel %vm518_vm3, 0.0, %v489_v37  ;;  %v3115_v19 = vunpack.c.l.bf16 %v3130_v20  ;;  %v3116_v24 = vunpack.c.h.bf16 %v3130_v20 }
  0x71   : > { %5323 = vst [vmem:[#allocation36_spill] sm:$0xff] %v3871_v38  ;;  %v1076_v11 = vor.u32 %v1075_v56, %v1071_v41  ;;  %v1079_v28 = vshll.u32 %v3871_v38, 16  ;;  %v3876_v35 = vpack.c.bf16 %v566_v39, %v566_v39  ;;  %v3878_v43 = vpack.c.bf16 %v490_v62, %v490_v62 }
  0x72   : > { %v1067_v22 = vrot.slane %v1066_v25, 4  ;;  %v376_v52 = vmul.f32 %v3490_v15, %v315_v36  ;;  %v377_v29 = vmul.f32 %v3115_v19, %v3490_v15  ;;  %v378_v51 = vmul.f32 %v3116_v24, %v3490_v15  ;;  %v264_v36 = vld [vmem:[%s3495_s9 + $0x98] sm:$0x1] }
  0x73   : > { %v1077_v55 = vrot.slane %v1076_v11, 4  ;;  %v1081_v14 = vrot.slane %v1079_v28, 5  ;;  %v1084_v33 = vshrl.u32 %v3876_v35, 16  ;;  %v1087_v20 = vshll.u32 %v3876_v35, 16  ;;  %v265_v11 = vld [vmem:[%s3495_s9 + $0x9c] sm:$0xff]  }
  0x74   : > { %v3885_v37 = vsel %vm3483_vm2, %v1067_v22, %v1071_v41  ;;  %v1093_v62 = vshll.u32 %v3878_v43, 16  ;;  %v437_v18 = vadd.f32 %v3507_v27, %v376_v52  ;;  %v1097_v56 = vshrl.u32 %v3878_v43, 16  ;;  %758 = vst.msk [vmem:[#allocation2 + $0x58] sm:$0xf] %vm735_vm8, %v3876_v35  ;;  %759 = vst.msk [vmem:[#allocation2 + $0x5c] sm:$0xf] %vm735_vm8, %v3878_v43 }
  0x75   : > { %5324 = vst [vmem:[#allocation37_spill] sm:$0xff] %v3885_v37  ;;  %1243 = vrot.lane.b32.xlu0 %v3885_v37, %s3378_s12  ;;  %v438_v25 = vadd.f32 %v3507_v27, %v377_v29  ;;  %v3899_v22 = vsel %vm3483_vm2, %v1077_v55, %v1081_v14  ;;  %v1086_v28 = vrot.slane %v1084_v33, 4  ;;  %v1089_v41 = vrot.slane %v1087_v20, 5 }
  0x76   : > { %5325 = vst [vmem:[#allocation38_spill] sm:$0xff] %v3899_v22  ;;  %v439_v39 = vadd.f32 %v3507_v27, %v378_v51  ;;  %1245 = vrot.lane.b32.xlu1 %v3899_v22, %s3378_s12  ;;  %v1095_v19 = vrot.slane %v1093_v62, 5  ;;  %v491_v24 = vmax.f32 %v437_v18, 0.0  ;;  %v1099_v52 = vrot.slane %v1097_v56, 4 }
  0x77   : > { %v492_v37 = vmax.f32 %v438_v25, 0.0  ;;  %v1090_v50 = vor.u32 %v1089_v41, %v1086_v28  ;;  %v318_v29 = vunpack.c.l.bf16 %v264_v36  ;;  %v319_v59 = vunpack.c.l.bf16 %v265_v11 }
  0x78   : > { %v493_v49 = vmax.f32 %v439_v39, 0.0  ;;  %v568_v44 = vsel %vm523_vm4, 0.0, %v491_v24  ;;  %v1100_v55 = vor.u32 %v1099_v52, %v1095_v19  ;;  %v320_v33 = vunpack.c.h.bf16 %v265_v11  ;;  %v267_v24 = vld [vmem:[%s3495_s9 + $0xa4] sm:$0x1] }
  0x79   : > { %v569_v14 = vsel %vm518_vm3, 0.0, %v492_v37  ;;  %v1091_v51 = vrot.slane %v1090_v50, 4  ;;  %v3908_v20 = vpack.c.bf16 %v568_v44, %v568_v44  ;;  %v379_v25 = vmul.f32 %v3490_v15, %v318_v29 }
  0x7a   : > { %v3910_v62 = vpack.c.bf16 %v569_v14, %v569_v14  ;;  %v3912_v18 = vpack.c.bf16 %v493_v49, %v493_v49  ;;  %v1101_v56 = vrot.slane %v1100_v55, 4  ;;  %v380_v36 = vmul.f32 %v3490_v15, %v319_v59  ;;  %v3131_v14 = vld [vmem:[%s3495_s9 + $0xa8] sm:$0xff]  }
  0x7b   : > { %5326 = vst [vmem:[#allocation39_spill] sm:$0xff] %v3908_v20  ;;  %v381_v28 = vmul.f32 %v3490_v15, %v320_v33  ;;  %v3919_v37 = vsel %vm3483_vm2, %v1091_v51, %v1095_v19  ;;  %v1103_v44 = vshll.u32 %v3908_v20, 16  ;;  %v440_v59 = vadd.f32 %v3507_v27, %v379_v25 }
  0x7c   : > { %5327 = vst [vmem:[#allocation40_spill] sm:$0xff] %v3919_v37  ;;  %v1108_v50 = vshrl.u32 %v3910_v62, 16  ;;  %v1111_v11 = vshll.u32 %v3910_v62, 16  ;;  %1247 = vrot.lane.b32.xlu0 %v3919_v37, %s3378_s12  ;;  %v1117_v49 = vshll.u32 %v3912_v18, 16  ;;  %v1121_v41 = vshrl.u32 %v3912_v18, 16 }
  0x7d   : > { %v441_v39 = vadd.f32 %v3507_v27, %v380_v36  ;;  %v1105_v19 = vrot.slane %v1103_v44, 5  ;;  %v442_v55 = vadd.f32 %v3507_v27, %v381_v28  ;;  %v494_v51 = vmax.f32 %v440_v59, 0.0  ;;  %760 = vst.msk [vmem:[#allocation2 + $0x60] sm:$0xf] %vm735_vm8, %v3910_v62  ;;  %761 = vst.msk [vmem:[#allocation2 + $0x64] sm:$0xf] %vm735_vm8, %v3912_v18 }
  0x7e   : > { %v1110_v52 = vrot.slane %v1108_v50, 4  ;;  %v1113_v29 = vrot.slane %v1111_v11, 5  ;;  %v1119_v33 = vrot.slane %v1117_v49, 5  ;;  %v1123_v22 = vrot.slane %v1121_v41, 4 }
  0x7f   : > { %v495_v23 = vmax.f32 %v441_v39, 0.0  ;;  %v3935_v37 = vsel %vm3483_vm2, %v1101_v56, %v1105_v19  ;;  %v496_v20 = vmax.f32 %v442_v55, 0.0  ;;  %v321_v38 = vunpack.c.l.bf16 %v267_v24 }
  0x80   : > { %5328 = vst [vmem:[#allocation41_spill] sm:$0xff] %v3935_v37  ;;  %v1114_v25 = vor.u32 %v1113_v29, %v1110_v52  ;;  %1249 = vrot.lane.b32.xlu1 %v3935_v37, %s3378_s12  ;;  %v571_v36 = vsel %vm523_vm4, 0.0, %v494_v51  ;;  %v1124_v44 = vor.u32 %v1123_v22, %v1119_v33  ;;  %v3119_v50 = vunpack.c.l.bf16 %v3131_v14  ;;  %v270_v51 = vld [vmem:[%s3495_s9 + $0xb0] sm:$0x1] }
  0x81   : > { %v572_v28 = vsel %vm518_vm3, 0.0, %v495_v23  ;;  %v3943_v49 = vpack.c.bf16 %v571_v36, %v571_v36  ;;  %v3947_v59 = vpack.c.bf16 %v496_v20, %v496_v20  ;;  %v382_v39 = vmul.f32 %v3490_v15, %v321_v38 }
  0x82   : > { %v1115_v11 = vrot.slane %v1114_v25, 4  ;;  %v3945_v56 = vpack.c.bf16 %v572_v28, %v572_v28  ;;  %v1125_v41 = vrot.slane %v1124_v44, 4  ;;  %v3120_v24 = vunpack.c.h.bf16 %v3131_v14  ;;  %v271_v28 = vld [vmem:[%s3495_s9 + $0xb4] sm:$0xff]  }
  0x83   : > { %5329 = vst [vmem:[#allocation42_spill] sm:$0xff] %v3943_v49  ;;  %v383_v19 = vmul.f32 %v3119_v50, %v3490_v15  ;;  %v1127_v23 = vshll.u32 %v3943_v49, 16  ;;  %v1141_v20 = vshll.u32 %v3947_v59, 16  ;;  %v443_v38 = vadd.f32 %v3507_v27, %v382_v39  ;;  %763 = vst.msk [vmem:[#allocation2 + $0x6c] sm:$0xf] %vm735_vm8, %v3947_v59 }
  0x84   : > { %v3953_v22 = vsel %vm3483_vm2, %v1115_v11, %v1119_v33  ;;  %v1132_v52 = vshrl.u32 %v3945_v56, 16  ;;  %v1135_v29 = vshll.u32 %v3945_v56, 16  ;;  %v1145_v55 = vshrl.u32 %v3947_v59, 16  ;;  %762 = vst.msk [vmem:[#allocation2 + $0x68] sm:$0xf] %vm735_vm8, %v3945_v56 }
  0x85   : > { %5330 = vst [vmem:[#allocation43_spill] sm:$0xff] %v3953_v22  ;;  %1251 = vrot.lane.b32.xlu0 %v3953_v22, %s3378_s12  ;;  %v384_v14 = vmul.f32 %v3120_v24, %v3490_v15  ;;  %v1129_v33 = vrot.slane %v1127_v23, 5  ;;  %v444_v44 = vadd.f32 %v3507_v27, %v383_v19  ;;  %v1143_v50 = vrot.slane %v1141_v20, 5 }
  0x86   : > { %v1134_v25 = vrot.slane %v1132_v52, 4  ;;  %v1137_v36 = vrot.slane %v1135_v29, 5  ;;  %v497_v11 = vmax.f32 %v443_v38, 0.0  ;;  %v1147_v37 = vrot.slane %v1145_v55, 4 }
  0x87   : > { %v445_v22 = vadd.f32 %v3507_v27, %v384_v14  ;;  %v3970_v49 = vsel %vm3483_vm2, %v1125_v41, %v1129_v33  ;;  %v498_v60 = vmax.f32 %v444_v44, 0.0  ;;  %v324_v57 = vunpack.c.l.bf16 %v270_v51 }
  0x88   : > { %5331 = vst [vmem:[#allocation44_spill] sm:$0xff] %v3970_v49  ;;  %v1138_v39 = vor.u32 %v1137_v36, %v1134_v25  ;;  %1253 = vrot.lane.b32.xlu1 %v3970_v49, %s3378_s12  ;;  %v574_v24 = vsel %vm523_vm4, 0.0, %v497_v11  ;;  %v1148_v19 = vor.u32 %v1147_v37, %v1143_v50  ;;  %v325_v52 = vunpack.c.l.bf16 %v271_v28 }
  0x89   : > { %v499_v23 = vmax.f32 %v445_v22, 0.0  ;;  %v3976_v20 = vpack.c.bf16 %v574_v24, %v574_v24  ;;  %v575_v38 = vsel %vm518_vm3, 0.0, %v498_v60  ;;  %v385_v41 = vmul.f32 %v3490_v15, %v324_v57  ;;  %v3994_v60 = vld [vmem:[%s5190_s2] ss:$0 sm:$0xff] }
  0x8a   : > { %v1139_v29 = vrot.slane %v1138_v39, 4  ;;  %v1149_v55 = vrot.slane %v1148_v19, 4  ;;  %v3981_v14 = vpack.c.bf16 %v575_v38, %v575_v38  ;;  %v326_v33 = vunpack.c.h.bf16 %v271_v28  ;;  %v273_v19 = vld [vmem:[%s3495_s9 + $0xbc] sm:$0x1] }
  0x8b   : > { %v3983_v51 = vpack.c.bf16 %v499_v23, %v499_v23  ;;  %v1151_v22 = vshll.u32 %v3976_v20, 16  ;;  %v446_v25 = vadd.f32 %v3507_v27, %v385_v41  ;;  %v386_v15 = vmul.f32 %v3994_v60, %v325_v52 }
  0x8c   : > { %v3987_v37 = vsel %vm3483_vm2, %v1139_v29, %v1143_v50  ;;  %v1156_v57 = vshrl.u32 %v3981_v14, 16  ;;  %v1159_v36 = vshll.u32 %v3981_v14, 16  ;;  %v387_v39 = vmul.f32 %v3994_v60, %v326_v33  ;;  %764 = vst.msk [vmem:[#allocation2 + $0x70] sm:$0xf] %vm735_vm8, %v3981_v14 }
  0x8d   : > { %5332 = vst [vmem:[#allocation45_spill] sm:$0xff] %v3987_v37  ;;  %1255 = vrot.lane.b32.xlu0 %v3987_v37, %s3378_s12  ;;  %v1165_v44 = vshll.u32 %v3983_v51, 16  ;;  %v1169_v28 = vshrl.u32 %v3983_v51, 16  ;;  %v1153_v50 = vrot.slane %v1151_v22, 5  ;;  %v500_v11 = vmax.f32 %v446_v25, 0.0 }
  0x8e   : > { %v447_v24 = vadd.f32 %v3507_v27, %v386_v15  ;;  %v1158_v23 = vrot.slane %v1156_v57, 4  ;;  %v1161_v52 = vrot.slane %v1159_v36, 5  ;;  %v4015_v22 = vld [vmem:[%s5191_s3] ss:$0 sm:$0xff]  ;;  %v1351_v10 = vrot.slane %v3546_v63, 5 }
  0x8f   : > { %v1167_v29 = vrot.slane %v1165_v44, 5  ;;  %v1171_v38 = vrot.slane %v1169_v28, 4  ;;  %v4008_v41 = vsel %vm3483_vm2, %v1149_v55, %v1153_v50  ;;  %v577_v37 = vsel %vm523_vm4, 0.0, %v500_v11  ;;  %765 = vst.msk [vmem:[#allocation2 + $0x74] sm:$0xf] %vm735_vm8, %v3983_v51 }
  0x90   : > { %5333 = vst [vmem:[#allocation46_spill] sm:$0xff] %v4008_v41  ;;  %v448_v33 = vadd.f32 %v4015_v22, %v387_v39  ;;  %v501_v27 = vmax.f32 %v447_v24, 0.0  ;;  %1257 = vrot.lane.b32.xlu1 %v4008_v41, %s3378_s12  ;;  %v1162_v25 = vor.u32 %v1161_v52, %v1158_v23  ;;  %v4020_v15 = vpack.c.bf16 %v577_v37, %v577_v37 }
  0x91   : > { %v1172_v57 = vor.u32 %v1171_v38, %v1167_v29  ;;  %v327_v55 = vunpack.c.l.bf16 %v273_v19  ;;  %v1358_v9 = vrot.slane %v3569_v32, 5  ;;  %vm2625_vm12 = vcmask 1043456  }
  0x92   : > { %v502_v36 = vmax.f32 %v448_v33, 0.0  ;;  %v578_v44 = vsel %vm518_vm3, 0.0, %v501_v27  ;;  %v1163_v28 = vrot.slane %v1162_v25, 4  ;;  %v1175_v11 = vshll.u32 %v4020_v15, 16 }
  0x93   : > { %v1173_v50 = vrot.slane %v1172_v57, 4  ;;  %v4025_v49 = vpack.c.bf16 %v578_v44, %v578_v44  ;;  %v388_v24 = vmul.f32 %v3994_v60, %v327_v55  ;;  %vm1833_vm13 = vcmask 322816  }
  0x94   : > { %v4027_v39 = vpack.c.bf16 %v502_v36, %v502_v36  ;;  %v4032_v37 = vsel %vm3483_vm2, %v1163_v28, %v1167_v29  ;;  %v1177_v23 = vrot.slane %v1175_v11, 5  ;;  %vm1969_vm14 = vcmask 388416  }
  0x95   : > { %5334 = vst [vmem:[#allocation47_spill] sm:$0xff] %v4032_v37  ;;  %v1180_v19 = vshrl.u32 %v4025_v49, 16  ;;  %v1183_v52 = vshll.u32 %v4025_v49, 16  ;;  %1259 = vrot.lane.b32.xlu0 %v4032_v37, %s3378_s12  ;;  %v449_v33 = vadd.f32 %v4015_v22, %v388_v24  ;;  %v1337_v37 = vrot.slane %v3470_v3, 5  ;;  %766 = vst.msk [vmem:[#allocation2 + $0x78] sm:$0xf] %vm735_vm8, %v4025_v49 }
  0x96   : > { %v1189_v38 = vshll.u32 %v4027_v39, 16  ;;  %v1193_v27 = vshrl.u32 %v4027_v39, 16  ;;  %v4043_v25 = vsel %vm3483_vm2, %v1173_v50, %v1177_v23  ;;  %v2978_v23 = vrot.slane %v3468_v2, 9  ;;  %767 = vst.msk [vmem:[#allocation2 + $0x7c] sm:$0xf] %vm735_vm8, %v4027_v39 }
  0x97   : > { %5335 = vst [vmem:[#allocation48_spill] sm:$0xff] %v4043_v25  ;;  %v1182_v29 = vrot.slane %v1180_v19, 4  ;;  %v1185_v57 = vrot.slane %v1183_v52, 5  ;;  %1261 = vrot.lane.b32.xlu1 %v4043_v25, %s3378_s12  ;;  %v503_v36 = vmax.f32 %v449_v33, 0.0  ;;  %v4057_v52 = vpop.permute.xlu0 %1203  ;;  %vm2103_vm15 = vcmask 454016   ;;  %v5400_v19 = vld [vmem:[#allocation25_spill] sm:$0xff] }
  0x98   : > { %v1191_v55 = vrot.slane %v1189_v38, 5  ;;  %v1195_v44 = vrot.slane %v1193_v27, 4  ;;  %1300 = vst.msk [vmem:[#allocation2] sm:$0xf] %vm1299_vm9, %v4057_v52  ;;  %vm2259_vm0 = vcmask 519616   ;;  %vm2395_vm1 = vcmask 585216  }
  0x99   : > { %v1186_v28 = vor.u32 %v1185_v57, %v1182_v29  ;;  %v580_v11 = vsel %vm523_vm4, 0.0, %v503_v36  ;;  %v1339_v29 = vrot.slane %v1337_v37, 4  ;;  %v1340_v57 = vrot.slane %v3468_v2, 5 }
  0x9a   : > { %v1196_v24 = vor.u32 %v1195_v44, %v1191_v55  ;;  %v4050_v50 = vpack.c.bf16 %v580_v11, %v580_v11  ;;  %v4069_v44 = vsel %vm4053_vm7, %v2978_v23, %v1337_v37  ;;  %v1344_v11 = vrot.slane %v3539_v58, 5 }
  0x9b   : > { %v1187_v41 = vrot.slane %v1186_v28, 4  ;;  %5339 = vst [vmem:[#allocation50_spill] sm:$0xff] %v4069_v44  ;;  %v2979_v28 = vrot.slane %v3766_v42, 9  ;;  %v1347_v37 = vrot.slane %v3542_v61, 5  ;;  %v4088_v23 = vpop.permute.xlu0 %1205  ;;  %v1354_v61 = vrot.slane %v3552_v6, 5 }
  0x9c   : > { %v1197_v33 = vrot.slane %v1196_v24, 4  ;;  %v1199_v27 = vshll.u32 %v4050_v50, 16  ;;  %v1361_v6 = vrot.slane %v3571_v34, 5  ;;  %v1372_v34 = vrot.slane %v3629_v47, 5  ;;  %1301 = vst.msk [vmem:[#allocation2 + $0x4] sm:$0xf] %vm1299_vm9, %v4088_v23 }
  0x9d   : > { %v4061_v38 = vsel %vm3483_vm2, %v1187_v41, %v1191_v55  ;;  %v4083_v55 = vsel %vm4053_vm7, %v1339_v29, %v1340_v57  ;;  %v2981_v29 = vrot.slane %v3590_v54, 9  ;;  %v2988_v2 = vrot.slane %v3842_v0, 9 }
  0x9e   : > { %5338 = vst [vmem:[#allocation49_spill] sm:$0xff] %v4061_v38  ;;  %1263 = vrot.lane.b32.xlu0 %v4061_v38, %s3378_s12  ;;  %v1201_v36 = vrot.slane %v1199_v27, 5  ;;  %5341 = vst [vmem:[#allocation52_spill] sm:$0xff] %v4083_v55  ;;  %v1346_v27 = vrot.slane %v1344_v11, 4 }
  0xa0   : > { %v4075_v41 = vsel %vm3483_vm2, %v1197_v33, %v1201_v36  ;;  %v4092_v33 = vsel %vm4053_vm7, %v2979_v28, %v1344_v11  ;;  %v2980_v36 = vrot.slane %v3554_v7, 9  ;;  %v4104_v28 = vsel %vm4053_vm7, %v1346_v27, %v1347_v37 }
  0xa1   : > { %5340 = vst [vmem:[#allocation51_spill] sm:$0xff] %v4075_v41  ;;  %1265 = vrot.lane.b32.xlu1 %v4075_v41, %s3378_s12  ;;  %v4086_v24 = vpop.permute.xlu1 %1209  ;;  %v2982_v41 = vrot.slane %v3635_v53, 9  ;;  %v1360_v27 = vrot.slane %v1358_v9, 4 }
  0xa2   : > { %1447 = vrot.lane.b32.xlu0 %v4069_v44, %s3379_s24  ;;  %v4108_v11 = vsel %vm4053_vm7, %v2980_v36, %v1351_v10  ;;  %v1353_v44 = vrot.slane %v1351_v10, 4  ;;  %v4123_v10 = vsel %vm4053_vm7, %v2981_v29, %v1358_v9  ;;  %v1365_v36 = vrot.slane %v3608_v21, 5  ;;  %1303 = vst.msk [vmem:[#allocation2 + $0xc] sm:$0xf] %vm1299_vm9, %v4086_v24 }
  0xa3   : > { %v2983_v9 = vrot.slane %v3668_v46, 9  ;;  %v1368_v24 = vrot.slane %v3623_v31, 5  ;;  %v1375_v31 = vrot.slane %v3647_v5, 5 }
  0xa4   : > { %v4119_v37 = vsel %vm4053_vm7, %v1353_v44, %v1354_v61  ;;  %v4207_v61 = vsel %vm4053_vm7, %v1360_v27, %v1361_v6  ;;  %v4211_v52 = vsel %vm4053_vm7, %v2982_v41, %v1365_v36  ;;  %v1367_v29 = vrot.slane %v1365_v36, 4 }
  0xa5   : > { %1449 = vrot.lane.b32.xlu1 %v4083_v55, %s3379_s24  ;;  %v1214_v57 = vpop.permute.xlu1 %1213  ;;  %v1212_v55 = vpop.permute.xlu0 %1211  ;;  %v1379_v6 = vrot.slane %v3688_v12, 5  ;;  %v1382_v27 = vrot.slane %v3697_v30, 5  ;;  %v2985_v36 = vrot.slane %v3747_v40, 9  ;;  %v1389_v30 = vrot.slane %v3717_v8, 5  ;;  %v5347_v8 = vld [vmem:[#allocation26_spill] sm:$0xff] }
  0xa6   : > { %1451 = vrot.lane.b32.xlu0 %v4092_v33, %s3379_s24  ;;  %1305 = vst.msk [vmem:[#allocation2 + $0x14] sm:$0xf] %vm1299_vm9, %v1214_v57  ;;  %1304 = vst.msk [vmem:[#allocation2 + $0x10] sm:$0xf] %vm1299_vm9, %v1212_v55  ;;  %v1374_v55 = vrot.slane %v1372_v34, 4  ;;  %v4225_v41 = vsel %vm4053_vm7, %v1367_v29, %v1368_v24  ;;  %v2984_v57 = vrot.slane %v3701_v17, 9 }
  0xa8   : > { %v4243_v5 = vsel %vm4053_vm7, %v2984_v57, %v1379_v6 }
  0xa9   : > { %1453 = vrot.lane.b32.xlu1 %v4104_v28, %s3379_s24  ;;  %v1218_v38 = vpop.permute.xlu1 %1217  ;;  %5344 = vst [vmem:[#allocation55_spill] sm:$0xff] %v4243_v5 }
  0xaa   : > { %1455 = vrot.lane.b32.xlu0 %v4108_v11, %s3379_s24  ;;  %1307 = vst.msk [vmem:[#allocation2 + $0x1c] sm:$0xf] %vm1299_vm9, %v1218_v38  ;;  %v4221_v38 = vsel %vm4053_vm7, %v2983_v9, %v1372_v34  ;;  %v4239_v9 = vsel %vm4053_vm7, %v1374_v55, %v1375_v31  ;;  %v1381_v34 = vrot.slane %v1379_v6, 4  ;;  %v2986_v55 = vrot.slane %v3770_v1, 9 }
  0xab   : > { %5342 = vst [vmem:[#allocation53_spill] sm:$0xff] %v4221_v38  ;;  %5343 = vst [vmem:[#allocation54_spill] sm:$0xff] %v4239_v9  ;;  %v1393_v6 = vrot.slane %v3772_v13, 5 }
  0xad   : > { %1457 = vrot.lane.b32.xlu1 %v4119_v37, %s3379_s24  ;;  %v1216_v44 = vpop.permute.xlu0 %1215 }
  0xae   : > { %1459 = vrot.lane.b32.xlu0 %v4123_v10, %s3379_s24  ;;  %1306 = vst.msk [vmem:[#allocation2 + $0x18] sm:$0xf] %vm1299_vm9, %v1216_v44  ;;  %v1386_v44 = vrot.slane %v3704_v45, 5 }
  0xb0   : > { %v4260_v31 = vsel %vm4053_vm7, %v2985_v36, %v1386_v44  ;;  %v1388_v57 = vrot.slane %v1386_v44, 4  ;;  %v4275_v36 = vsel %vm4053_vm7, %v2986_v55, %v1393_v6  ;;  %v1400_v44 = vrot.slane %v3807_v26, 5 }
  0xb1   : > { %1461 = vrot.lane.b32.xlu1 %v4207_v61, %s3379_s24  ;;  %5346 = vst [vmem:[#allocation57_spill] sm:$0xff] %v4260_v31  ;;  %5349 = vst [vmem:[#allocation58_spill] sm:$0xff] %v4275_v36 }
  0xb2   : > { %1463 = vrot.lane.b32.xlu0 %v4211_v52, %s3379_s24  ;;  %v1222_v23 = vpop.permute.xlu1 %1221 }
  0xb3   : > { %1309 = vst.msk [vmem:[#allocation2 + $0x24] sm:$0xf] %vm1299_vm9, %v1222_v23  ;;  %v4256_v23 = vsel %vm4053_vm7, %v1381_v34, %v1382_v27  ;;  %v4271_v27 = vsel %vm4053_vm7, %v1388_v57, %v1389_v30  ;;  %v1395_v34 = vrot.slane %v1393_v6, 4  ;;  %v5350_v57 = vld [vmem:[#allocation33_spill] sm:$0xff]  ;;  %v1402_v6 = vrot.slane %v1400_v44, 4 }
  0xb4   : > { %5345 = vst [vmem:[#allocation56_spill] sm:$0xff] %v4256_v23  ;;  %5348 = vst [vmem:[#allocation26_spill] sm:$0xff] %v4271_v27 }
  0xb5   : > { %1465 = vrot.lane.b32.xlu1 %v4225_v41, %s3379_s24 }
  0xb6   : > { %1467 = vrot.lane.b32.xlu0 %v4221_v38, %s3379_s24 }
  0xb7   : > { %v1226_v29 = vpop.permute.xlu1 %1225 }
  0xb8   : > { %v1220_v24 = vpop.permute.xlu0 %1219  ;;  %1311 = vst.msk [vmem:[#allocation2 + $0x2c] sm:$0xf] %vm1299_vm9, %v1226_v29  ;;  %v1396_v29 = vrot.slane %v5347_v8, 5  ;;  %v1403_v8 = vrot.slane %v5350_v57, 5 }
  0xb9   : > { %1308 = vst.msk [vmem:[#allocation2 + $0x20] sm:$0xf] %vm1299_vm9, %v1220_v24  ;;  %1469 = vrot.lane.b32.xlu1 %v4239_v9, %s3379_s24  ;;  %v2987_v24 = vrot.slane %v3805_v48, 9  ;;  %v1435_v9 = vrot.slane %v3983_v51, 5 }
  0xba   : > { %1471 = vrot.lane.b32.xlu0 %v4243_v5, %s3379_s24  ;;  %v4290_v55 = vsel %vm4053_vm7, %v1395_v34, %v1396_v29  ;;  %v4303_v29 = vsel %vm4053_vm7, %v1402_v6, %v1403_v8  ;;  %v2990_v6 = vrot.slane %v3910_v62, 9  ;;  %v1428_v5 = vrot.slane %v3947_v59, 5 }
  0xbb   : > { %v4285_v30 = vsel %vm4053_vm7, %v2987_v24, %v1400_v44  ;;  %5351 = vst [vmem:[#allocation33_spill] sm:$0xff] %v4290_v55  ;;  %v5352_v24 = vld [vmem:[#allocation36_spill] sm:$0xff] }
  0xbc   : > { %v1410_v57 = vrot.slane %v5352_v24, 5  ;;  %v5353_v24 = vld [vmem:[#allocation39_spill] sm:$0xff] }
  0xbd   : > { %1473 = vrot.lane.b32.xlu1 %v4256_v23, %s3379_s24  ;;  %v1417_v8 = vrot.slane %v5353_v24, 5  ;;  %v1421_v23 = vrot.slane %v3912_v18, 5  ;;  %v5354_v24 = vld [vmem:[#allocation42_spill] sm:$0xff] }
  0xbe   : > { %1475 = vrot.lane.b32.xlu0 %v4260_v31, %s3379_s24 }
  0xbf   : > { %v1224_v3 = vpop.permute.xlu0 %1223 }
  0xc0   : > { %1310 = vst.msk [vmem:[#allocation2 + $0x28] sm:$0xf] %vm1299_vm9, %v1224_v3  ;;  %v1407_v3 = vrot.slane %v3844_v16, 5 }
  0xc1   : > { %1477 = vrot.lane.b32.xlu1 %v4271_v27, %s3379_s24 }
  0xc2   : > { %1479 = vrot.lane.b32.xlu0 %v4275_v36, %s3379_s24  ;;  %v1230_v31 = vpop.permute.xlu1 %1229  ;;  %v2989_v36 = vrot.slane %v3876_v35, 9  ;;  %v4307_v34 = vsel %vm4053_vm7, %v2988_v2, %v1407_v3  ;;  %v1409_v44 = vrot.slane %v1407_v3, 4 }
  0xc3   : > { %1313 = vst.msk [vmem:[#allocation2 + $0x34] sm:$0xf] %vm1299_vm9, %v1230_v31  ;;  %v1414_v31 = vrot.slane %v3878_v43, 5 }
  0xc4   : > { %v4320_v2 = vsel %vm4053_vm7, %v1409_v44, %v1410_v57  ;;  %v1424_v57 = vrot.slane %v5354_v24, 5  ;;  %v2992_v24 = vrot.slane %v3981_v14, 9 }
  0xc5   : > { %1481 = vrot.lane.b32.xlu1 %v4290_v55, %s3379_s24  ;;  %v1416_v3 = vrot.slane %v1414_v31, 4 }
  0xc6   : > { %1483 = vrot.lane.b32.xlu0 %v4285_v30, %s3379_s24 }
  0xc7   : > { %v1228_v27 = vpop.permute.xlu0 %1227  ;;  %v4338_v44 = vsel %vm4053_vm7, %v1416_v3, %v1417_v8  ;;  %v1430_v3 = vrot.slane %v1428_v5, 4 }
  0xc8   : > { %1312 = vst.msk [vmem:[#allocation2 + $0x30] sm:$0xf] %vm1299_vm9, %v1228_v27  ;;  %v4324_v27 = vsel %vm4053_vm7, %v2989_v36, %v1414_v31  ;;  %v1423_v36 = vrot.slane %v1421_v23, 4  ;;  %v2991_v31 = vrot.slane %v3945_v56, 9 }
  0xc9   : > { %v1234_v55 = vpop.permute.xlu1 %1233  ;;  %1485 = vrot.lane.b32.xlu1 %v4303_v29, %s3379_s24 }
  0xca   : > { %1487 = vrot.lane.b32.xlu0 %v4307_v34, %s3379_s24  ;;  %1315 = vst.msk [vmem:[#allocation2 + $0x3c] sm:$0xf] %vm1299_vm9, %v1234_v55  ;;  %v4333_v55 = vsel %vm4053_vm7, %v2990_v6, %v1421_v23  ;;  %v1431_v6 = vrot.slane %v3976_v20, 5  ;;  %v4351_v23 = vsel %vm4053_vm7, %v1423_v36, %v1424_v57  ;;  %v4355_v8 = vsel %vm4053_vm7, %v2991_v31, %v1428_v5 }
  0xcb   : > { %5355 = vst [vmem:[#allocation36_spill] sm:$0xff] %v4351_v23  ;;  %5356 = vst [vmem:[#allocation39_spill] sm:$0xff] %v4355_v8  ;;  %v1438_v20 = vrot.slane %v4020_v15, 5  ;;  %v4371_v5 = vsel %vm4053_vm7, %v2992_v24, %v1435_v9  ;;  %v1437_v31 = vrot.slane %v1435_v9, 4 }
  0xcc   : > { %v4367_v36 = vsel %vm4053_vm7, %v1430_v3, %v1431_v6  ;;  %v1445_v6 = vrot.slane %v4050_v50, 5 }
  0xcd   : > { %1489 = vrot.lane.b32.xlu1 %v4320_v2, %s3379_s24  ;;  %v4382_v15 = vsel %vm4053_vm7, %v1437_v31, %v1438_v20 }
  0xce   : > { %1491 = vrot.lane.b32.xlu0 %v4324_v27, %s3379_s24 }
  0xd0   : > { %v1232_v25 = vpop.permute.xlu0 %1231 }
  0xd1   : > { %1493 = vrot.lane.b32.xlu1 %v4338_v44, %s3379_s24  ;;  %1314 = vst.msk [vmem:[#allocation2 + $0x38] sm:$0xf] %vm1299_vm9, %v1232_v25  ;;  %v2993_v25 = vrot.slane %v4025_v49, 9 }
  0xd2   : > { %1495 = vrot.lane.b32.xlu0 %v4333_v55, %s3379_s24 }
  0xd5   : > { %v1208_v38 = vpop.permute.xlu1 %1207  ;;  %1497 = vrot.lane.b32.xlu1 %v4351_v23, %s3379_s24  ;;  %v1442_v23 = vrot.slane %v4027_v39, 5 }
  0xd6   : > { %1499 = vrot.lane.b32.xlu0 %v4355_v8, %s3379_s24  ;;  %1302 = vst.msk [vmem:[#allocation2 + $0x8] sm:$0xf] %vm1299_vm9, %v1208_v38  ;;  %v1236_v57 = vpop.permute.xlu0 %1235 }
  0xd7   : > { %1316 = vst.msk [vmem:[#allocation2 + $0x40] sm:$0xf] %vm1299_vm9, %v1236_v57  ;;  %v4386_v38 = vsel %vm4053_vm7, %v2993_v25, %v1442_v23  ;;  %v1444_v9 = vrot.slane %v1442_v23, 4 }
  0xd9   : > { %v1238_v8 = vpop.permute.xlu1 %1237  ;;  %1501 = vrot.lane.b32.xlu1 %v4367_v36, %s3379_s24  ;;  %v4395_v24 = vsel %vm4053_vm7, %v1444_v9, %v1445_v6  ;;  %v3132_v9 = vld [vmem:[%s3495_s9 + $0xc0] sm:$0xff]  }
  0xda   : > { %1503 = vrot.lane.b32.xlu0 %v4371_v5, %s3379_s24  ;;  %1317 = vst.msk [vmem:[#allocation2 + $0x44] sm:$0xf] %vm1299_vm9, %v1238_v8  ;;  %v3123_v6 = vunpack.c.l.bf16 %v3132_v9 }
  0xdd   : > { %1505 = vrot.lane.b32.xlu1 %v4382_v15, %s3379_s24 }
  0xde   : > { %1507 = vrot.lane.b32.xlu0 %v4386_v38, %s3379_s24  ;;  %v1240_v8 = vpop.permute.xlu0 %1239 }
  0xdf   : > { %1318 = vst.msk [vmem:[#allocation2 + $0x48] sm:$0xf] %vm1299_vm9, %v1240_v8 }
  0xe0   : > { %v1242_v3 = vpop.permute.xlu1 %1241 }
  0xe1   : > { %1509 = vrot.lane.b32.xlu1 %v4395_v24, %s3379_s24  ;;  %1319 = vst.msk [vmem:[#allocation2 + $0x4c] sm:$0xf] %vm1299_vm9, %v1242_v3  ;;  %s3385_s24 = smov 64  }
  0xe2   : > { %1581 = vrot.lane.b32.xlu0 %v3766_v42, %s3380_s26 }
  0xe5   : > { %1583 = vrot.lane.b32.xlu1 %v3539_v58, %s3380_s26 }
  0xe6   : > { %1585 = vrot.lane.b32.xlu0 %v3554_v7, %s3380_s26 }
  0xe7   : > { %v1244_v50 = vpop.permute.xlu0 %1243 }
  0xe8   : > { %1320 = vst.msk [vmem:[#allocation2 + $0x50] sm:$0xf] %vm1299_vm9, %v1244_v50  ;;  %v1246_v23 = vpop.permute.xlu1 %1245  ;;  %v389_v50 = vmul.f32 %v3994_v60, %v3123_v6 }
  0xe9   : > { %1587 = vrot.lane.b32.xlu1 %v3546_v63, %s3380_s26  ;;  %1321 = vst.msk [vmem:[#allocation2 + $0x54] sm:$0xf] %vm1299_vm9, %v1246_v23  ;;  %v3124_v23 = vunpack.c.h.bf16 %v3132_v9 }
  0xea   : > { %1589 = vrot.lane.b32.xlu0 %v3590_v54, %s3380_s26 }
  0xed   : > { %1591 = vrot.lane.b32.xlu1 %v3569_v32, %s3380_s26 }
  0xee   : > { %1593 = vrot.lane.b32.xlu0 %v3635_v53, %s3380_s26  ;;  %v1248_v58 = vpop.permute.xlu0 %1247 }
  0xef   : > { %1322 = vst.msk [vmem:[#allocation2 + $0x58] sm:$0xf] %vm1299_vm9, %v1248_v58  ;;  %v450_v58 = vadd.f32 %v4015_v22, %v389_v50 }
  0xf1   : > { %1595 = vrot.lane.b32.xlu1 %v3608_v21, %s3380_s26 }
  0xf2   : > { %1597 = vrot.lane.b32.xlu0 %v3668_v46, %s3380_s26  ;;  %v1250_v42 = vpop.permute.xlu1 %1249 }
  0xf3   : > { %1323 = vst.msk [vmem:[#allocation2 + $0x5c] sm:$0xf] %vm1299_vm9, %v1250_v42 }
  0xf5   : > { %1599 = vrot.lane.b32.xlu1 %v3629_v47, %s3380_s26 }
  0xf6   : > { %1601 = vrot.lane.b32.xlu0 %v3701_v17, %s3380_s26 }
  0xf7   : > { %v1252_v20 = vpop.permute.xlu0 %1251 }
  0xf8   : > { %1324 = vst.msk [vmem:[#allocation2 + $0x60] sm:$0xf] %vm1299_vm9, %v1252_v20  ;;  %v390_v20 = vmul.f32 %v3994_v60, %v3124_v23 }
  0xf9   : > { %1603 = vrot.lane.b32.xlu1 %v3688_v12, %s3380_s26 }
  0xfa   : > { %1605 = vrot.lane.b32.xlu0 %v3747_v40, %s3380_s26  ;;  %v1254_v25 = vpop.permute.xlu1 %1253  ;;  %v451_v9 = vadd.f32 %v4015_v22, %v390_v20  ;;  %v5357_v20 = vld [vmem:[#allocation28_spill] sm:$0xff] }
  0xfb   : > { %1325 = vst.msk [vmem:[#allocation2 + $0x64] sm:$0xf] %vm1299_vm9, %v1254_v25  ;;  %v504_v25 = vmax.f32 %v450_v58, 0.0 }
  0xfc   : > { %v505_v50 = vmax.f32 %v451_v9, 0.0  ;;  %v5359_v9 = vld [vmem:[#allocation14_spill] sm:$0xff] }
  0xfd   : > { %1607 = vrot.lane.b32.xlu1 %v3704_v45, %s3380_s26  ;;  %v581_v6 = vsel %vm518_vm3, 0.0, %v504_v25  ;;  %vm2576_vm3 = vcmask 588800  }
  0xfe   : > { %1609 = vrot.lane.b32.xlu0 %v3770_v1, %s3380_s26  ;;  %v4489_v4 = vpack.c.bf16 %v505_v50, %v505_v50  ;;  %v5361_v50 = vld [vmem:[#allocation16_spill] sm:$0xff]  ;;  %v5371_v1 = vld [vmem:[#allocation37_spill] sm:$0xff] }
  0xff   : > { %v1256_v57 = vpop.permute.xlu0 %1255 }
 0x100   : > { %1326 = vst.msk [vmem:[#allocation2 + $0x68] sm:$0xf] %vm1299_vm9, %v1256_v57 }
 0x101   : > { %1611 = vrot.lane.b32.xlu1 %v3772_v13, %s3380_s26  ;;  %v5370_v13 = vld [vmem:[#allocation35_spill] sm:$0xff] }
 0x102   : > { %1613 = vrot.lane.b32.xlu0 %v3805_v48, %s3380_s26  ;;  %v1258_v31 = vpop.permute.xlu1 %1257  ;;  %v5369_v48 = vld [vmem:[#allocation34_spill] sm:$0xff] }
 0x103   : > { %1327 = vst.msk [vmem:[#allocation2 + $0x6c] sm:$0xf] %vm1299_vm9, %v1258_v31 }
 0x105   : > { %1615 = vrot.lane.b32.xlu1 %v3807_v26, %s3380_s26  ;;  %v5368_v26 = vld [vmem:[#allocation21_spill] sm:$0xff] }
 0x106   : > { %1617 = vrot.lane.b32.xlu0 %v3842_v0, %s3380_s26 }
 0x107   : > { %v1260_v8 = vpop.permute.xlu0 %1259 }
 0x108   : > { %1328 = vst.msk [vmem:[#allocation2 + $0x70] sm:$0xf] %vm1299_vm9, %v1260_v8 }
 0x109   : > { %1619 = vrot.lane.b32.xlu1 %v3844_v16, %s3380_s26  ;;  %v1262_v3 = vpop.permute.xlu1 %1261 }
 0x10a   : > { %1621 = vrot.lane.b32.xlu0 %v3876_v35, %s3380_s26  ;;  %1329 = vst.msk [vmem:[#allocation2 + $0x74] sm:$0xf] %vm1299_vm9, %v1262_v3  ;;  %v4481_v3 = vpack.c.bf16 %v581_v6, %v581_v6 }
 0x10d   : > { %1623 = vrot.lane.b32.xlu1 %v3878_v43, %s3380_s26 }
 0x10e   : > { %1625 = vrot.lane.b32.xlu0 %v3910_v62, %s3380_s26 }
 0x110   : > { %v1264_v42 = vpop.permute.xlu0 %1263 }
 0x111   : > { %1330 = vst.msk [vmem:[#allocation2 + $0x78] sm:$0xf] %vm1299_vm9, %v1264_v42  ;;  %1627 = vrot.lane.b32.xlu1 %v3912_v18, %s3380_s26 }
 0x112   : > { %1629 = vrot.lane.b32.xlu0 %v3945_v56, %s3380_s26 }
 0x113   : > { %v1266_v57 = vpop.permute.xlu1 %1265 }
 0x114   : > { %v1448_v31 = vpop.permute.xlu0 %1447  ;;  %1331 = vst.msk [vmem:[#allocation2 + $0x7c] sm:$0xf] %vm1299_vm9, %v1266_v57 }
 0x115   : > { %1544 = vst.msk [vmem:[#allocation2] sm:$0xf] %vm1543_vm10, %v1448_v31  ;;  %1631 = vrot.lane.b32.xlu1 %v3947_v59, %s3380_s26  ;;  %v5358_v31 = vld [vmem:[#allocation12_spill] sm:$0xff] }
 0x116   : > { %1633 = vrot.lane.b32.xlu0 %v3981_v14, %s3380_s26 }
 0x117   : > { %v1450_v8 = vpop.permute.xlu1 %1449 }
 0x118   : > { %v1452_v60 = vpop.permute.xlu0 %1451  ;;  %1545 = vst.msk [vmem:[#allocation2 + $0x4] sm:$0xf] %vm1543_vm10, %v1450_v8 }
 0x119   : > { %1546 = vst.msk [vmem:[#allocation2 + $0x8] sm:$0xf] %vm1543_vm10, %v1452_v60  ;;  %1635 = vrot.lane.b32.xlu1 %v3983_v51, %s3380_s26  ;;  %v5360_v60 = vld [vmem:[#allocation13_spill] sm:$0xff] }
 0x11a   : > { %1637 = vrot.lane.b32.xlu0 %v4025_v49, %s3380_s26 }
 0x11b   : > { %v1454_v23 = vpop.permute.xlu1 %1453 }
 0x11c   : > { %v1456_v22 = vpop.permute.xlu0 %1455  ;;  %1547 = vst.msk [vmem:[#allocation2 + $0xc] sm:$0xf] %vm1543_vm10, %v1454_v23 }
 0x11d   : > { %1548 = vst.msk [vmem:[#allocation2 + $0x10] sm:$0xf] %vm1543_vm10, %v1456_v22  ;;  %1639 = vrot.lane.b32.xlu1 %v4027_v39, %s3380_s26 }
 0x11e   : > { %1641 = vrot.lane.b32.xlu0 %v4481_v3, %s3380_s26 }
 0x11f   : > { %v1458_v58 = vpop.permute.xlu1 %1457 }
 0x120   : > { %v1460_v42 = vpop.permute.xlu0 %1459  ;;  %1549 = vst.msk [vmem:[#allocation2 + $0x14] sm:$0xf] %vm1543_vm10, %v1458_v58  ;;  %v5362_v58 = vld [vmem:[#allocation15_spill] sm:$0xff] }
 0x121   : > { %1550 = vst.msk [vmem:[#allocation2 + $0x18] sm:$0xf] %vm1543_vm10, %v1460_v42  ;;  %1643 = vrot.lane.b32.xlu1 %v4489_v4, %s3380_s26  ;;  %v5363_v42 = vld [vmem:[#allocation19_spill] sm:$0xff]  ;;  %s3386_s26 = smov [#allocation3]  }
 0x122   : > { %1737 = vrot.lane.b32.xlu0 %v5357_v20, %s3381_s29  ;;  %s3303_s7 = sshll.u32 %s3386_s26, 4  ;;  %s3304_s7 = int_to_ptr.vmem [resolvable:$false] %s3303_s7 }
 0x123   : > { %v1462_v25 = vpop.permute.xlu1 %1461 }
 0x124   : > { %v1464_v57 = vpop.permute.xlu0 %1463  ;;  %1551 = vst.msk [vmem:[#allocation2 + $0x1c] sm:$0xf] %vm1543_vm10, %v1462_v25 }
 0x125   : > { %1552 = vst.msk [vmem:[#allocation2 + $0x20] sm:$0xf] %vm1543_vm10, %v1464_v57  ;;  %1739 = vrot.lane.b32.xlu1 %v5358_v31, %s3381_s29  ;;  %v5364_v57 = vld [vmem:[#allocation17_spill] sm:$0xff]  ;;  %v5365_v31 = vld [vmem:[#allocation20_spill] sm:$0xff] }
 0x126   : > { %1741 = vrot.lane.b32.xlu0 %v5359_v9, %s3381_s29 }
 0x127   : > { %v1466_v6 = vpop.permute.xlu1 %1465 }
 0x128   : > { %v1468_v8 = vpop.permute.xlu0 %1467  ;;  %1553 = vst.msk [vmem:[#allocation2 + $0x24] sm:$0xf] %vm1543_vm10, %v1466_v6 }
 0x129   : > { %1554 = vst.msk [vmem:[#allocation2 + $0x28] sm:$0xf] %vm1543_vm10, %v1468_v8  ;;  %1743 = vrot.lane.b32.xlu1 %v5360_v60, %s3381_s29 }
 0x12a   : > { %1745 = vrot.lane.b32.xlu0 %v5361_v50, %s3381_s29 }
 0x12b   : > { %v1470_v23 = vpop.permute.xlu1 %1469 }
 0x12c   : > { %v1472_v22 = vpop.permute.xlu0 %1471  ;;  %1555 = vst.msk [vmem:[#allocation2 + $0x2c] sm:$0xf] %vm1543_vm10, %v1470_v23  ;;  %v5366_v23 = vld [vmem:[#allocation18_spill] sm:$0xff] }
 0x12d   : > { %1556 = vst.msk [vmem:[#allocation2 + $0x30] sm:$0xf] %vm1543_vm10, %v1472_v22  ;;  %1747 = vrot.lane.b32.xlu1 %v5362_v58, %s3381_s29  ;;  %v5367_v22 = vld [vmem:[#allocation22_spill] sm:$0xff] }
 0x12e   : > { %1749 = vrot.lane.b32.xlu0 %v5363_v42, %s3381_s29 }
 0x12f   : > { %v1474_v20 = vpop.permute.xlu1 %1473 }
 0x130   : > { %v1476_v25 = vpop.permute.xlu0 %1475  ;;  %1557 = vst.msk [vmem:[#allocation2 + $0x34] sm:$0xf] %vm1543_vm10, %v1474_v20 }
 0x131   : > { %1558 = vst.msk [vmem:[#allocation2 + $0x38] sm:$0xf] %vm1543_vm10, %v1476_v25  ;;  %1751 = vrot.lane.b32.xlu1 %v5364_v57, %s3381_s29 }
 0x132   : > { %1753 = vrot.lane.b32.xlu0 %v5365_v31, %s3381_s29 }
 0x133   : > { %v1478_v6 = vpop.permute.xlu1 %1477 }
 0x134   : > { %v1480_v8 = vpop.permute.xlu0 %1479  ;;  %1559 = vst.msk [vmem:[#allocation2 + $0x3c] sm:$0xf] %vm1543_vm10, %v1478_v6 }
 0x135   : > { %1560 = vst.msk [vmem:[#allocation2 + $0x40] sm:$0xf] %vm1543_vm10, %v1480_v8  ;;  %1755 = vrot.lane.b32.xlu1 %v5366_v23, %s3381_s29 }
 0x136   : > { %1757 = vrot.lane.b32.xlu0 %v5367_v22, %s3381_s29 }
 0x137   : > { %v1482_v20 = vpop.permute.xlu1 %1481 }
 0x138   : > { %v1484_v25 = vpop.permute.xlu0 %1483  ;;  %1561 = vst.msk [vmem:[#allocation2 + $0x44] sm:$0xf] %vm1543_vm10, %v1482_v20 }
 0x139   : > { %1562 = vst.msk [vmem:[#allocation2 + $0x48] sm:$0xf] %vm1543_vm10, %v1484_v25  ;;  %1759 = vrot.lane.b32.xlu1 %v5368_v26, %s3381_s29 }
 0x13a   : > { %1769 = vrot.lane.b32.xlu0 %v5369_v48, %s3381_s29  ;;  %v5372_v48 = vld [vmem:[#allocation38_spill] sm:$0xff] }
 0x13b   : > { %v1486_v6 = vpop.permute.xlu1 %1485 }
 0x13c   : > { %v1488_v8 = vpop.permute.xlu0 %1487  ;;  %1563 = vst.msk [vmem:[#allocation2 + $0x4c] sm:$0xf] %vm1543_vm10, %v1486_v6 }
 0x13d   : > { %1564 = vst.msk [vmem:[#allocation2 + $0x50] sm:$0xf] %vm1543_vm10, %v1488_v8  ;;  %1771 = vrot.lane.b32.xlu1 %v5370_v13, %s3381_s29 }
 0x13e   : > { %1773 = vrot.lane.b32.xlu0 %v5371_v1, %s3381_s29 }
 0x13f   : > { %v1490_v20 = vpop.permute.xlu1 %1489 }
 0x140   : > { %v1492_v25 = vpop.permute.xlu0 %1491  ;;  %1565 = vst.msk [vmem:[#allocation2 + $0x54] sm:$0xf] %vm1543_vm10, %v1490_v20 }
 0x141   : > { %1566 = vst.msk [vmem:[#allocation2 + $0x58] sm:$0xf] %vm1543_vm10, %v1492_v25  ;;  %1775 = vrot.lane.b32.xlu1 %v5372_v48, %s3381_s29 }
 0x142   : > { %1873 = vrot.lane.b32.xlu0 %v4092_v33, %s3382_s30 }
 0x143   : > { %v1494_v6 = vpop.permute.xlu1 %1493 }
 0x144   : > { %v1496_v8 = vpop.permute.xlu0 %1495  ;;  %1567 = vst.msk [vmem:[#allocation2 + $0x5c] sm:$0xf] %vm1543_vm10, %v1494_v6 }
 0x145   : > { %1568 = vst.msk [vmem:[#allocation2 + $0x60] sm:$0xf] %vm1543_vm10, %v1496_v8  ;;  %1875 = vrot.lane.b32.xlu1 %v4104_v28, %s3382_s30 }
 0x146   : > { %1905 = vrot.lane.b32.xlu0 %v4285_v30, %s3382_s30 }
 0x147   : > { %v1498_v20 = vpop.permute.xlu1 %1497 }
 0x148   : > { %v1500_v25 = vpop.permute.xlu0 %1499  ;;  %1569 = vst.msk [vmem:[#allocation2 + $0x64] sm:$0xf] %vm1543_vm10, %v1498_v20 }
 0x149   : > { %1570 = vst.msk [vmem:[#allocation2 + $0x68] sm:$0xf] %vm1543_vm10, %v1500_v25  ;;  %1907 = vrot.lane.b32.xlu1 %v4303_v29, %s3382_s30 }
 0x14a   : > { %1877 = vrot.lane.b32.xlu0 %v4108_v11, %s3382_s30 }
 0x14b   : > { %v1502_v33 = vpop.permute.xlu1 %1501 }
 0x14c   : > { %v1504_v6 = vpop.permute.xlu0 %1503  ;;  %1571 = vst.msk [vmem:[#allocation2 + $0x6c] sm:$0xf] %vm1543_vm10, %v1502_v33 }
 0x14d   : > { %1572 = vst.msk [vmem:[#allocation2 + $0x70] sm:$0xf] %vm1543_vm10, %v1504_v6  ;;  %1879 = vrot.lane.b32.xlu1 %v4119_v37, %s3382_s30 }
 0x14e   : > { %1909 = vrot.lane.b32.xlu0 %v4307_v34, %s3382_s30 }
 0x14f   : > { %v1506_v28 = vpop.permute.xlu1 %1505 }
 0x150   : > { %v1508_v8 = vpop.permute.xlu0 %1507  ;;  %1573 = vst.msk [vmem:[#allocation2 + $0x74] sm:$0xf] %vm1543_vm10, %v1506_v28 }
 0x151   : > { %1574 = vst.msk [vmem:[#allocation2 + $0x78] sm:$0xf] %vm1543_vm10, %v1508_v8  ;;  %1911 = vrot.lane.b32.xlu1 %v4320_v2, %s3382_s30  ;;  %v3275_v8 = vld [vmem:[%s5189_s1 + $0x18] sm:$0xff]  }
 0x152   : > { %2007 = vrot.lane.b32.xlu0 %v3554_v7, %s3383_s5 }
 0x153   : > { %v1510_v20 = vpop.permute.xlu1 %1509 }
 0x154   : > { %v1582_v25 = vpop.permute.xlu0 %1581  ;;  %1575 = vst.msk [vmem:[#allocation2 + $0x7c] sm:$0xf] %vm1543_vm10, %v1510_v20  ;;  %v3276_v20 = vld [vmem:[%s5189_s1 + $0x10] sm:$0xff]  }
 0x155   : > { %1678 = vst.msk [vmem:[#allocation2] sm:$0xf] %vm1677_vm11, %v1582_v25  ;;  %2009 = vrot.lane.b32.xlu1 %v3546_v63, %s3383_s5 }
 0x156   : > { %2039 = vrot.lane.b32.xlu0 %v3842_v0, %s3383_s5 }
 0x157   : > { %v1584_v33 = vpop.permute.xlu1 %1583 }
 0x158   : > { %v1586_v6 = vpop.permute.xlu0 %1585  ;;  %1679 = vst.msk [vmem:[#allocation2 + $0x4] sm:$0xf] %vm1677_vm11, %v1584_v33  ;;  %v3277_v33 = vld [vmem:[%s5189_s1 + $0x8] sm:$0xff]  }
 0x159   : > { %1680 = vst.msk [vmem:[#allocation2 + $0x8] sm:$0xf] %vm1677_vm11, %v1586_v6  ;;  %2041 = vrot.lane.b32.xlu1 %v3844_v16, %s3383_s5  ;;  %v5374_v6 = vld [vmem:[#allocation41_spill] sm:$0xff] }
 0x15a   : > { %2011 = vrot.lane.b32.xlu0 %v3590_v54, %s3383_s5 }
 0x15b   : > { %v1588_v7 = vpop.permute.xlu1 %1587 }
 0x15c   : > { %v1590_v28 = vpop.permute.xlu0 %1589  ;;  %1681 = vst.msk [vmem:[#allocation2 + $0xc] sm:$0xf] %vm1677_vm11, %v1588_v7 }
 0x15d   : > { %1682 = vst.msk [vmem:[#allocation2 + $0x10] sm:$0xf] %vm1677_vm11, %v1590_v28  ;;  %2013 = vrot.lane.b32.xlu1 %v3569_v32, %s3383_s5  ;;  %v3274_v32 = vld [vmem:[%s5189_s1 + $0x20] ss:$0 sps:$4 sm:$0xff]  }
 0x15e   : > { %2043 = vrot.lane.b32.xlu0 %v3876_v35, %s3383_s5  ;;  %v2627_v35 = vsel %vm2625_vm12, %v3274_v32, 0  ;;  %3206 = vmatprep.subr.msk.bf16.mxu0 %vm2625_vm12, %v3274_v32  ;;  %v3279_v28 = vld [vmem:[%s5189_s1] sm:$0xff]  }
 0x15f   : > { %v1592_v63 = vpop.permute.xlu1 %1591  ;;  %3207 = vmatprep.subr.msk.bf16.mxu1 %vm2625_vm12, %v3274_v32  ;;  %3155 = vmatpush3.bf16.msra.mxu0 %v2627_v35  ;;  %v5375_v32 = vld [vmem:[#allocation43_spill] sm:$0xff] }
 0x160   : > { %v1594_v0 = vpop.permute.xlu0 %1593  ;;  %1683 = vst.msk [vmem:[#allocation2 + $0x14] sm:$0xf] %vm1677_vm11, %v1592_v63  ;;  %3201 = vmatpush3.bf16.msra.mxu1 %v2627_v35  ;;  %3156 = vmatprep.subr.bf16.mxu0 %v3275_v8 }
 0x161   : > { %1684 = vst.msk [vmem:[#allocation2 + $0x18] sm:$0xf] %vm1677_vm11, %v1594_v0  ;;  %2045 = vrot.lane.b32.xlu1 %v3878_v43, %s3383_s5  ;;  %3197 = vmatprep.subr.bf16.mxu1 %v3275_v8 }
 0x162   : > { %2163 = vrot.lane.b32.xlu0 %v5359_v9, %s3384_s6 }
 0x163   : > { %v1596_v54 = vpop.permute.xlu1 %1595  ;;  %3157 = vmatpush3.bf16.msra.mxu0 %v3275_v8 }
 0x164   : > { %v1598_v16 = vpop.permute.xlu0 %1597  ;;  %1685 = vst.msk [vmem:[#allocation2 + $0x1c] sm:$0xf] %vm1677_vm11, %v1596_v54  ;;  %3202 = vmatpush3.bf16.msra.mxu1 %v3275_v8  ;;  %3158 = vmatprep.subr.bf16.mxu0 %v3276_v20 }
 0x165   : > { %1686 = vst.msk [vmem:[#allocation2 + $0x20] sm:$0xf] %vm1677_vm11, %v1598_v16  ;;  %2165 = vrot.lane.b32.xlu1 %v5360_v60, %s3384_s6  ;;  %3198 = vmatprep.subr.bf16.mxu1 %v3276_v20 }
 0x166   : > { %2195 = vrot.lane.b32.xlu0 %v5371_v1, %s3384_s6 }
 0x167   : > { %v1600_v43 = vpop.permute.xlu1 %1599  ;;  %3159 = vmatpush3.bf16.msra.mxu0 %v3276_v20 }
 0x168   : > { %v1602_v9 = vpop.permute.xlu0 %1601  ;;  %1687 = vst.msk [vmem:[#allocation2 + $0x24] sm:$0xf] %vm1677_vm11, %v1600_v43  ;;  %3203 = vmatpush3.bf16.msra.mxu1 %v3276_v20  ;;  %3160 = vmatprep.subr.bf16.mxu0 %v3277_v33 }
 0x169   : > { %1688 = vst.msk [vmem:[#allocation2 + $0x28] sm:$0xf] %vm1677_vm11, %v1602_v9  ;;  %2197 = vrot.lane.b32.xlu1 %v5372_v48, %s3384_s6  ;;  %v5373_v48 = vld [vmem:[#allocation40_spill] sm:$0xff]  ;;  %3199 = vmatprep.subr.bf16.mxu1 %v3277_v33 }
 0x16a   : > { %2167 = vrot.lane.b32.xlu0 %v5361_v50, %s3384_s6  ;;  %v5376_v9 = vld [vmem:[#allocation44_spill] sm:$0xff] }
 0x16b   : > { %v1604_v1 = vpop.permute.xlu1 %1603  ;;  %3161 = vmatpush3.bf16.msra.mxu0 %v3277_v33 }
 0x16c   : > { %v1606_v60 = vpop.permute.xlu0 %1605  ;;  %1689 = vst.msk [vmem:[#allocation2 + $0x2c] sm:$0xf] %vm1677_vm11, %v1604_v1  ;;  %3204 = vmatpush3.bf16.msra.mxu1 %v3277_v33  ;;  %3162 = vmatprep.subr.bf16.mxu0 %v3279_v28 }
 0x16d   : > { %1690 = vst.msk [vmem:[#allocation2 + $0x30] sm:$0xf] %vm1677_vm11, %v1606_v60  ;;  %2169 = vrot.lane.b32.xlu1 %v5362_v58, %s3384_s6  ;;  %3200 = vmatprep.subr.bf16.mxu1 %v3279_v28 }
 0x16e   : > { %2199 = vrot.lane.b32.xlu0 %v5373_v48, %s3384_s6 }
 0x16f   : > { %v1608_v50 = vpop.permute.xlu1 %1607  ;;  %3163 = vmatpush3.bf16.msra.mxu0 %v3279_v28 }
 0x170   : > { %v1610_v25 = vpop.permute.xlu0 %1609  ;;  %1691 = vst.msk [vmem:[#allocation2 + $0x34] sm:$0xf] %vm1677_vm11, %v1608_v50  ;;  %3205 = vmatpush3.bf16.msra.mxu1 %v3279_v28 }
 0x171   : > { %1692 = vst.msk [vmem:[#allocation2 + $0x38] sm:$0xf] %vm1677_vm11, %v1610_v25  ;;  %2201 = vrot.lane.b32.xlu1 %v5374_v6, %s3384_s6 }
 0x172   : > { %2299 = vrot.lane.b32.xlu0 %v4108_v11, %s3385_s24 }
 0x173   : > { %v1612_v58 = vpop.permute.xlu1 %1611 }
 0x174   : > { %v1614_v7 = vpop.permute.xlu0 %1613  ;;  %1693 = vst.msk [vmem:[#allocation2 + $0x3c] sm:$0xf] %vm1677_vm11, %v1612_v58 }
 0x175   : > { %1694 = vst.msk [vmem:[#allocation2 + $0x40] sm:$0xf] %vm1677_vm11, %v1614_v7  ;;  %2301 = vrot.lane.b32.xlu1 %v4119_v37, %s3385_s24 }
 0x176   : > { %2331 = vrot.lane.b32.xlu0 %v4307_v34, %s3385_s24 }
 0x177   : > { %v1616_v11 = vpop.permute.xlu1 %1615 }
 0x178   : > { %v1618_v63 = vpop.permute.xlu0 %1617  ;;  %1695 = vst.msk [vmem:[#allocation2 + $0x44] sm:$0xf] %vm1677_vm11, %v1616_v11 }
 0x179   : > { %1696 = vst.msk [vmem:[#allocation2 + $0x48] sm:$0xf] %vm1677_vm11, %v1618_v63  ;;  %2333 = vrot.lane.b32.xlu1 %v4320_v2, %s3385_s24 }
 0x17a   : > { %2303 = vrot.lane.b32.xlu0 %v4123_v10, %s3385_s24 }
 0x17b   : > { %v1620_v37 = vpop.permute.xlu1 %1619 }
 0x17c   : > { %v1622_v0 = vpop.permute.xlu0 %1621  ;;  %1697 = vst.msk [vmem:[#allocation2 + $0x4c] sm:$0xf] %vm1677_vm11, %v1620_v37 }
 0x17d   : > { %1698 = vst.msk [vmem:[#allocation2 + $0x50] sm:$0xf] %vm1677_vm11, %v1622_v0  ;;  %2305 = vrot.lane.b32.xlu1 %v4207_v61, %s3385_s24 }
 0x17e   : > { %2335 = vrot.lane.b32.xlu0 %v4324_v27, %s3385_s24 }
 0x17f   : > { %v1624_v34 = vpop.permute.xlu1 %1623 }
 0x180   : > { %v1626_v54 = vpop.permute.xlu0 %1625  ;;  %1699 = vst.msk [vmem:[#allocation2 + $0x54] sm:$0xf] %vm1677_vm11, %v1624_v34 }
 0x181   : > { %1700 = vst.msk [vmem:[#allocation2 + $0x58] sm:$0xf] %vm1677_vm11, %v1626_v54  ;;  %2337 = vrot.lane.b32.xlu1 %v4338_v44, %s3385_s24 }
 0x182   : > { %1777 = vrot.lane.b32.xlu0 %v5373_v48, %s3381_s29 }
 0x183   : > { %v1628_v2 = vpop.permute.xlu1 %1627 }
 0x184   : > { %v1630_v16 = vpop.permute.xlu0 %1629  ;;  %1701 = vst.msk [vmem:[#allocation2 + $0x5c] sm:$0xf] %vm1677_vm11, %v1628_v2 }
 0x185   : > { %1702 = vst.msk [vmem:[#allocation2 + $0x60] sm:$0xf] %vm1677_vm11, %v1630_v16  ;;  %1779 = vrot.lane.b32.xlu1 %v5374_v6, %s3381_s29 }
 0x186   : > { %1781 = vrot.lane.b32.xlu0 %v5375_v32, %s3381_s29 }
 0x187   : > { %v1632_v35 = vpop.permute.xlu1 %1631 }
 0x188   : > { %v1634_v43 = vpop.permute.xlu0 %1633  ;;  %1703 = vst.msk [vmem:[#allocation2 + $0x64] sm:$0xf] %vm1677_vm11, %v1632_v35  ;;  %v5383_v35 = vld [vmem:[#allocation47_spill] sm:$0xff] }
 0x189   : > { %1704 = vst.msk [vmem:[#allocation2 + $0x68] sm:$0xf] %vm1677_vm11, %v1634_v43  ;;  %1783 = vrot.lane.b32.xlu1 %v5376_v9, %s3381_s29 }
 0x18a   : > { %1881 = vrot.lane.b32.xlu0 %v4123_v10, %s3382_s30 }
 0x18b   : > { %v1636_v8 = vpop.permute.xlu1 %1635 }
 0x18c   : > { %v1638_v1 = vpop.permute.xlu0 %1637  ;;  %1705 = vst.msk [vmem:[#allocation2 + $0x6c] sm:$0xf] %vm1677_vm11, %v1636_v8  ;;  %v5384_v8 = vld [vmem:[#allocation48_spill] sm:$0xff] }
 0x18d   : > { %1706 = vst.msk [vmem:[#allocation2 + $0x70] sm:$0xf] %vm1677_vm11, %v1638_v1  ;;  %1883 = vrot.lane.b32.xlu1 %v4207_v61, %s3382_s30 }
 0x18e   : > { %1913 = vrot.lane.b32.xlu0 %v4324_v27, %s3382_s30 }
 0x18f   : > { %v1640_v60 = vpop.permute.xlu1 %1639 }
 0x190   : > { %v1642_v20 = vpop.permute.xlu0 %1641  ;;  %1707 = vst.msk [vmem:[#allocation2 + $0x74] sm:$0xf] %vm1677_vm11, %v1640_v60 }
 0x191   : > { %1708 = vst.msk [vmem:[#allocation2 + $0x78] sm:$0xf] %vm1677_vm11, %v1642_v20  ;;  %1915 = vrot.lane.b32.xlu1 %v4338_v44, %s3382_s30  ;;  %v5377_v44 = vld [vmem:[#allocation36_spill] sm:$0xff] }
 0x192   : > { %1885 = vrot.lane.b32.xlu0 %v4211_v52, %s3382_s30 }
 0x193   : > { %v1644_v10 = vpop.permute.xlu1 %1643 }
 0x194   : > { %v1738_v48 = vpop.permute.xlu0 %1737  ;;  %1709 = vst.msk [vmem:[#allocation2 + $0x7c] sm:$0xf] %vm1677_vm11, %v1644_v10 }
 0x195   : > { %1834 = vst.msk [vmem:[#allocation2] sm:$0xf] %vm1833_vm13, %v1738_v48  ;;  %1887 = vrot.lane.b32.xlu1 %v4225_v41, %s3382_s30  ;;  %v5385_v48 = vld [vmem:[#allocation55_spill] sm:$0xff] }
 0x196   : > { %1917 = vrot.lane.b32.xlu0 %v4333_v55, %s3382_s30 }
 0x197   : > { %v1740_v61 = vpop.permute.xlu1 %1739 }
 0x198   : > { %v1742_v27 = vpop.permute.xlu0 %1741  ;;  %1835 = vst.msk [vmem:[#allocation2 + $0x4] sm:$0xf] %vm1833_vm13, %v1740_v61 }
 0x199   : > { %1836 = vst.msk [vmem:[#allocation2 + $0x8] sm:$0xf] %vm1833_vm13, %v1742_v27  ;;  %1919 = vrot.lane.b32.xlu1 %v5377_v44, %s3382_s30 }
 0x19a   : > { %2015 = vrot.lane.b32.xlu0 %v3635_v53, %s3383_s5 }
 0x19b   : > { %v1744_v50 = vpop.permute.xlu1 %1743 }
 0x19c   : > { %v1746_v25 = vpop.permute.xlu0 %1745  ;;  %1837 = vst.msk [vmem:[#allocation2 + $0xc] sm:$0xf] %vm1833_vm13, %v1744_v50 }
 0x19d   : > { %1838 = vst.msk [vmem:[#allocation2 + $0x10] sm:$0xf] %vm1833_vm13, %v1746_v25  ;;  %2017 = vrot.lane.b32.xlu1 %v3608_v21, %s3383_s5 }
 0x19e   : > { %2047 = vrot.lane.b32.xlu0 %v3910_v62, %s3383_s5 }
 0x19f   : > { %v1748_v33 = vpop.permute.xlu1 %1747 }
 0x1a0   : > { %v1750_v6 = vpop.permute.xlu0 %1749  ;;  %1839 = vst.msk [vmem:[#allocation2 + $0x14] sm:$0xf] %vm1833_vm13, %v1748_v33 }
 0x1a1   : > { %1840 = vst.msk [vmem:[#allocation2 + $0x18] sm:$0xf] %vm1833_vm13, %v1750_v6  ;;  %2049 = vrot.lane.b32.xlu1 %v3912_v18, %s3383_s5 }
 0x1a2   : > { %2019 = vrot.lane.b32.xlu0 %v3668_v46, %s3383_s5 }
 0x1a3   : > { %v1752_v53 = vpop.permute.xlu1 %1751 }
 0x1a4   : > { %v1754_v58 = vpop.permute.xlu0 %1753  ;;  %1841 = vst.msk [vmem:[#allocation2 + $0x1c] sm:$0xf] %vm1833_vm13, %v1752_v53 }
 0x1a5   : > { %1842 = vst.msk [vmem:[#allocation2 + $0x20] sm:$0xf] %vm1833_vm13, %v1754_v58  ;;  %2021 = vrot.lane.b32.xlu1 %v3629_v47, %s3383_s5 }
 0x1a6   : > { %2051 = vrot.lane.b32.xlu0 %v3945_v56, %s3383_s5 }
 0x1a7   : > { %v1756_v21 = vpop.permute.xlu1 %1755 }
 0x1a8   : > { %v1758_v62 = vpop.permute.xlu0 %1757  ;;  %1843 = vst.msk [vmem:[#allocation2 + $0x24] sm:$0xf] %vm1833_vm13, %v1756_v21 }
 0x1a9   : > { %1844 = vst.msk [vmem:[#allocation2 + $0x28] sm:$0xf] %vm1833_vm13, %v1758_v62  ;;  %2053 = vrot.lane.b32.xlu1 %v3947_v59, %s3383_s5 }
 0x1aa   : > { %2171 = vrot.lane.b32.xlu0 %v5363_v42, %s3384_s6 }
 0x1ab   : > { %v1760_v46 = vpop.permute.xlu1 %1759 }
 0x1ac   : > { %v1770_v18 = vpop.permute.xlu0 %1769  ;;  %1845 = vst.msk [vmem:[#allocation2 + $0x2c] sm:$0xf] %vm1833_vm13, %v1760_v46 }
 0x1ad   : > { %1850 = vst.msk [vmem:[#allocation2 + $0x40] sm:$0xf] %vm1833_vm13, %v1770_v18  ;;  %2173 = vrot.lane.b32.xlu1 %v5364_v57, %s3384_s6  ;;  %v5378_v57 = vld [vmem:[#allocation45_spill] sm:$0xff] }
 0x1ae   : > { %2203 = vrot.lane.b32.xlu0 %v5375_v32, %s3384_s6 }
 0x1af   : > { %v1772_v47 = vpop.permute.xlu1 %1771 }
 0x1b0   : > { %v1774_v56 = vpop.permute.xlu0 %1773  ;;  %1851 = vst.msk [vmem:[#allocation2 + $0x44] sm:$0xf] %vm1833_vm13, %v1772_v47  ;;  %v276_v47 = vld [vmem:[%s3495_s9 + $0xc8] sm:$0x1]  ;;  %s3305_s9 = scalar_lea.vmem %s3304_s7, 8192 }
 0x1b1   : > { %1852 = vst.msk [vmem:[#allocation2 + $0x48] sm:$0xf] %vm1833_vm13, %v1774_v56  ;;  %2205 = vrot.lane.b32.xlu1 %v5376_v9, %s3384_s6  ;;  %v5388_v56 = vld [vmem:[#allocation23_spill] sm:$0xff] }
 0x1b2   : > { %2175 = vrot.lane.b32.xlu0 %v5365_v31, %s3384_s6  ;;  %v5379_v31 = vld [vmem:[#allocation46_spill] sm:$0xff] }
 0x1b3   : > { %v1776_v59 = vpop.permute.xlu1 %1775 }
 0x1b4   : > { %v1874_v42 = vpop.permute.xlu0 %1873  ;;  %1853 = vst.msk [vmem:[#allocation2 + $0x4c] sm:$0xf] %vm1833_vm13, %v1776_v59  ;;  %v5389_v59 = vld [vmem:[#allocation49_spill] sm:$0xff] }
 0x1b5   : > { %1970 = vst.msk [vmem:[#allocation2] sm:$0xf] %vm1969_vm14, %v1874_v42  ;;  %2177 = vrot.lane.b32.xlu1 %v5366_v23, %s3384_s6 }
 0x1b6   : > { %2207 = vrot.lane.b32.xlu0 %v5378_v57, %s3384_s6 }
 0x1b7   : > { %v1876_v7 = vpop.permute.xlu1 %1875 }
 0x1b8   : > { %v1906_v28 = vpop.permute.xlu0 %1905  ;;  %1971 = vst.msk [vmem:[#allocation2 + $0x4] sm:$0xf] %vm1969_vm14, %v1876_v7  ;;  %v330_v7 = vunpack.c.l.bf16 %v276_v47 }
 0x1b9   : > { %1986 = vst.msk [vmem:[#allocation2 + $0x40] sm:$0xf] %vm1969_vm14, %v1906_v28  ;;  %2209 = vrot.lane.b32.xlu1 %v5379_v31, %s3384_s6  ;;  %v5390_v28 = vld [vmem:[#allocation51_spill] sm:$0xff] }
 0x1ba   : > { %2307 = vrot.lane.b32.xlu0 %v4211_v52, %s3385_s24  ;;  %v5380_v52 = vld [vmem:[#allocation53_spill] sm:$0xff] }
 0x1bb   : > { %v1908_v11 = vpop.permute.xlu1 %1907 }
 0x1bc   : > { %v1878_v63 = vpop.permute.xlu0 %1877  ;;  %1987 = vst.msk [vmem:[#allocation2 + $0x44] sm:$0xf] %vm1969_vm14, %v1908_v11 }
 0x1bd   : > { %1972 = vst.msk [vmem:[#allocation2 + $0x8] sm:$0xf] %vm1969_vm14, %v1878_v63  ;;  %2309 = vrot.lane.b32.xlu1 %v4225_v41, %s3385_s24  ;;  %v5381_v41 = vld [vmem:[#allocation54_spill] sm:$0xff] }
 0x1be   : > { %2339 = vrot.lane.b32.xlu0 %v4333_v55, %s3385_s24  ;;  %v5382_v55 = vld [vmem:[#allocation39_spill] sm:$0xff]  ;;  %v3297_v63 = vld [vmem:[%s5190_s2] ss:$0 sm:$0xff] }
 0x1bf   : > { %v1880_v23 = vpop.permute.xlu1 %1879 }
 0x1c0   : > { %v1910_v37 = vpop.permute.xlu0 %1909  ;;  %1973 = vst.msk [vmem:[#allocation2 + $0xc] sm:$0xf] %vm1969_vm14, %v1880_v23  ;;  %v391_v23 = vmul.f32 %v3297_v63, %v330_v7 }
 0x1c1   : > { %1988 = vst.msk [vmem:[#allocation2 + $0x48] sm:$0xf] %vm1969_vm14, %v1910_v37  ;;  %2341 = vrot.lane.b32.xlu1 %v5377_v44, %s3385_s24  ;;  %v5386_v44 = vld [vmem:[#allocation56_spill] sm:$0xff] }
 0x1c2   : > { %2311 = vrot.lane.b32.xlu0 %v5380_v52, %s3385_s24 }
 0x1c3   : > { %v1912_v0 = vpop.permute.xlu1 %1911 }
 0x1c4   : > { %v2008_v34 = vpop.permute.xlu0 %2007  ;;  %1989 = vst.msk [vmem:[#allocation2 + $0x4c] sm:$0xf] %vm1969_vm14, %v1912_v0  ;;  %v3298_v0 = vld [vmem:[%s5191_s3] ss:$0 sm:$0xff] }
 0x1c5   : > { %2104 = vst.msk [vmem:[#allocation2] sm:$0xf] %vm2103_vm15, %v2008_v34  ;;  %2313 = vrot.lane.b32.xlu1 %v5381_v41, %s3385_s24  ;;  %v452_v34 = vadd.f32 %v3298_v0, %v391_v23  ;;  %v5399_v23 = vld [vmem:[#allocation24_spill] sm:$0xff] }
 0x1c6   : > { %2343 = vrot.lane.b32.xlu0 %v5382_v55, %s3385_s24 }
 0x1c7   : > { %v2010_v54 = vpop.permute.xlu1 %2009 }
 0x1c8   : > { %v2040_v2 = vpop.permute.xlu0 %2039  ;;  %2105 = vst.msk [vmem:[#allocation2 + $0x4] sm:$0xf] %vm2103_vm15, %v2010_v54 }
 0x1c9   : > { %2120 = vst.msk [vmem:[#allocation2 + $0x40] sm:$0xf] %vm2103_vm15, %v2040_v2  ;;  %2345 = vrot.lane.b32.xlu1 %v4367_v36, %s3385_s24  ;;  %v1717_v2 = vshll.u32 %v4481_v3, 16 }
 0x1ca   : > { %1785 = vrot.lane.b32.xlu0 %v5378_v57, %s3381_s29 }
 0x1cb   : > { %v2042_v16 = vpop.permute.xlu1 %2041 }
 0x1cc   : > { %v2012_v32 = vpop.permute.xlu0 %2011  ;;  %2121 = vst.msk [vmem:[#allocation2 + $0x44] sm:$0xf] %vm2103_vm15, %v2042_v16  ;;  %v506_v16 = vmax.f32 %v452_v34, 0.0 }
 0x1cd   : > { %2106 = vst.msk [vmem:[#allocation2 + $0x8] sm:$0xf] %vm2103_vm15, %v2012_v32  ;;  %1787 = vrot.lane.b32.xlu1 %v5379_v31, %s3381_s29  ;;  %v5392_v32 = vld [vmem:[#allocation26_spill] sm:$0xff] }
 0x1ce   : > { %1789 = vrot.lane.b32.xlu0 %v5383_v35, %s3381_s29 }
 0x1cf   : > { %v2014_v43 = vpop.permute.xlu1 %2013 }
 0x1d0   : > { %v2044_v9 = vpop.permute.xlu0 %2043  ;;  %2107 = vst.msk [vmem:[#allocation2 + $0xc] sm:$0xf] %vm2103_vm15, %v2014_v43 }
 0x1d1   : > { %2122 = vst.msk [vmem:[#allocation2 + $0x48] sm:$0xf] %vm2103_vm15, %v2044_v9  ;;  %1791 = vrot.lane.b32.xlu1 %v5384_v8, %s3381_s29 }
 0x1d2   : > { %1889 = vrot.lane.b32.xlu0 %v5380_v52, %s3382_s30 }
 0x1d3   : > { %v2046_v1 = vpop.permute.xlu1 %2045 }
 0x1d4   : > { %v2164_v60 = vpop.permute.xlu0 %2163  ;;  %2123 = vst.msk [vmem:[#allocation2 + $0x4c] sm:$0xf] %vm2103_vm15, %v2046_v1  ;;  %v1719_v1 = vrot.slane %v1717_v2, 5 }
 0x1d5   : > { %2260 = vst.msk [vmem:[#allocation2] sm:$0xf] %vm2259_vm0, %v2164_v60  ;;  %1891 = vrot.lane.b32.xlu1 %v5381_v41, %s3382_s30  ;;  %v5391_v41 = vld [vmem:[#allocation57_spill] sm:$0xff] }
 0x1d6   : > { %1921 = vrot.lane.b32.xlu0 %v5382_v55, %s3382_s30 }
 0x1d7   : > { %v2166_v20 = vpop.permute.xlu1 %2165 }
 0x1d8   : > { %v2196_v10 = vpop.permute.xlu0 %2195  ;;  %2261 = vst.msk [vmem:[#allocation2 + $0x4] sm:$0xf] %vm2259_vm0, %v2166_v20  ;;  %v583_v20 = vsel %vm523_vm4, 0.0, %v506_v16  ;;  %v5403_v16 = vld [vmem:[#allocation6_spill] sm:$0xff] }
 0x1d9   : > { %2276 = vst.msk [vmem:[#allocation2 + $0x40] sm:$0xf] %vm2259_vm0, %v2196_v10  ;;  %1923 = vrot.lane.b32.xlu1 %v4367_v36, %s3382_s30 }
 0x1da   : > { %1893 = vrot.lane.b32.xlu0 %v5385_v48, %s3382_s30 }
 0x1db   : > { %v2198_v61 = vpop.permute.xlu1 %2197 }
 0x1dc   : > { %v2168_v27 = vpop.permute.xlu0 %2167  ;;  %2277 = vst.msk [vmem:[#allocation2 + $0x44] sm:$0xf] %vm2259_vm0, %v2198_v61 }
 0x1dd   : > { %2262 = vst.msk [vmem:[#allocation2 + $0x8] sm:$0xf] %vm2259_vm0, %v2168_v27  ;;  %1895 = vrot.lane.b32.xlu1 %v5386_v44, %s3382_s30 }
 0x1de   : > { %1925 = vrot.lane.b32.xlu0 %v4371_v5, %s3382_s30 }
 0x1df   : > { %v2170_v50 = vpop.permute.xlu1 %2169 }
 0x1e0   : > { %v2200_v25 = vpop.permute.xlu0 %2199  ;;  %2263 = vst.msk [vmem:[#allocation2 + $0xc] sm:$0xf] %vm2259_vm0, %v2170_v50 }
 0x1e1   : > { %2278 = vst.msk [vmem:[#allocation2 + $0x48] sm:$0xf] %vm2259_vm0, %v2200_v25  ;;  %1927 = vrot.lane.b32.xlu1 %v4382_v15, %s3382_s30 }
 0x1e2   : > { %2023 = vrot.lane.b32.xlu0 %v3701_v17, %s3383_s5 }
 0x1e3   : > { %v2202_v36 = vpop.permute.xlu1 %2201 }
 0x1e4   : > { %v2300_v33 = vpop.permute.xlu0 %2299  ;;  %2279 = vst.msk [vmem:[#allocation2 + $0x4c] sm:$0xf] %vm2259_vm0, %v2202_v36 }
 0x1e5   : > { %2396 = vst.msk [vmem:[#allocation2] sm:$0xf] %vm2395_vm1, %v2300_v33  ;;  %2025 = vrot.lane.b32.xlu1 %v3688_v12, %s3383_s5 }
 0x1e6   : > { %2055 = vrot.lane.b32.xlu0 %v3981_v14, %s3383_s5 }
 0x1e7   : > { %v2302_v6 = vpop.permute.xlu1 %2301 }
 0x1e8   : > { %v2332_v53 = vpop.permute.xlu0 %2331  ;;  %2397 = vst.msk [vmem:[#allocation2 + $0x4] sm:$0xf] %vm2395_vm1, %v2302_v6 }
 0x1e9   : > { %2412 = vst.msk [vmem:[#allocation2 + $0x40] sm:$0xf] %vm2395_vm1, %v2332_v53  ;;  %2057 = vrot.lane.b32.xlu1 %v3983_v51, %s3383_s5 }
 0x1ea   : > { %2027 = vrot.lane.b32.xlu0 %v3747_v40, %s3383_s5 }
 0x1eb   : > { %v2334_v17 = vpop.permute.xlu1 %2333 }
 0x1ec   : > { %v2304_v58 = vpop.permute.xlu0 %2303  ;;  %2413 = vst.msk [vmem:[#allocation2 + $0x44] sm:$0xf] %vm2395_vm1, %v2334_v17  ;;  %v5394_v17 = vld [vmem:[#allocation31_spill] sm:$0xff] }
 0x1ed   : > { %2398 = vst.msk [vmem:[#allocation2 + $0x8] sm:$0xf] %vm2395_vm1, %v2304_v58  ;;  %2029 = vrot.lane.b32.xlu1 %v3704_v45, %s3383_s5 }
 0x1ee   : > { %2059 = vrot.lane.b32.xlu0 %v4025_v49, %s3383_s5 }
 0x1ef   : > { %v2306_v12 = vpop.permute.xlu1 %2305  ;;  %v3278_v14 = vld [vmem:[#allocation2] sm:$0xff]  }
 0x1f0   : > { %v2336_v21 = vpop.permute.xlu0 %2335  ;;  %2399 = vst.msk [vmem:[#allocation2 + $0xc] sm:$0xf] %vm2395_vm1, %v2306_v12  ;;  %3164 = vmatprep.mubr.msk.bf16.mxu0 %vm2576_vm3, %v3278_v14 }
 0x1f1   : > { %2414 = vst.msk [vmem:[#allocation2 + $0x48] sm:$0xf] %vm2395_vm1, %v2336_v21  ;;  %2061 = vrot.lane.b32.xlu1 %v4027_v39, %s3383_s5 }
 0x1f2   : > { %2179 = vrot.lane.b32.xlu0 %v5367_v22, %s3384_s6 }
 0x1f3   : > { %v2338_v45 = vpop.permute.xlu1 %2337  ;;  %v3280_v40 = vld [vmem:[#allocation2 + $0x40] sm:$0xff]  }
 0x1f4   : > { %v1778_v51 = vpop.permute.xlu0 %1777  ;;  %2415 = vst.msk [vmem:[#allocation2 + $0x4c] sm:$0xf] %vm2395_vm1, %v2338_v45  ;;  %3180 = vmatprep.mubr.msk.bf16.mxu1 %vm2576_vm3, %v3280_v40 }
 0x1f5   : > { %1854 = vst.msk [vmem:[#allocation2 + $0x50] sm:$0xf] %vm1833_vm13, %v1778_v51  ;;  %2181 = vrot.lane.b32.xlu1 %v5368_v26, %s3384_s6  ;;  %v5387_v26 = vld [vmem:[#allocation27_spill] sm:$0xff]  ;;  %v5396_v51 = vld [vmem:[#allocation32_spill] sm:$0xff] }
 0x1f6   : > { %2211 = vrot.lane.b32.xlu0 %v5383_v35, %s3384_s6  ;;  %v1727_v35 = vshrl.u32 %v4489_v4, 16 }
 0x1f7   : > { %v1780_v49 = vpop.permute.xlu1 %1779  ;;  %v3281_v39 = vld [vmem:[#allocation2 + $0x8] sm:$0xff]  }
 0x1f8   : > { %v1782_v62 = vpop.permute.xlu0 %1781  ;;  %1855 = vst.msk [vmem:[#allocation2 + $0x54] sm:$0xf] %vm1833_vm13, %v1780_v49  ;;  %3165 = vmatmul.mubr.msk.bf16.vlgmr.msra.gmra.mxu0 %vm2576_vm3, %v3281_v39  ;;  %v1729_v61 = vrot.slane %v1727_v35, 4  ;;  %v5404_v35 = vld [vmem:[#allocation7_spill] sm:$0xff] }
 0x1f9   : > { %1856 = vst.msk [vmem:[#allocation2 + $0x58] sm:$0xf] %vm1833_vm13, %v1782_v62  ;;  %2213 = vrot.lane.b32.xlu1 %v5384_v8, %s3384_s6 }
 0x1fa   : > { %2183 = vrot.lane.b32.xlu0 %v5387_v26, %s3384_s6 }
 0x1fb   : > { %v1784_v22 = vpop.permute.xlu1 %1783  ;;  %v3282_v46 = vld [vmem:[#allocation2 + $0x48] sm:$0xff]  }
 0x1fc   : > { %v1882_v18 = vpop.permute.xlu0 %1881  ;;  %1857 = vst.msk [vmem:[#allocation2 + $0x5c] sm:$0xf] %vm1833_vm13, %v1784_v22  ;;  %3181 = vmatmul.mubr.msk.bf16.vlgmr.msra.gmra.mxu1 %vm2576_vm3, %v3282_v46  ;;  %v1868_v46 = vrot.slane %v4489_v4, 5 }
 0x1fd   : > { %1974 = vst.msk [vmem:[#allocation2 + $0x10] sm:$0xf] %vm1969_vm14, %v1882_v18  ;;  %2185 = vrot.lane.b32.xlu1 %v5388_v56, %s3384_s6 }
 0x1fe   : > { %2215 = vrot.lane.b32.xlu0 %v5389_v59, %s3384_s6 }
 0x1ff   : > { %v1884_v42 = vpop.permute.xlu1 %1883 }
 0x200   : > { %v1914_v57 = vpop.permute.xlu0 %1913  ;;  %1975 = vst.msk [vmem:[#allocation2 + $0x14] sm:$0xf] %vm1969_vm14, %v1884_v42  ;;  %v1870_v42 = vrot.slane %v1868_v46, 4 }
 0x201   : > { %1990 = vst.msk [vmem:[#allocation2 + $0x50] sm:$0xf] %vm1969_vm14, %v1914_v57  ;;  %2217 = vrot.lane.b32.xlu1 %v5390_v28, %s3384_s6 }
 0x202   : > { %2315 = vrot.lane.b32.xlu0 %v5385_v48, %s3385_s24  ;;  %v3091_v48 = vpack.c.bf16 %v583_v20, %v583_v20  ;;  %v5405_v20 = vld [vmem:[#allocation34_spill] sm:$0xff] }
 0x203   : > { %v1916_v31 = vpop.permute.xlu1 %1915 }
 0x204   : > { %v1886_v11 = vpop.permute.xlu0 %1885  ;;  %1991 = vst.msk [vmem:[#allocation2 + $0x54] sm:$0xf] %vm1969_vm14, %v1916_v31  ;;  %v1733_v36 = vshll.u32 %v3091_v48, 16  ;;  %v1871_v57 = vrot.slane %v3091_v48, 5  ;;  %v5398_v31 = vld [vmem:[#allocation33_spill] sm:$0xff] }
 0x205   : > { %1976 = vst.msk [vmem:[#allocation2 + $0x18] sm:$0xf] %vm1969_vm14, %v1886_v11  ;;  %2317 = vrot.lane.b32.xlu1 %v5386_v44, %s3385_s24 }
 0x206   : > { %2347 = vrot.lane.b32.xlu0 %v4371_v5, %s3385_s24  ;;  %v1714_v5 = vshrl.u32 %v4481_v3, 16  ;;  %v1735_v12 = vrot.slane %v1733_v36, 5 }
 0x207   : > { %v1888_v37 = vpop.permute.xlu1 %1887 }
 0x208   : > { %v1918_v52 = vpop.permute.xlu0 %1917  ;;  %1977 = vst.msk [vmem:[#allocation2 + $0x1c] sm:$0xf] %vm1969_vm14, %v1888_v37  ;;  %v1716_v8 = vrot.slane %v1714_v5, 4 }
 0x209   : > { %1992 = vst.msk [vmem:[#allocation2 + $0x58] sm:$0xf] %vm1969_vm14, %v1918_v52  ;;  %2349 = vrot.lane.b32.xlu1 %v4382_v15, %s3385_s24  ;;  %v1723_v15 = vshll.u32 %v4489_v4, 16 }
 0x20a   : > { %2319 = vrot.lane.b32.xlu0 %v5391_v41, %s3385_s24  ;;  %v1720_v50 = vor.u32 %v1719_v1, %v1716_v8 }
 0x20b   : > { %v1920_v55 = vpop.permute.xlu1 %1919  ;;  %v1725_v10 = vrot.slane %v1723_v15, 5 }
 0x20c   : > { %v2016_v54 = vpop.permute.xlu0 %2015  ;;  %1993 = vst.msk [vmem:[#allocation2 + $0x5c] sm:$0xf] %vm1969_vm14, %v1920_v55  ;;  %v1721_v53 = vrot.slane %v1720_v50, 4  ;;  %v5401_v55 = vld [vmem:[#allocation29_spill] sm:$0xff]  ;;  %v5407_v50 = vld [vmem:[#allocation11_spill] sm:$0xff] }
 0x20d   : > { %2108 = vst.msk [vmem:[#allocation2 + $0x10] sm:$0xf] %vm2103_vm15, %v2016_v54  ;;  %2321 = vrot.lane.b32.xlu1 %v5392_v32, %s3385_s24  ;;  %v1730_v25 = vor.u32 %v1729_v61, %v1725_v10  ;;  %v5406_v61 = vld [vmem:[#allocation10_spill] sm:$0xff] }
 0x20e   : > { %2351 = vrot.lane.b32.xlu0 %v4386_v38, %s3385_s24  ;;  %v4903_v40 = vsel %vm3483_vm2, %v1721_v53, %v1725_v10 }
 0x20f   : > { %v2018_v43 = vpop.permute.xlu1 %2017  ;;  %v1731_v58 = vrot.slane %v1730_v25, 4 }
 0x210   : > { %v2048_v9 = vpop.permute.xlu0 %2047  ;;  %2109 = vst.msk [vmem:[#allocation2 + $0x14] sm:$0xf] %vm2103_vm15, %v2018_v43 }
 0x211   : > { %2124 = vst.msk [vmem:[#allocation2 + $0x50] sm:$0xf] %vm2103_vm15, %v2048_v9  ;;  %2353 = vrot.lane.b32.xlu1 %v4395_v24, %s3385_s24  ;;  %v4913_v49 = vsel %vm3483_vm2, %v1731_v58, %v1735_v12 }
 0x212   : > { %1761 = vrot.lane.b32.xlu0 %v5387_v26, %s3381_s29 }
 0x213   : > { %v2050_v27 = vpop.permute.xlu1 %2049 }
 0x214   : > { %v2020_v44 = vpop.permute.xlu0 %2019  ;;  %2125 = vst.msk [vmem:[#allocation2 + $0x54] sm:$0xf] %vm2103_vm15, %v2050_v27 }
 0x215   : > { %2110 = vst.msk [vmem:[#allocation2 + $0x18] sm:$0xf] %vm2103_vm15, %v2020_v44  ;;  %1763 = vrot.lane.b32.xlu1 %v5388_v56, %s3381_s29  ;;  %v2997_v56 = vrot.slane %v4481_v3, 9 }
 0x216   : > { %1793 = vrot.lane.b32.xlu0 %v5389_v59, %s3381_s29  ;;  %v5397_v59 = vld [vmem:[#allocation58_spill] sm:$0xff] }
 0x217   : > { %v2022_v33 = vpop.permute.xlu1 %2021 }
 0x218   : > { %v2052_v6 = vpop.permute.xlu0 %2051  ;;  %2111 = vst.msk [vmem:[#allocation2 + $0x1c] sm:$0xf] %vm2103_vm15, %v2022_v33 }
 0x219   : > { %2126 = vst.msk [vmem:[#allocation2 + $0x58] sm:$0xf] %vm2103_vm15, %v2052_v6  ;;  %1795 = vrot.lane.b32.xlu1 %v5390_v28, %s3381_s29  ;;  %v4937_v28 = vsel %vm4053_vm7, %v2997_v56, %v1868_v46 }
 0x21a   : > { %1765 = vrot.lane.b32.xlu0 %v5394_v17, %s3381_s29 }
 0x21b   : > { %v2054_v14 = vpop.permute.xlu1 %2053 }
 0x21c   : > { %v2172_v21 = vpop.permute.xlu0 %2171  ;;  %2127 = vst.msk [vmem:[#allocation2 + $0x5c] sm:$0xf] %vm2103_vm15, %v2054_v14 }
 0x21d   : > { %2264 = vst.msk [vmem:[#allocation2 + $0x10] sm:$0xf] %vm2259_vm0, %v2172_v21  ;;  %1767 = vrot.lane.b32.xlu1 %v5396_v51, %s3381_s29 }
 0x21e   : > { %1797 = vrot.lane.b32.xlu0 %v4903_v40, %s3381_s29 }
 0x21f   : > { %v2174_v39 = vpop.permute.xlu1 %2173 }
 0x220   : > { %v2204_v62 = vpop.permute.xlu0 %2203  ;;  %2265 = vst.msk [vmem:[#allocation2 + $0x14] sm:$0xf] %vm2259_vm0, %v2174_v39 }
 0x221   : > { %2280 = vst.msk [vmem:[#allocation2 + $0x50] sm:$0xf] %vm2259_vm0, %v2204_v62  ;;  %1799 = vrot.lane.b32.xlu1 %v4913_v49, %s3381_s29  ;;  %s212_s29 = sand.u32 1, %s3359_s16  }
 0x222   : > { %1897 = vrot.lane.b32.xlu0 %v5391_v41, %s3382_s30 }
 0x223   : > { %v2206_v26 = vpop.permute.xlu1 %2205 }
 0x224   : > { %v2176_v22 = vpop.permute.xlu0 %2175  ;;  %2281 = vst.msk [vmem:[#allocation2 + $0x54] sm:$0xf] %vm2259_vm0, %v2206_v26 }
 0x225   : > { %2266 = vst.msk [vmem:[#allocation2 + $0x18] sm:$0xf] %vm2259_vm0, %v2176_v22  ;;  %1899 = vrot.lane.b32.xlu1 %v5392_v32, %s3382_s30 }
 0x226   : > { %1929 = vrot.lane.b32.xlu0 %v4386_v38, %s3382_s30 }
 0x227   : > { %v2178_v18 = vpop.permute.xlu1 %2177 }
 0x228   : > { %v2208_v47 = vpop.permute.xlu0 %2207  ;;  %2267 = vst.msk [vmem:[#allocation2 + $0x1c] sm:$0xf] %vm2259_vm0, %v2178_v18 }
 0x229   : > { %2282 = vst.msk [vmem:[#allocation2 + $0x58] sm:$0xf] %vm2259_vm0, %v2208_v47  ;;  %1931 = vrot.lane.b32.xlu1 %v4395_v24, %s3382_s30  ;;  %v4947_v24 = vsel %vm4053_vm7, %v1870_v42, %v1871_v57 }
 0x22a   : > { %1901 = vrot.lane.b32.xlu0 %v5397_v59, %s3382_s30 }
 0x22b   : > { %v2210_v7 = vpop.permute.xlu1 %2209 }
 0x22c   : > { %v2308_v38 = vpop.permute.xlu0 %2307  ;;  %2283 = vst.msk [vmem:[#allocation2 + $0x5c] sm:$0xf] %vm2259_vm0, %v2210_v7 }
 0x22d   : > { %2400 = vst.msk [vmem:[#allocation2 + $0x10] sm:$0xf] %vm2395_vm1, %v2308_v38  ;;  %1903 = vrot.lane.b32.xlu1 %v5398_v31, %s3382_s30 }
 0x22e   : > { %1933 = vrot.lane.b32.xlu0 %v4937_v28, %s3382_s30 }
 0x22f   : > { %v2310_v11 = vpop.permute.xlu1 %2309 }
 0x230   : > { %v2340_v63 = vpop.permute.xlu0 %2339  ;;  %2401 = vst.msk [vmem:[#allocation2 + $0x14] sm:$0xf] %vm2395_vm1, %v2310_v11 }
 0x231   : > { %2416 = vst.msk [vmem:[#allocation2 + $0x50] sm:$0xf] %vm2395_vm1, %v2340_v63  ;;  %1935 = vrot.lane.b32.xlu1 %v4947_v24, %s3382_s30  ;;  %s2926_s30 = sshll.u32 %s212_s29, 8 }
 0x232   : > { %2031 = vrot.lane.b32.xlu0 %v5399_v23, %s3383_s5 }
 0x233   : > { %v2342_v37 = vpop.permute.xlu1 %2341 }
 0x234   : > { %v2312_v52 = vpop.permute.xlu0 %2311  ;;  %2417 = vst.msk [vmem:[#allocation2 + $0x54] sm:$0xf] %vm2395_vm1, %v2342_v37 }
 0x235   : > { %2402 = vst.msk [vmem:[#allocation2 + $0x18] sm:$0xf] %vm2395_vm1, %v2312_v52  ;;  %2033 = vrot.lane.b32.xlu1 %v5400_v19, %s3383_s5 }
 0x236   : > { %2063 = vrot.lane.b32.xlu0 %v4481_v3, %s3383_s5  ;;  %v5402_v3 = vld [vmem:[#allocation30_spill] sm:$0xff] }
 0x237   : > { %v2314_v0 = vpop.permute.xlu1 %2313  ;;  %v3283_v34 = vld [vmem:[#allocation2 + $0x10] sm:$0xff]  }
 0x238   : > { %v2344_v41 = vpop.permute.xlu0 %2343  ;;  %2403 = vst.msk [vmem:[#allocation2 + $0x1c] sm:$0xf] %vm2395_vm1, %v2314_v0  ;;  %3168 = vmatprep.mubr.msk.bf16.mxu0 %vm2576_vm3, %v3283_v34 }
 0x239   : > { %2418 = vst.msk [vmem:[#allocation2 + $0x58] sm:$0xf] %vm2395_vm1, %v2344_v41  ;;  %2065 = vrot.lane.b32.xlu1 %v4489_v4, %s3383_s5 }
 0x23a   : > { %2035 = vrot.lane.b32.xlu0 %v5401_v55, %s3383_s5 }
 0x23b   : > { %v2346_v54 = vpop.permute.xlu1 %2345  ;;  %v3284_v5 = vld [vmem:[#allocation2 + $0x50] sm:$0xff]  }
 0x23c   : > { %v1786_v2 = vpop.permute.xlu0 %1785  ;;  %2419 = vst.msk [vmem:[#allocation2 + $0x5c] sm:$0xf] %vm2395_vm1, %v2346_v54  ;;  %3184 = vmatprep.mubr.msk.bf16.mxu1 %vm2576_vm3, %v3284_v5 }
 0x23d   : > { %1858 = vst.msk [vmem:[#allocation2 + $0x60] sm:$0xf] %vm1833_vm13, %v1786_v2  ;;  %2037 = vrot.lane.b32.xlu1 %v5402_v3, %s3383_s5 }
 0x23e   : > { %2067 = vrot.lane.b32.xlu0 %v5403_v16, %s3383_s5 }
 0x23f   : > { %v1788_v4 = vpop.permute.xlu1 %1787  ;;  %v3285_v32 = vld [vmem:[#allocation2 + $0x18] sm:$0xff]  }
 0x240   : > { %v1790_v15 = vpop.permute.xlu0 %1789  ;;  %1859 = vst.msk [vmem:[#allocation2 + $0x64] sm:$0xf] %vm1833_vm13, %v1788_v4  ;;  %3169 = vmatmul.mubr.msk.bf16.gmra.mxu0 %vm2576_vm3, %v3285_v32 }
 0x241   : > { %1860 = vst.msk [vmem:[#allocation2 + $0x68] sm:$0xf] %vm1833_vm13, %v1790_v15  ;;  %2069 = vrot.lane.b32.xlu1 %v5404_v35, %s3383_s5  ;;  %s5080_s5 = scalar_lea.vmem [#allocation3], %s2926_s30 }
 0x242   : > { %2187 = vrot.lane.b32.xlu0 %v5394_v17, %s3384_s6  ;;  %v5408_v17 = vld [vmem:[#allocation50_spill] sm:$0xff]  ;;  %s2839_s13 = sshll.u32 %s5080_s5, 4  ;;  %s5137_s13 = int_to_ptr.vmem [resolvable:$true] %s2839_s13 }
 0x243   : > { %v1792_v43 = vpop.permute.xlu1 %1791  ;;  %v3286_v9 = vld [vmem:[#allocation2 + $0x58] sm:$0xff]   ;;  %p3306_p1 = scmp.lt.s32.totalorder %s5137_s13, %s3304_s7 }
 0x244   : > { %v1890_v8 = vpop.permute.xlu0 %1889  ;;  %1861 = vst.msk [vmem:[#allocation2 + $0x6c] sm:$0xf] %vm1833_vm13, %v1792_v43  ;;  %3185 = vmatmul.mubr.msk.bf16.gmra.mxu1 %vm2576_vm3, %v3286_v9 }
 0x245   : > { %1978 = vst.msk [vmem:[#allocation2 + $0x20] sm:$0xf] %vm1969_vm14, %v1890_v8  ;;  %2189 = vrot.lane.b32.xlu1 %v5396_v51, %s3384_s6 }
 0x246   : > { %2219 = vrot.lane.b32.xlu0 %v4903_v40, %s3384_s6 }
 0x247   : > { %v1892_v1 = vpop.permute.xlu1 %1891 }
 0x248   : > { %v1922_v60 = vpop.permute.xlu0 %1921  ;;  %1979 = vst.msk [vmem:[#allocation2 + $0x24] sm:$0xf] %vm1969_vm14, %v1892_v1 }
 0x249   : > { %1994 = vst.msk [vmem:[#allocation2 + $0x60] sm:$0xf] %vm1969_vm14, %v1922_v60  ;;  %2221 = vrot.lane.b32.xlu1 %v4913_v49, %s3384_s6 }
 0x24a   : > { %2191 = vrot.lane.b32.xlu0 %v5405_v20, %s3384_s6 }
 0x24b   : > { %v1924_v10 = vpop.permute.xlu1 %1923 }
 0x24c   : > { %v1894_v48 = vpop.permute.xlu0 %1893  ;;  %1995 = vst.msk [vmem:[#allocation2 + $0x64] sm:$0xf] %vm1969_vm14, %v1924_v10 }
 0x24d   : > { %1980 = vst.msk [vmem:[#allocation2 + $0x28] sm:$0xf] %vm1969_vm14, %v1894_v48  ;;  %2193 = vrot.lane.b32.xlu1 %v5370_v13, %s3384_s6 }
 0x24e   : > { %2223 = vrot.lane.b32.xlu0 %v5406_v61, %s3384_s6 }
 0x24f   : > { %v1896_v27 = vpop.permute.xlu1 %1895 }
 0x250   : > { %v1926_v44 = vpop.permute.xlu0 %1925  ;;  %1981 = vst.msk [vmem:[#allocation2 + $0x2c] sm:$0xf] %vm1969_vm14, %v1896_v27 }
 0x251   : > { %1996 = vst.msk [vmem:[#allocation2 + $0x68] sm:$0xf] %vm1969_vm14, %v1926_v44  ;;  %2225 = vrot.lane.b32.xlu1 %v5407_v50, %s3384_s6  ;;  %s3092_s6 = sshll.u32 %s3367_s18, 12  ;;  %s5142_s18 = scalar_lea.sflag [#allocation4], %s212_s29 }
 0x252   : > { %2323 = vrot.lane.b32.xlu0 %v5397_v59, %s3385_s24  ;;  %s5134_s22 = scalar_lea.hbm %s5192_s4, %s3092_s6 }
 0x253   : > { %v1928_v25 = vpop.permute.xlu1 %1927 }
 0x254   : > { %v2024_v36 = vpop.permute.xlu0 %2023  ;;  %1997 = vst.msk [vmem:[#allocation2 + $0x6c] sm:$0xf] %vm1969_vm14, %v1928_v25 }
 0x255   : > { %2112 = vst.msk [vmem:[#allocation2 + $0x20] sm:$0xf] %vm2103_vm15, %v2024_v36  ;;  %2325 = vrot.lane.b32.xlu1 %v5398_v31, %s3385_s24 }
 0x256   : > { %2355 = vrot.lane.b32.xlu0 %v4937_v28, %s3385_s24 }
 0x257   : > { %v2026_v13 = vpop.permute.xlu1 %2025 }
 0x258   : > { %v2056_v33 = vpop.permute.xlu0 %2055  ;;  %2113 = vst.msk [vmem:[#allocation2 + $0x24] sm:$0xf] %vm2103_vm15, %v2026_v13 }
 0x259   : > { %2128 = vst.msk [vmem:[#allocation2 + $0x60] sm:$0xf] %vm2103_vm15, %v2056_v33  ;;  %2357 = vrot.lane.b32.xlu1 %v4947_v24, %s3385_s24 }
 0x25a   : > { %2327 = vrot.lane.b32.xlu0 %v4285_v30, %s3385_s24  ;;  %v5409_v30 = vld [vmem:[#allocation52_spill] sm:$0xff] }
 0x25b   : > { %v2058_v6 = vpop.permute.xlu1 %2057 }
 0x25c   : > { %v2028_v53 = vpop.permute.xlu0 %2027  ;;  %2129 = vst.msk [vmem:[#allocation2 + $0x64] sm:$0xf] %vm2103_vm15, %v2058_v6 }
 0x25d   : > { %2114 = vst.msk [vmem:[#allocation2 + $0x28] sm:$0xf] %vm2103_vm15, %v2028_v53  ;;  %2329 = vrot.lane.b32.xlu1 %v4303_v29, %s3385_s24 }
 0x25e   : > { %2359 = vrot.lane.b32.xlu0 %v5408_v17, %s3385_s24 }
 0x25f   : > { %v2030_v58 = vpop.permute.xlu1 %2029 }
 0x260   : > { %v2060_v12 = vpop.permute.xlu0 %2059  ;;  %2115 = vst.msk [vmem:[#allocation2 + $0x2c] sm:$0xf] %vm2103_vm15, %v2030_v58 }
 0x261   : > { %2130 = vst.msk [vmem:[#allocation2 + $0x68] sm:$0xf] %vm2103_vm15, %v2060_v12  ;;  %2361 = vrot.lane.b32.xlu1 %v5409_v30, %s3385_s24  ;;  %s3299_s24 = scalar_lea.vmem %s5137_s13, 4096 }
 0x262   : > { %p3300_p12 = scmp.ne.s32.totalorder %s5137_s13, %s3299_s24  ;;  %p3307_p2 = scmp.lt.s32.totalorder %s3305_s9, %s3299_s24 }
 0x263   : > { %v2062_v14 = vpop.permute.xlu1 %2061 }
 0x264   : > { %2131 = vst.msk [vmem:[#allocation2 + $0x6c] sm:$0xf] %vm2103_vm15, %v2062_v14  ;;  %v2180_v21 = vpop.permute.xlu0 %2179  ;;  %p3301_p13 = pnand %p3300_p12, %p3453_p4  ;;  %p3308_p3 = por %p3307_p2, %p3306_p1 }
 0x265   : > { %2268 = vst.msk [vmem:[#allocation2 + $0x20] sm:$0xf] %vm2259_vm0, %v2180_v21 }
 0x266   : > { %p3302_p0 = pneg %p3301_p13 }
 0x267   : > { %v2182_v45 = vpop.permute.xlu1 %2181 }
 0x268   : > { %2269 = vst.msk [vmem:[#allocation2 + $0x24] sm:$0xf] %vm2259_vm0, %v2182_v45  ;;  %v2212_v29 = vpop.permute.xlu0 %2211  ;;  %p3309_p5 = pnand %p3308_p3, %p3302_p0 }
 0x269   : > { %2284 = vst.msk [vmem:[#allocation2 + $0x60] sm:$0xf] %vm2259_vm0, %v2212_v29 }
 0x26b   : > { %v2214_v40 = vpop.permute.xlu1 %2213 }
 0x26c   : > { %2285 = vst.msk [vmem:[#allocation2 + $0x64] sm:$0xf] %vm2259_vm0, %v2214_v40  ;;  %v2184_v51 = vpop.permute.xlu0 %2183 }
 0x26d   : > { %2270 = vst.msk [vmem:[#allocation2 + $0x28] sm:$0xf] %vm2259_vm0, %v2184_v51 }
 0x26f   : > { %v2186_v49 = vpop.permute.xlu1 %2185 }
 0x270   : > { %2271 = vst.msk [vmem:[#allocation2 + $0x2c] sm:$0xf] %vm2259_vm0, %v2186_v49  ;;  %v2216_v39 = vpop.permute.xlu0 %2215 }
 0x271   : > { %2286 = vst.msk [vmem:[#allocation2 + $0x68] sm:$0xf] %vm2259_vm0, %v2216_v39 }
 0x273   : > { %v2218_v62 = vpop.permute.xlu1 %2217 }
 0x274   : > { %2287 = vst.msk [vmem:[#allocation2 + $0x6c] sm:$0xf] %vm2259_vm0, %v2218_v62  ;;  %v2316_v26 = vpop.permute.xlu0 %2315 }
 0x275   : > { %2404 = vst.msk [vmem:[#allocation2 + $0x20] sm:$0xf] %vm2395_vm1, %v2316_v26 }
 0x277   : > { %v2318_v22 = vpop.permute.xlu1 %2317 }
 0x278   : > { %2405 = vst.msk [vmem:[#allocation2 + $0x24] sm:$0xf] %vm2395_vm1, %v2318_v22  ;;  %v2348_v46 = vpop.permute.xlu0 %2347 }
 0x279   : > { %2420 = vst.msk [vmem:[#allocation2 + $0x60] sm:$0xf] %vm2395_vm1, %v2348_v46 }
 0x27b   : > { %v2350_v18 = vpop.permute.xlu1 %2349 }
 0x27c   : > { %2421 = vst.msk [vmem:[#allocation2 + $0x64] sm:$0xf] %vm2395_vm1, %v2350_v18  ;;  %v2320_v47 = vpop.permute.xlu0 %2319 }
 0x27d   : > { %2406 = vst.msk [vmem:[#allocation2 + $0x28] sm:$0xf] %vm2395_vm1, %v2320_v47 }
 0x27f   : > { %v2322_v56 = vpop.permute.xlu1 %2321  ;;  %v3287_v59 = vld [vmem:[#allocation2 + $0x20] sm:$0xff]  }
 0x280   : > { %2407 = vst.msk [vmem:[#allocation2 + $0x2c] sm:$0xf] %vm2395_vm1, %v2322_v56  ;;  %v2352_v42 = vpop.permute.xlu0 %2351  ;;  %3172 = vmatprep.mubr.msk.bf16.mxu0 %vm2576_vm3, %v3287_v59 }
 0x281   : > { %2422 = vst.msk [vmem:[#allocation2 + $0x68] sm:$0xf] %vm2395_vm1, %v2352_v42 }
 0x283   : > { %v2354_v57 = vpop.permute.xlu1 %2353  ;;  %v3288_v7 = vld [vmem:[#allocation2 + $0x60] sm:$0xff]  }
 0x284   : > { %2423 = vst.msk [vmem:[#allocation2 + $0x6c] sm:$0xf] %vm2395_vm1, %v2354_v57  ;;  %v1762_v38 = vpop.permute.xlu0 %1761  ;;  %3188 = vmatprep.mubr.msk.bf16.mxu1 %vm2576_vm3, %v3288_v7 }
 0x285   : > { %1846 = vst.msk [vmem:[#allocation2 + $0x30] sm:$0xf] %vm1833_vm13, %v1762_v38 }
 0x287   : > { %v1764_v28 = vpop.permute.xlu1 %1763  ;;  %v3289_v31 = vld [vmem:[#allocation2 + $0x28] sm:$0xff]  }
 0x288   : > { %1847 = vst.msk [vmem:[#allocation2 + $0x34] sm:$0xf] %vm1833_vm13, %v1764_v28  ;;  %v1794_v24 = vpop.permute.xlu0 %1793  ;;  %3173 = vmatmul.mubr.msk.bf16.gmra.mxu0 %vm2576_vm3, %v3289_v31 }
 0x289   : > { %1862 = vst.msk [vmem:[#allocation2 + $0x70] sm:$0xf] %vm1833_vm13, %v1794_v24 }
 0x28b   : > { %v1796_v11 = vpop.permute.xlu1 %1795  ;;  %v3290_v63 = vld [vmem:[#allocation2 + $0x68] sm:$0xff]  }
 0x28c   : > { %1863 = vst.msk [vmem:[#allocation2 + $0x74] sm:$0xf] %vm1833_vm13, %v1796_v11  ;;  %v1766_v23 = vpop.permute.xlu0 %1765  ;;  %3189 = vmatmul.mubr.msk.bf16.gmra.mxu1 %vm2576_vm3, %v3290_v63 }
 0x28d   : > { %1848 = vst.msk [vmem:[#allocation2 + $0x38] sm:$0xf] %vm1833_vm13, %v1766_v23 }
 0x28f   : > { %v1768_v37 = vpop.permute.xlu1 %1767 }
 0x290   : > { %1849 = vst.msk [vmem:[#allocation2 + $0x3c] sm:$0xf] %vm1833_vm13, %v1768_v37  ;;  %v1798_v52 = vpop.permute.xlu0 %1797 }
 0x291   : > { %1864 = vst.msk [vmem:[#allocation2 + $0x78] sm:$0xf] %vm1833_vm13, %v1798_v52 }
 0x293   : > { %v1800_v19 = vpop.permute.xlu1 %1799 }
 0x294   : > { %1865 = vst.msk [vmem:[#allocation2 + $0x7c] sm:$0xf] %vm1833_vm13, %v1800_v19  ;;  %v1898_v0 = vpop.permute.xlu0 %1897 }
 0x295   : > { %1982 = vst.msk [vmem:[#allocation2 + $0x30] sm:$0xf] %vm1969_vm14, %v1898_v0 }
 0x297   : > { %v1900_v34 = vpop.permute.xlu1 %1899 }
 0x298   : > { %1983 = vst.msk [vmem:[#allocation2 + $0x34] sm:$0xf] %vm1969_vm14, %v1900_v34  ;;  %v1930_v41 = vpop.permute.xlu0 %1929 }
 0x299   : > { %1998 = vst.msk [vmem:[#allocation2 + $0x70] sm:$0xf] %vm1969_vm14, %v1930_v41 }
 0x29b   : > { %v1932_v55 = vpop.permute.xlu1 %1931 }
 0x29c   : > { %1999 = vst.msk [vmem:[#allocation2 + $0x74] sm:$0xf] %vm1969_vm14, %v1932_v55  ;;  %v1902_v54 = vpop.permute.xlu0 %1901 }
 0x29d   : > { %1984 = vst.msk [vmem:[#allocation2 + $0x38] sm:$0xf] %vm1969_vm14, %v1902_v54 }
 0x29f   : > { %v1904_v5 = vpop.permute.xlu1 %1903 }
 0x2a0   : > { %1985 = vst.msk [vmem:[#allocation2 + $0x3c] sm:$0xf] %vm1969_vm14, %v1904_v5  ;;  %v1934_v2 = vpop.permute.xlu0 %1933 }
 0x2a1   : > { %2000 = vst.msk [vmem:[#allocation2 + $0x78] sm:$0xf] %vm1969_vm14, %v1934_v2 }
 0x2a3   : > { %v1936_v3 = vpop.permute.xlu1 %1935 }
 0x2a4   : > { %2001 = vst.msk [vmem:[#allocation2 + $0x7c] sm:$0xf] %vm1969_vm14, %v1936_v3  ;;  %v2032_v16 = vpop.permute.xlu0 %2031 }
 0x2a5   : > { %2116 = vst.msk [vmem:[#allocation2 + $0x30] sm:$0xf] %vm2103_vm15, %v2032_v16 }
 0x2a7   : > { %v2034_v4 = vpop.permute.xlu1 %2033 }
 0x2a8   : > { %2117 = vst.msk [vmem:[#allocation2 + $0x34] sm:$0xf] %vm2103_vm15, %v2034_v4  ;;  %v2064_v32 = vpop.permute.xlu0 %2063 }
 0x2a9   : > { %2132 = vst.msk [vmem:[#allocation2 + $0x70] sm:$0xf] %vm2103_vm15, %v2064_v32 }
 0x2ab   : > { %v2066_v15 = vpop.permute.xlu1 %2065 }
 0x2ac   : > { %2133 = vst.msk [vmem:[#allocation2 + $0x74] sm:$0xf] %vm2103_vm15, %v2066_v15  ;;  %v2036_v35 = vpop.permute.xlu0 %2035 }
 0x2ad   : > { %2118 = vst.msk [vmem:[#allocation2 + $0x38] sm:$0xf] %vm2103_vm15, %v2036_v35 }
 0x2af   : > { %v2038_v43 = vpop.permute.xlu1 %2037 }
 0x2b0   : > { %2119 = vst.msk [vmem:[#allocation2 + $0x3c] sm:$0xf] %vm2103_vm15, %v2038_v43  ;;  %v2068_v9 = vpop.permute.xlu0 %2067 }
 0x2b1   : > { %2134 = vst.msk [vmem:[#allocation2 + $0x78] sm:$0xf] %vm2103_vm15, %v2068_v9 }
 0x2b3   : > { %v2070_v8 = vpop.permute.xlu1 %2069 }
 0x2b4   : > { %2135 = vst.msk [vmem:[#allocation2 + $0x7c] sm:$0xf] %vm2103_vm15, %v2070_v8  ;;  %v2188_v1 = vpop.permute.xlu0 %2187 }
 0x2b5   : > { %2272 = vst.msk [vmem:[#allocation2 + $0x30] sm:$0xf] %vm2259_vm0, %v2188_v1 }
 0x2b7   : > { %v2190_v60 = vpop.permute.xlu1 %2189 }
 0x2b8   : > { %2273 = vst.msk [vmem:[#allocation2 + $0x34] sm:$0xf] %vm2259_vm0, %v2190_v60  ;;  %v2220_v20 = vpop.permute.xlu0 %2219  ;;  %v3166_v10 = vpop.f32.mrf.mxu0 }
 0x2b9   : > { %2288 = vst.msk [vmem:[#allocation2 + $0x70] sm:$0xf] %vm2259_vm0, %v2220_v20  ;;  %2792 = vst [vmem:[%s5080_s5 + $0x10] sm:$0xff] %v3166_v10 }
 0x2ba   : > { %v2663_v61 = vpop.f32.mrf.mxu0 }
 0x2bb   : > { %v2222_v48 = vpop.permute.xlu1 %2221  ;;  %2790 = vst [vmem:[%s5080_s5] sm:$0xff] %v2663_v61 }
 0x2bc   : > { %2289 = vst.msk [vmem:[#allocation2 + $0x74] sm:$0xf] %vm2259_vm0, %v2222_v48  ;;  %v2192_v27 = vpop.permute.xlu0 %2191  ;;  %v3167_v44 = vpop.f32.mrf.mxu0 }
 0x2bd   : > { %v3182_v50 = vpop.f32.mrf.mxu1  ;;  %2274 = vst.msk [vmem:[#allocation2 + $0x38] sm:$0xf] %vm2259_vm0, %v2192_v27  ;;  %2793 = vst [vmem:[%s5080_s5 + $0x18] sm:$0xff] %v3167_v44 }
 0x2be   : > { %2808 = vst [vmem:[%s5080_s5 + $0x90] sm:$0xff] %v3182_v50  ;;  %v2666_v36 = vpop.f32.mrf.mxu0 }
 0x2bf   : > { %v2194_v25 = vpop.permute.xlu1 %2193  ;;  %2791 = vst [vmem:[%s5080_s5 + $0x8] sm:$0xff] %v2666_v36  ;;  %v2727_v13 = vpop.f32.mrf.mxu1 }
 0x2c0   : > { %2275 = vst.msk [vmem:[#allocation2 + $0x3c] sm:$0xf] %vm2259_vm0, %v2194_v25  ;;  %v2224_v33 = vpop.permute.xlu0 %2223  ;;  %2806 = vst [vmem:[%s5080_s5 + $0x80] sm:$0xff] %v2727_v13 }
 0x2c1   : > { %2290 = vst.msk [vmem:[#allocation2 + $0x78] sm:$0xf] %vm2259_vm0, %v2224_v33  ;;  %v3183_v6 = vpop.f32.mrf.mxu1 }
 0x2c2   : > { %2809 = vst [vmem:[%s5080_s5 + $0x98] sm:$0xff] %v3183_v6 }
 0x2c3   : > { %v2226_v53 = vpop.permute.xlu1 %2225  ;;  %v2730_v17 = vpop.f32.mrf.mxu1 }
 0x2c4   : > { %2291 = vst.msk [vmem:[#allocation2 + $0x7c] sm:$0xf] %vm2259_vm0, %v2226_v53  ;;  %v2324_v58 = vpop.permute.xlu0 %2323  ;;  %2807 = vst [vmem:[%s5080_s5 + $0x88] sm:$0xff] %v2730_v17 }
 0x2c5   : > { %2408 = vst.msk [vmem:[#allocation2 + $0x30] sm:$0xf] %vm2395_vm1, %v2324_v58 }
 0x2c7   : > { %v2326_v12 = vpop.permute.xlu1 %2325 }
 0x2c8   : > { %2409 = vst.msk [vmem:[#allocation2 + $0x34] sm:$0xf] %vm2395_vm1, %v2326_v12  ;;  %v2356_v30 = vpop.permute.xlu0 %2355 }
 0x2c9   : > { %2424 = vst.msk [vmem:[#allocation2 + $0x70] sm:$0xf] %vm2395_vm1, %v2356_v30 }
 0x2cb   : > { %v2358_v14 = vpop.permute.xlu1 %2357 }
 0x2cc   : > { %2425 = vst.msk [vmem:[#allocation2 + $0x74] sm:$0xf] %vm2395_vm1, %v2358_v14  ;;  %v2328_v21 = vpop.permute.xlu0 %2327 }
 0x2cd   : > { %2410 = vst.msk [vmem:[#allocation2 + $0x38] sm:$0xf] %vm2395_vm1, %v2328_v21 }
 0x2cf   : > { %v2330_v45 = vpop.permute.xlu1 %2329  ;;  %v3291_v29 = vld [vmem:[#allocation2 + $0x30] sm:$0xff]  }
 0x2d0   : > { %2411 = vst.msk [vmem:[#allocation2 + $0x3c] sm:$0xf] %vm2395_vm1, %v2330_v45  ;;  %v2360_v40 = vpop.permute.xlu0 %2359  ;;  %3176 = vmatprep.mubr.msk.bf16.mxu0 %vm2576_vm3, %v3291_v29 }
 0x2d1   : > { %2426 = vst.msk [vmem:[#allocation2 + $0x78] sm:$0xf] %vm2395_vm1, %v2360_v40 }
 0x2d3   : > { %v2362_v51 = vpop.permute.xlu1 %2361  ;;  %v3292_v49 = vld [vmem:[#allocation2 + $0x70] sm:$0xff]  }
 0x2d4   : > { %2427 = vst.msk [vmem:[#allocation2 + $0x7c] sm:$0xf] %vm2395_vm1, %v2362_v51  ;;  %3192 = vmatprep.mubr.msk.bf16.mxu1 %vm2576_vm3, %v3292_v49 }
 0x2d7   : > { %v3293_v39 = vld [vmem:[#allocation2 + $0x38] sm:$0xff]  }
 0x2d8   : > { %3177 = vmatmul.mubr.msk.bf16.gmra.mxu0 %vm2576_vm3, %v3293_v39 }
 0x2db   : > { %v3294_v62 = vld [vmem:[#allocation2 + $0x78] sm:$0xff]  }
 0x2dc   : > { %3193 = vmatmul.mubr.msk.bf16.gmra.mxu1 %vm2576_vm3, %v3294_v62 }
 0x300   : > { %v3170_v26 = vpop.f32.mrf.mxu0 }
 0x301   : > { %2796 = vst [vmem:[%s5080_s5 + $0x30] sm:$0xff] %v3170_v26 }
 0x302   : > { %v2679_v22 = vpop.f32.mrf.mxu0 }
 0x303   : > { %2794 = vst [vmem:[%s5080_s5 + $0x20] sm:$0xff] %v2679_v22 }
 0x304   : > { %v3171_v46 = vpop.f32.mrf.mxu0  ;;  %v3186_v18 = vpop.f32.mrf.mxu1 }
 0x305   : > { %2797 = vst [vmem:[%s5080_s5 + $0x38] sm:$0xff] %v3171_v46  ;;  %2812 = vst [vmem:[%s5080_s5 + $0xb0] sm:$0xff] %v3186_v18 }
 0x306   : > { %v2682_v47 = vpop.f32.mrf.mxu0  ;;  %v2743_v56 = vpop.f32.mrf.mxu1 }
 0x307   : > { %2795 = vst [vmem:[%s5080_s5 + $0x28] sm:$0xff] %v2682_v47  ;;  %2810 = vst [vmem:[%s5080_s5 + $0xa0] sm:$0xff] %v2743_v56 }
 0x308   : > { %v3187_v59 = vpop.f32.mrf.mxu1 }
 0x309   : > { %2813 = vst [vmem:[%s5080_s5 + $0xb8] sm:$0xff] %v3187_v59 }
 0x30a   : > { %v2746_v42 = vpop.f32.mrf.mxu1 }
 0x30b   : > { %2811 = vst [vmem:[%s5080_s5 + $0xa8] sm:$0xff] %v2746_v42 }
 0x348   : > { %v3174_v57 = vpop.f32.mrf.mxu0 }
 0x349   : > { %2800 = vst [vmem:[%s5080_s5 + $0x50] sm:$0xff] %v3174_v57 }
 0x34a   : > { %v2695_v7 = vpop.f32.mrf.mxu0 }
 0x34b   : > { %2798 = vst [vmem:[%s5080_s5 + $0x40] sm:$0xff] %v2695_v7 }
 0x34c   : > { %v3175_v38 = vpop.f32.mrf.mxu0  ;;  %v3190_v28 = vpop.f32.mrf.mxu1 }
 0x34d   : > { %2801 = vst [vmem:[%s5080_s5 + $0x58] sm:$0xff] %v3175_v38  ;;  %2816 = vst [vmem:[%s5080_s5 + $0xd0] sm:$0xff] %v3190_v28 }
 0x34e   : > { %v2698_v31 = vpop.f32.mrf.mxu0  ;;  %v2759_v24 = vpop.f32.mrf.mxu1 }
 0x34f   : > { %2799 = vst [vmem:[%s5080_s5 + $0x48] sm:$0xff] %v2698_v31  ;;  %2814 = vst [vmem:[%s5080_s5 + $0xc0] sm:$0xff] %v2759_v24 }
 0x350   : > { %v3191_v11 = vpop.f32.mrf.mxu1 }
 0x351   : > { %2817 = vst [vmem:[%s5080_s5 + $0xd8] sm:$0xff] %v3191_v11 }
 0x352   : > { %v2762_v63 = vpop.f32.mrf.mxu1 }
 0x353   : > { %2815 = vst [vmem:[%s5080_s5 + $0xc8] sm:$0xff] %v2762_v63 }
 0x398   : > { %v3178_v23 = vpop.f32.mrf.mxu0 }
 0x399   : > { %2804 = vst [vmem:[%s5080_s5 + $0x70] sm:$0xff] %v3178_v23 }
 0x39a   : > { %v2711_v37 = vpop.f32.mrf.mxu0 }
 0x39b   : > { %2802 = vst [vmem:[%s5080_s5 + $0x60] sm:$0xff] %v2711_v37 }
 0x39c   : > { %v3179_v52 = vpop.f32.mrf.mxu0  ;;  %v3194_v19 = vpop.f32.mrf.mxu1 }
 0x39d   : > { %2805 = vst [vmem:[%s5080_s5 + $0x78] sm:$0xff] %v3179_v52  ;;  %2820 = vst [vmem:[%s5080_s5 + $0xf0] sm:$0xff] %v3194_v19 }
 0x39e   : > { %v2714_v0 = vpop.f32.mrf.mxu0  ;;  %v2775_v34 = vpop.f32.mrf.mxu1 }
 0x39f   : > { %2803 = vst [vmem:[%s5080_s5 + $0x68] sm:$0xff] %v2714_v0  ;;  %2818 = vst [vmem:[%s5080_s5 + $0xe0] sm:$0xff] %v2775_v34 }
 0x3a0   : > { %v3195_v41 = vpop.f32.mrf.mxu1 }
 0x3a1   : > { %2821 = vst [vmem:[%s5080_s5 + $0xf8] sm:$0xff] %v3195_v41 }
 0x3a2   : > { %v2778_v55 = vpop.f32.mrf.mxu1 }
 0x3a3   : > { %2819 = vst [vmem:[%s5080_s5 + $0xe8] sm:$0xff] %v2778_v55 }
 0x3a4   : > { %3312 = shalt.err (!%p3309_p5)
}
 0x3a5   : > { %s3313_s8 = scalar_lea.hbm %s5134_s22, 4096  ;;  %s3317_s29 = scalar_lea.hbm %s5192_s4, 8192 }
 0x3a6   : > { %p3314_p6 = scmp.ne.s32.totalorder %s5134_s22, %s3313_s8  ;;  %p3318_p10 = scmp.lt.s32.totalorder %s5134_s22, %s5192_s4 }
 0x3a7   : > { %p3319_p11 = scmp.lt.s32.totalorder %s3317_s29, %s3313_s8 }
 0x3a8   : > { %p3315_p7 = pnand %p3314_p6, %p3453_p4 }
 0x3a9   : > { %p3320_p12 = por %p3319_p11, %p3318_p10 }
 0x3aa   : > { %p3316_p9 = pneg %p3315_p7 }
 0x3ac   : > { %p3321_p13 = pnand %p3320_p12, %p3316_p9 }
 0x3ae   : > { %3324 = shalt.err (!%p3321_p13)
}
 0x3af   : > { %s3387_s6 = smov 128  }
 0x3b0   : > { %3209 = dma.vmem_to_hbm [thread:$0]  (%p3453_p4), %s5137_s13, 4096, %s5134_s22, %s5142_s18, %s3387_s6, %s3387_s6, %s3378_s12  }
 0x3b1 PF: > { %p3215_p0 = scmp.ge.s32.totalorder %s3375_s20, 2  ;;  %s2854_s14 = sand.u32 1, %s3355_s15  }
 0x3b2   : > { %s2855_s21 = scalar_lea.sflag [#allocation4], %s2854_s14 }
 0x3b3   : > { %p3212_p1 = pnand %p3215_p0, %p3460_p8 }
 0x3b5   : > { %p3213_p2 = pneg %p3212_p1 }
 0x3b7   : > { %3350 = dma.done.wait (%p3213_p2), %s2855_s21, 4096  }
 0x3b8   : > { %3352 = vsyncadd (%p3213_p2), %s2855_s21, 4294963200  ;;  %s17_s20 = sadd.s32 1, %s3375_s20   ;;  %s5410_s15 = smov %s3359_s16 }
 0x3b9   : > { %p14_p3 = scmp.ge.s32.totalorder %s17_s20, 4   ;;  %s5411_s16 = smov %s3363_s17 }
 0x3ba   : > { %s5412_s17 = smov %s3466_s28  ;;  %s5413_s18 = smov %s3371_s19 }
 0x3bb   : > { %s5414_s19 = smov %s5416_s23  ;;  %16 = sbr.rel (!%p14_p3) target bundleno = 4 (0x4), region = 71 }
 0x3c0   :  { %2860 = vsyncpa [#allocation4], 1 }
 0x3c1   :  { %2862 = vsyncpa [#allocation4 + $0x1], 1 }

</bundles_post_ra>
